<compile_context>
chip_gen: v7x
topology: tpu7x:2x2x1
jax: 0.10.0
libtpu: 0.0.40
codegen_flags: <defaults>
</compile_context>

<pallas_src>
import functools

import jax
import jax.numpy as jnp
from jax.experimental import pallas as pl
from jax.experimental.pallas import tpu as pltpu


# ----------------------------------------------------------------------------
# Single fused kernel: 2 bidirectional LSTM layers + Linear + Sigmoid.
# ----------------------------------------------------------------------------
def _model_kernel(
    x_ref,        # (T*B, D)   flattened input, time-major
    wih0_ref,     # (D, 8H)    layer-0 input projection  [fwd 4H | bwd 4H]
    b0_ref,       # (1, 8H)    layer-0 combined biases   [fwd 4H | bwd 4H]
    whh0f_ref,    # (H, 4H)    layer-0 fwd recurrent weights
    whh0b_ref,    # (H, 4H)    layer-0 bwd recurrent weights
    wih1_ref,     # (2H, 8H)   layer-1 input projection
    b1_ref,       # (1, 8H)
    whh1f_ref,    # (H, 4H)
    whh1b_ref,    # (H, 4H)
    fcw_ref,      # (2H, 5)    final linear (pre-transposed)
    fcb_ref,      # (1, 5)
    out_ref,      # (T*B, 5)
    gx_scr,       # (T*B, 8H) f32 scratch: hoisted input-gates (reused per layer)
    h_scr,        # (T*B, 2H) f32 scratch: layer output [fwd H | bwd H] (reused)
    *, T, B, H,
):
    def lstm_cell(g, c):
        # PyTorch gate order: i, f, g, o
        i = jax.nn.sigmoid(g[:, 0 * H:1 * H])
        f = jax.nn.sigmoid(g[:, 1 * H:2 * H])
        gg = jnp.tanh(g[:, 2 * H:3 * H])
        o = jax.nn.sigmoid(g[:, 3 * H:4 * H])
        c_new = f * c + i * gg
        h_new = o * jnp.tanh(c_new)
        return h_new, c_new

    def run_bilstm(x_all, wih_ref, b_ref, whhf_ref, whhb_ref):
        # Hoisted input projection for BOTH directions: one big MXU matmul,
        # bias folded in once (outside the serial chain).
        gx_scr[...] = (
            jnp.dot(x_all, wih_ref[...], preferred_element_type=jnp.float32)
            + b_ref[...]
        )
        whh_f = whhf_ref[...]
        whh_b = whhb_ref[...]

        def step(t, carry):
            h_f, c_f, h_b, c_b = carry
            rt = T - 1 - t
            # fwd gates live in lanes [0,4H), bwd gates in lanes [4H,8H)
            gx_f = gx_scr[pl.ds(t * B, B), 0:4 * H]
            gx_b = gx_scr[pl.ds(rt * B, B), 4 * H:8 * H]
            g_f = gx_f + jnp.dot(h_f, whh_f, preferred_element_type=jnp.float32)
            g_b = gx_b + jnp.dot(h_b, whh_b, preferred_element_type=jnp.float32)
            h_f, c_f = lstm_cell(g_f, c_f)
            h_b, c_b = lstm_cell(g_b, c_b)
            # Write both directions straight into the (T*B, 2H) slab.
            h_scr[pl.ds(t * B, B), 0:H] = h_f
            h_scr[pl.ds(rt * B, B), H:2 * H] = h_b
            return (h_f, c_f, h_b, c_b)

        z = jnp.zeros((B, H), jnp.float32)
        jax.lax.fori_loop(0, T, step, (z, z, z, z), unroll=True)

    # Layer 0 (input = embedding_dim).
    run_bilstm(x_ref[...], wih0_ref, b0_ref, whh0f_ref, whh0b_ref)
    h0 = h_scr[...]                      # load before the scratch is reused
    # Layer 1 (input = 2H).
    run_bilstm(h0, wih1_ref, b1_ref, whh1f_ref, whh1b_ref)
    # Fused Linear(2H -> 5) + Sigmoid epilogue (no HBM round-trip of h1).
    y = (jnp.dot(h_scr[...], fcw_ref[...], preferred_element_type=jnp.float32)
         + fcb_ref[...])
    out_ref[...] = jax.nn.sigmoid(y).astype(out_ref.dtype)


# ----------------------------------------------------------------------------
# Full model forward (single pallas_call).
# ----------------------------------------------------------------------------
@functools.partial(jax.jit, static_argnames=("hidden_size",))
def model_forward(text, params, hidden_size):
    H = hidden_size
    T, B, D = text.shape

    def pack_layer(pf, pb):
        w_ih_f, w_hh_f, b_f = pf
        w_ih_b, w_hh_b, b_b = pb
        # Pre-transpose once in the wrapper; fuse fwd/bwd input projections.
        wih = jnp.concatenate([w_ih_f.T, w_ih_b.T], axis=1)   # (Din, 8H)
        b = jnp.concatenate([b_f, b_b], axis=1)               # (1, 8H)
        return wih, b, w_hh_f.T, w_hh_b.T                     # whh: (H, 4H)

    wih0, b0, whh0f, whh0b = pack_layer(params["l0_fwd"], params["l0_bwd"])
    wih1, b1, whh1f, whh1b = pack_layer(params["l1_fwd"], params["l1_bwd"])
    fcw = params["fc_w"].T        # (2H, 5)
    fcb = params["fc_b"]          # (1, 5)

    x2 = text.reshape(T * B, D)   # time-major flatten (free)

    kernel = functools.partial(_model_kernel, T=T, B=B, H=H)
    vmem_spec = pl.BlockSpec(memory_space=pltpu.MemorySpace.VMEM)
    out = pl.pallas_call(
        kernel,
        out_shape=jax.ShapeDtypeStruct((T * B, 5), jnp.float32),
        in_specs=[vmem_spec] * 11,
        out_specs=vmem_spec,
        scratch_shapes=[
            pltpu.VMEM((T * B, 8 * H), jnp.float32),   # hoisted input gates
            pltpu.VMEM((T * B, 2 * H), jnp.float32),   # bilstm layer output
        ],
    )(x2, wih0, b0, whh0f, whh0b, wih1, b1, whh1f, whh1b, fcw, fcb)
    return out.reshape(T, B, 5)


# ----------------------------------------------------------------------------
# Pure JAX reference (lax.scan) for validation.
# ----------------------------------------------------------------------------
def _lstm_dir_ref(x, w_ih, w_hh, b, H):
    B = x.shape[1]

    def step(carry, xt):
        h, c = carry
        g = xt @ w_ih.T + h @ w_hh.T + b[0]
        i = jax.nn.sigmoid(g[:, :H])
        f = jax.nn.sigmoid(g[:, H:2 * H])
        gg = jnp.tanh(g[:, 2 * H:3 * H])
        o = jax.nn.sigmoid(g[:, 3 * H:])
        c = f * c + i * gg
        h = o * jnp.tanh(c)
        return (h, c), h

    init = (jnp.zeros((B, H), jnp.float32), jnp.zeros((B, H), jnp.float32))
    _, ys = jax.lax.scan(step, init, x)
    return ys


def _bilstm_ref(x, pf, pb, H):
    f = _lstm_dir_ref(x, *pf, H)
    b = jnp.flip(_lstm_dir_ref(jnp.flip(x, 0), *pb, H), 0)
    return jnp.concatenate([f, b], axis=-1)


def model_ref(text, params, H):
    h0 = _bilstm_ref(text, params["l0_fwd"], params["l0_bwd"], H)
    h1 = _bilstm_ref(h0, params["l1_fwd"], params["l1_bwd"], H)
    y = h1 @ params["fc_w"].T + params["fc_b"][0]
    return jax.nn.sigmoid(y)


# ----------------------------------------------------------------------------
# Deterministic parameter init (PyTorch-style uniform(-1/sqrt(H), 1/sqrt(H))).
# ----------------------------------------------------------------------------
def init_params(key, embedding_dim, hidden_size):
    H = hidden_size
    k = 1.0 / jnp.sqrt(H)

    def uni(key, shape):
        return jax.random.uniform(key, shape, jnp.float32, -k, k)

    keys = iter(jax.random.split(key, 32))

    def dir_params(in_dim):
        w_ih = uni(next(keys), (4 * H, in_dim))
        w_hh = uni(next(keys), (4 * H, H))
        b_ih = uni(next(keys), (1, 4 * H))
        b_hh = uni(next(keys), (1, 4 * H))
        return (w_ih, w_hh, b_ih + b_hh)  # combined bias

    params = {
        "l0_fwd": dir_params(embedding_dim),
        "l0_bwd": dir_params(embedding_dim),
        "l1_fwd": dir_params(2 * H),
        "l1_bwd": dir_params(2 * H),
        "fc_w": uni(next(keys), (5, 2 * H)),
        "fc_b": uni(next(keys), (1, 5)),
    }
    return params


if __name__ == "__main__":
    SEQ, BATCH, EMBED, HIDDEN = 8, 8, 16, 32

    key = jax.random.PRNGKey(0)
    k_x, k_p = jax.random.split(key)
    text = jax.random.normal(k_x, (SEQ, BATCH, EMBED), jnp.float32)
    params = init_params(k_p, EMBED, HIDDEN)

    out = model_forward(text, params, HIDDEN)
    out = jax.block_until_ready(out)

    ref = jax.block_until_ready(model_ref(text, params, HIDDEN))
    assert out.shape == (SEQ, BATCH, 5), out.shape
    err = float(jnp.max(jnp.abs(out - ref)))
    assert err < 1e-3, err

    print("KERNEL_OK")
</pallas_src>

<mosaic_0001>
module attributes {stable_mosaic.version = 11 : i64} {
  func.func @_model_kernel(%arg0: memref<64x16xf32, #tpu.memory_space<vmem>>, %arg1: memref<16x256xf32, #tpu.memory_space<vmem>>, %arg2: memref<1x256xf32, #tpu.memory_space<vmem>>, %arg3: memref<32x128xf32, #tpu.memory_space<vmem>>, %arg4: memref<32x128xf32, #tpu.memory_space<vmem>>, %arg5: memref<64x256xf32, #tpu.memory_space<vmem>>, %arg6: memref<1x256xf32, #tpu.memory_space<vmem>>, %arg7: memref<32x128xf32, #tpu.memory_space<vmem>>, %arg8: memref<32x128xf32, #tpu.memory_space<vmem>>, %arg9: memref<64x5xf32, #tpu.memory_space<vmem>>, %arg10: memref<1x5xf32, #tpu.memory_space<vmem>>, %arg11: memref<64x5xf32, #tpu.memory_space<vmem>>, %arg12: memref<64x256xf32, #tpu.memory_space<vmem>>, %arg13: memref<64x64xf32, #tpu.memory_space<vmem>>) attributes {dimension_semantics = [], scalar_prefetch = 0 : i64, scratch_operands = 2 : i64, tpu.core_type = #tpu.core_type<tc>} {
    %c0 = arith.constant 0 : index
    %c0_0 = arith.constant 0 : index
    %0 = vector.load %arg0[%c0, %c0_0] : memref<64x16xf32, #tpu.memory_space<vmem>>, vector<64x16xf32>
    %c0_1 = arith.constant 0 : index
    %c0_2 = arith.constant 0 : index
    %1 = vector.load %arg1[%c0_1, %c0_2] : memref<16x256xf32, #tpu.memory_space<vmem>>, vector<16x256xf32>
    %cst = arith.constant dense<0.000000e+00> : vector<64x256xf32>
    %2 = tpu.matmul %0, %1, %cst {dimension_numbers = #tpu.dot_dimension_numbers<[1], [0], [0], [1], [0, 0, 1, 1], [], []>} : vector<64x16xf32>, vector<16x256xf32>, vector<64x256xf32> -> vector<64x256xf32>
    %c0_3 = arith.constant 0 : index
    %c0_4 = arith.constant 0 : index
    %3 = vector.load %arg2[%c0_3, %c0_4] : memref<1x256xf32, #tpu.memory_space<vmem>>, vector<1x256xf32>
    %4 = vector.broadcast %3 : vector<1x256xf32> to vector<64x256xf32>
    %5 = arith.addf %2, %4 : vector<64x256xf32>
    %c0_5 = arith.constant 0 : index
    %c0_6 = arith.constant 0 : index
    %6 = vector.load %arg12[%c0_5, %c0_6] : memref<64x256xf32, #tpu.memory_space<vmem>>, vector<64x256xf32>
    tpu.vector_store %arg12[%c0_5, %c0_6], %5 {strides = array<i32>} : memref<64x256xf32, #tpu.memory_space<vmem>>, vector<64x256xf32>,
    %c0_7 = arith.constant 0 : index
    %c0_8 = arith.constant 0 : index
    %7 = vector.load %arg3[%c0_7, %c0_8] : memref<32x128xf32, #tpu.memory_space<vmem>>, vector<32x128xf32>
    %c0_9 = arith.constant 0 : index
    %c0_10 = arith.constant 0 : index
    %8 = vector.load %arg4[%c0_9, %c0_10] : memref<32x128xf32, #tpu.memory_space<vmem>>, vector<32x128xf32>
    %cst_11 = arith.constant 0.000000e+00 : f32
    %9 = vector.broadcast %cst_11 : f32 to vector<8x32xf32>
    %c0_i32 = arith.constant 0 : i32
    %c7_i32 = arith.constant 7 : i32
    %10 = arith.subi %c7_i32, %c0_i32 : i32
    %c8_i32 = arith.constant 8 : i32
    %11 = arith.muli %c0_i32, %c8_i32 : i32
    %12 = arith.index_cast %11 : i32 to index
    %c0_12 = arith.constant 0 : index
    %13 = vector.load %arg12[%12, %c0_12] : memref<64x256xf32, #tpu.memory_space<vmem>>, vector<8x128xf32>
    %c8_i32_13 = arith.constant 8 : i32
    %14 = arith.muli %10, %c8_i32_13 : i32
    %15 = arith.index_cast %14 : i32 to index
    %c128 = arith.constant 128 : index
    %16 = vector.load %arg12[%15, %c128] : memref<64x256xf32, #tpu.memory_space<vmem>>, vector<8x128xf32>
    %cst_14 = arith.constant dense<0.000000e+00> : vector<8x128xf32>
    %17 = tpu.matmul %9, %7, %cst_14 {dimension_numbers = #tpu.dot_dimension_numbers<[1], [0], [0], [1], [0, 0, 1, 1], [], []>} : vector<8x32xf32>, vector<32x128xf32>, vector<8x128xf32> -> vector<8x128xf32>
    %18 = arith.addf %13, %17 : vector<8x128xf32>
    %cst_15 = arith.constant dense<0.000000e+00> : vector<8x128xf32>
    %19 = tpu.matmul %9, %8, %cst_15 {dimension_numbers = #tpu.dot_dimension_numbers<[1], [0], [0], [1], [0, 0, 1, 1], [], []>} : vector<8x32xf32>, vector<32x128xf32>, vector<8x128xf32> -> vector<8x128xf32>
    %20 = arith.addf %16, %19 : vector<8x128xf32>
    %21 = vector.extract_strided_slice %18 {offsets = [0, 0], sizes = [8, 32], strides = [1, 1]} : vector<8x128xf32> to vector<8x32xf32>
    %22 = arith.negf %21 : vector<8x32xf32>
    %23 = math.exp %22 : vector<8x32xf32>
    %cst_16 = arith.constant 1.000000e+00 : f32
    %24 = vector.broadcast %cst_16 : f32 to vector<8x32xf32>
    %25 = arith.addf %24, %23 : vector<8x32xf32>
    %26 = arith.divf %24, %25 : vector<8x32xf32>
    %27 = vector.extract_strided_slice %18 {offsets = [0, 32], sizes = [8, 32], strides = [1, 1]} : vector<8x128xf32> to vector<8x32xf32>
    %28 = arith.negf %27 : vector<8x32xf32>
    %29 = math.exp %28 : vector<8x32xf32>
    %cst_17 = arith.constant 1.000000e+00 : f32
    %30 = vector.broadcast %cst_17 : f32 to vector<8x32xf32>
    %31 = arith.addf %30, %29 : vector<8x32xf32>
    %32 = arith.divf %30, %31 : vector<8x32xf32>
    %33 = vector.extract_strided_slice %18 {offsets = [0, 64], sizes = [8, 32], strides = [1, 1]} : vector<8x128xf32> to vector<8x32xf32>
    %34 = math.tanh %33 : vector<8x32xf32>
    %35 = vector.extract_strided_slice %18 {offsets = [0, 96], sizes = [8, 32], strides = [1, 1]} : vector<8x128xf32> to vector<8x32xf32>
    %36 = arith.negf %35 : vector<8x32xf32>
    %37 = math.exp %36 : vector<8x32xf32>
    %cst_18 = arith.constant 1.000000e+00 : f32
    %38 = vector.broadcast %cst_18 : f32 to vector<8x32xf32>
    %39 = arith.addf %38, %37 : vector<8x32xf32>
    %40 = arith.divf %38, %39 : vector<8x32xf32>
    %41 = arith.mulf %32, %9 : vector<8x32xf32>
    %42 = arith.mulf %26, %34 : vector<8x32xf32>
    %43 = arith.addf %41, %42 : vector<8x32xf32>
    %44 = math.tanh %43 : vector<8x32xf32>
    %45 = arith.mulf %40, %44 : vector<8x32xf32>
    %46 = vector.extract_strided_slice %20 {offsets = [0, 0], sizes = [8, 32], strides = [1, 1]} : vector<8x128xf32> to vector<8x32xf32>
    %47 = arith.negf %46 : vector<8x32xf32>
    %48 = math.exp %47 : vector<8x32xf32>
    %cst_19 = arith.constant 1.000000e+00 : f32
    %49 = vector.broadcast %cst_19 : f32 to vector<8x32xf32>
    %50 = arith.addf %49, %48 : vector<8x32xf32>
    %51 = arith.divf %49, %50 : vector<8x32xf32>
    %52 = vector.extract_strided_slice %20 {offsets = [0, 32], sizes = [8, 32], strides = [1, 1]} : vector<8x128xf32> to vector<8x32xf32>
    %53 = arith.negf %52 : vector<8x32xf32>
    %54 = math.exp %53 : vector<8x32xf32>
    %cst_20 = arith.constant 1.000000e+00 : f32
    %55 = vector.broadcast %cst_20 : f32 to vector<8x32xf32>
    %56 = arith.addf %55, %54 : vector<8x32xf32>
    %57 = arith.divf %55, %56 : vector<8x32xf32>
    %58 = vector.extract_strided_slice %20 {offsets = [0, 64], sizes = [8, 32], strides = [1, 1]} : vector<8x128xf32> to vector<8x32xf32>
    %59 = math.tanh %58 : vector<8x32xf32>
    %60 = vector.extract_strided_slice %20 {offsets = [0, 96], sizes = [8, 32], strides = [1, 1]} : vector<8x128xf32> to vector<8x32xf32>
    %61 = arith.negf %60 : vector<8x32xf32>
    %62 = math.exp %61 : vector<8x32xf32>
    %cst_21 = arith.constant 1.000000e+00 : f32
    %63 = vector.broadcast %cst_21 : f32 to vector<8x32xf32>
    %64 = arith.addf %63, %62 : vector<8x32xf32>
    %65 = arith.divf %63, %64 : vector<8x32xf32>
    %66 = arith.mulf %57, %9 : vector<8x32xf32>
    %67 = arith.mulf %51, %59 : vector<8x32xf32>
    %68 = arith.addf %66, %67 : vector<8x32xf32>
    %69 = math.tanh %68 : vector<8x32xf32>
    %70 = arith.mulf %65, %69 : vector<8x32xf32>
    %c8_i32_22 = arith.constant 8 : i32
    %71 = arith.muli %c0_i32, %c8_i32_22 : i32
    %72 = arith.index_cast %71 : i32 to index
    %c0_23 = arith.constant 0 : index
    %73 = vector.load %arg13[%72, %c0_23] : memref<64x64xf32, #tpu.memory_space<vmem>>, vector<8x32xf32>
    tpu.vector_store %arg13[%72, %c0_23], %45 {strides = array<i32>} : memref<64x64xf32, #tpu.memory_space<vmem>>, vector<8x32xf32>,
    %c8_i32_24 = arith.constant 8 : i32
    %74 = arith.muli %10, %c8_i32_24 : i32
    %75 = arith.index_cast %74 : i32 to index
    %c32 = arith.constant 32 : index
    %76 = vector.load %arg13[%75, %c32] : memref<64x64xf32, #tpu.memory_space<vmem>>, vector<8x32xf32>
    tpu.vector_store %arg13[%75, %c32], %70 {strides = array<i32>} : memref<64x64xf32, #tpu.memory_space<vmem>>, vector<8x32xf32>,
    %c1_i32 = arith.constant 1 : i32
    %c7_i32_25 = arith.constant 7 : i32
    %77 = arith.subi %c7_i32_25, %c1_i32 : i32
    %c8_i32_26 = arith.constant 8 : i32
    %78 = arith.muli %c1_i32, %c8_i32_26 : i32
    %79 = arith.index_cast %78 : i32 to index
    %c0_27 = arith.constant 0 : index
    %80 = vector.load %arg12[%79, %c0_27] : memref<64x256xf32, #tpu.memory_space<vmem>>, vector<8x128xf32>
    %c8_i32_28 = arith.constant 8 : i32
    %81 = arith.muli %77, %c8_i32_28 : i32
    %82 = arith.index_cast %81 : i32 to index
    %c128_29 = arith.constant 128 : index
    %83 = vector.load %arg12[%82, %c128_29] : memref<64x256xf32, #tpu.memory_space<vmem>>, vector<8x128xf32>
    %cst_30 = arith.constant dense<0.000000e+00> : vector<8x128xf32>
    %84 = tpu.matmul %45, %7, %cst_30 {dimension_numbers = #tpu.dot_dimension_numbers<[1], [0], [0], [1], [0, 0, 1, 1], [], []>} : vector<8x32xf32>, vector<32x128xf32>, vector<8x128xf32> -> vector<8x128xf32>
    %85 = arith.addf %80, %84 : vector<8x128xf32>
    %cst_31 = arith.constant dense<0.000000e+00> : vector<8x128xf32>
    %86 = tpu.matmul %70, %8, %cst_31 {dimension_numbers = #tpu.dot_dimension_numbers<[1], [0], [0], [1], [0, 0, 1, 1], [], []>} : vector<8x32xf32>, vector<32x128xf32>, vector<8x128xf32> -> vector<8x128xf32>
    %87 = arith.addf %83, %86 : vector<8x128xf32>
    %88 = vector.extract_strided_slice %85 {offsets = [0, 0], sizes = [8, 32], strides = [1, 1]} : vector<8x128xf32> to vector<8x32xf32>
    %89 = arith.negf %88 : vector<8x32xf32>
    %90 = math.exp %89 : vector<8x32xf32>
    %cst_32 = arith.constant 1.000000e+00 : f32
    %91 = vector.broadcast %cst_32 : f32 to vector<8x32xf32>
    %92 = arith.addf %91, %90 : vector<8x32xf32>
    %93 = arith.divf %91, %92 : vector<8x32xf32>
    %94 = vector.extract_strided_slice %85 {offsets = [0, 32], sizes = [8, 32], strides = [1, 1]} : vector<8x128xf32> to vector<8x32xf32>
    %95 = arith.negf %94 : vector<8x32xf32>
    %96 = math.exp %95 : vector<8x32xf32>
    %cst_33 = arith.constant 1.000000e+00 : f32
    %97 = vector.broadcast %cst_33 : f32 to vector<8x32xf32>
    %98 = arith.addf %97, %96 : vector<8x32xf32>
    %99 = arith.divf %97, %98 : vector<8x32xf32>
    %100 = vector.extract_strided_slice %85 {offsets = [0, 64], sizes = [8, 32], strides = [1, 1]} : vector<8x128xf32> to vector<8x32xf32>
    %101 = math.tanh %100 : vector<8x32xf32>
    %102 = vector.extract_strided_slice %85 {offsets = [0, 96], sizes = [8, 32], strides = [1, 1]} : vector<8x128xf32> to vector<8x32xf32>
    %103 = arith.negf %102 : vector<8x32xf32>
    %104 = math.exp %103 : vector<8x32xf32>
    %cst_34 = arith.constant 1.000000e+00 : f32
    %105 = vector.broadcast %cst_34 : f32 to vector<8x32xf32>
    %106 = arith.addf %105, %104 : vector<8x32xf32>
    %107 = arith.divf %105, %106 : vector<8x32xf32>
    %108 = arith.mulf %99, %43 : vector<8x32xf32>
    %109 = arith.mulf %93, %101 : vector<8x32xf32>
    %110 = arith.addf %108, %109 : vector<8x32xf32>
    %111 = math.tanh %110 : vector<8x32xf32>
    %112 = arith.mulf %107, %111 : vector<8x32xf32>
    %113 = vector.extract_strided_slice %87 {offsets = [0, 0], sizes = [8, 32], strides = [1, 1]} : vector<8x128xf32> to vector<8x32xf32>
    %114 = arith.negf %113 : vector<8x32xf32>
    %115 = math.exp %114 : vector<8x32xf32>
    %cst_35 = arith.constant 1.000000e+00 : f32
    %116 = vector.broadcast %cst_35 : f32 to vector<8x32xf32>
    %117 = arith.addf %116, %115 : vector<8x32xf32>
    %118 = arith.divf %116, %117 : vector<8x32xf32>
    %119 = vector.extract_strided_slice %87 {offsets = [0, 32], sizes = [8, 32], strides = [1, 1]} : vector<8x128xf32> to vector<8x32xf32>
    %120 = arith.negf %119 : vector<8x32xf32>
    %121 = math.exp %120 : vector<8x32xf32>
    %cst_36 = arith.constant 1.000000e+00 : f32
    %122 = vector.broadcast %cst_36 : f32 to vector<8x32xf32>
    %123 = arith.addf %122, %121 : vector<8x32xf32>
    %124 = arith.divf %122, %123 : vector<8x32xf32>
    %125 = vector.extract_strided_slice %87 {offsets = [0, 64], sizes = [8, 32], strides = [1, 1]} : vector<8x128xf32> to vector<8x32xf32>
    %126 = math.tanh %125 : vector<8x32xf32>
    %127 = vector.extract_strided_slice %87 {offsets = [0, 96], sizes = [8, 32], strides = [1, 1]} : vector<8x128xf32> to vector<8x32xf32>
    %128 = arith.negf %127 : vector<8x32xf32>
    %129 = math.exp %128 : vector<8x32xf32>
    %cst_37 = arith.constant 1.000000e+00 : f32
    %130 = vector.broadcast %cst_37 : f32 to vector<8x32xf32>
    %131 = arith.addf %130, %129 : vector<8x32xf32>
    %132 = arith.divf %130, %131 : vector<8x32xf32>
    %133 = arith.mulf %124, %68 : vector<8x32xf32>
    %134 = arith.mulf %118, %126 : vector<8x32xf32>
    %135 = arith.addf %133, %134 : vector<8x32xf32>
    %136 = math.tanh %135 : vector<8x32xf32>
    %137 = arith.mulf %132, %136 : vector<8x32xf32>
    %c8_i32_38 = arith.constant 8 : i32
    %138 = arith.muli %c1_i32, %c8_i32_38 : i32
    %139 = arith.index_cast %138 : i32 to index
    %c0_39 = arith.constant 0 : index
    %140 = vector.load %arg13[%139, %c0_39] : memref<64x64xf32, #tpu.memory_space<vmem>>, vector<8x32xf32>
    tpu.vector_store %arg13[%139, %c0_39], %112 {strides = array<i32>} : memref<64x64xf32, #tpu.memory_space<vmem>>, vector<8x32xf32>,
    %c8_i32_40 = arith.constant 8 : i32
    %141 = arith.muli %77, %c8_i32_40 : i32
    %142 = arith.index_cast %141 : i32 to index
    %c32_41 = arith.constant 32 : index
    %143 = vector.load %arg13[%142, %c32_41] : memref<64x64xf32, #tpu.memory_space<vmem>>, vector<8x32xf32>
    tpu.vector_store %arg13[%142, %c32_41], %137 {strides = array<i32>} : memref<64x64xf32, #tpu.memory_space<vmem>>, vector<8x32xf32>,
    %c2_i32 = arith.constant 2 : i32
    %c7_i32_42 = arith.constant 7 : i32
    %144 = arith.subi %c7_i32_42, %c2_i32 : i32
    %c8_i32_43 = arith.constant 8 : i32
    %145 = arith.muli %c2_i32, %c8_i32_43 : i32
    %146 = arith.index_cast %145 : i32 to index
    %c0_44 = arith.constant 0 : index
    %147 = vector.load %arg12[%146, %c0_44] : memref<64x256xf32, #tpu.memory_space<vmem>>, vector<8x128xf32>
    %c8_i32_45 = arith.constant 8 : i32
    %148 = arith.muli %144, %c8_i32_45 : i32
    %149 = arith.index_cast %148 : i32 to index
    %c128_46 = arith.constant 128 : index
    %150 = vector.load %arg12[%149, %c128_46] : memref<64x256xf32, #tpu.memory_space<vmem>>, vector<8x128xf32>
    %cst_47 = arith.constant dense<0.000000e+00> : vector<8x128xf32>
    %151 = tpu.matmul %112, %7, %cst_47 {dimension_numbers = #tpu.dot_dimension_numbers<[1], [0], [0], [1], [0, 0, 1, 1], [], []>} : vector<8x32xf32>, vector<32x128xf32>, vector<8x128xf32> -> vector<8x128xf32>
    %152 = arith.addf %147, %151 : vector<8x128xf32>
    %cst_48 = arith.constant dense<0.000000e+00> : vector<8x128xf32>
    %153 = tpu.matmul %137, %8, %cst_48 {dimension_numbers = #tpu.dot_dimension_numbers<[1], [0], [0], [1], [0, 0, 1, 1], [], []>} : vector<8x32xf32>, vector<32x128xf32>, vector<8x128xf32> -> vector<8x128xf32>
    %154 = arith.addf %150, %153 : vector<8x128xf32>
    %155 = vector.extract_strided_slice %152 {offsets = [0, 0], sizes = [8, 32], strides = [1, 1]} : vector<8x128xf32> to vector<8x32xf32>
    %156 = arith.negf %155 : vector<8x32xf32>
    %157 = math.exp %156 : vector<8x32xf32>
    %cst_49 = arith.constant 1.000000e+00 : f32
    %158 = vector.broadcast %cst_49 : f32 to vector<8x32xf32>
    %159 = arith.addf %158, %157 : vector<8x32xf32>
    %160 = arith.divf %158, %159 : vector<8x32xf32>
    %161 = vector.extract_strided_slice %152 {offsets = [0, 32], sizes = [8, 32], strides = [1, 1]} : vector<8x128xf32> to vector<8x32xf32>
    %162 = arith.negf %161 : vector<8x32xf32>
    %163 = math.exp %162 : vector<8x32xf32>
    %cst_50 = arith.constant 1.000000e+00 : f32
    %164 = vector.broadcast %cst_50 : f32 to vector<8x32xf32>
    %165 = arith.addf %164, %163 : vector<8x32xf32>
    %166 = arith.divf %164, %165 : vector<8x32xf32>
    %167 = vector.extract_strided_slice %152 {offsets = [0, 64], sizes = [8, 32], strides = [1, 1]} : vector<8x128xf32> to vector<8x32xf32>
    %168 = math.tanh %167 : vector<8x32xf32>
    %169 = vector.extract_strided_slice %152 {offsets = [0, 96], sizes = [8, 32], strides = [1, 1]} : vector<8x128xf32> to vector<8x32xf32>
    %170 = arith.negf %169 : vector<8x32xf32>
    %171 = math.exp %170 : vector<8x32xf32>
    %cst_51 = arith.constant 1.000000e+00 : f32
    %172 = vector.broadcast %cst_51 : f32 to vector<8x32xf32>
    %173 = arith.addf %172, %171 : vector<8x32xf32>
    %174 = arith.divf %172, %173 : vector<8x32xf32>
    %175 = arith.mulf %166, %110 : vector<8x32xf32>
    %176 = arith.mulf %160, %168 : vector<8x32xf32>
    %177 = arith.addf %175, %176 : vector<8x32xf32>
    %178 = math.tanh %177 : vector<8x32xf32>
    %179 = arith.mulf %174, %178 : vector<8x32xf32>
    %180 = vector.extract_strided_slice %154 {offsets = [0, 0], sizes = [8, 32], strides = [1, 1]} : vector<8x128xf32> to vector<8x32xf32>
    %181 = arith.negf %180 : vector<8x32xf32>
    %182 = math.exp %181 : vector<8x32xf32>
    %cst_52 = arith.constant 1.000000e+00 : f32
    %183 = vector.broadcast %cst_52 : f32 to vector<8x32xf32>
    %184 = arith.addf %183, %182 : vector<8x32xf32>
    %185 = arith.divf %183, %184 : vector<8x32xf32>
    %186 = vector.extract_strided_slice %154 {offsets = [0, 32], sizes = [8, 32], strides = [1, 1]} : vector<8x128xf32> to vector<8x32xf32>
    %187 = arith.negf %186 : vector<8x32xf32>
    %188 = math.exp %187 : vector<8x32xf32>
    %cst_53 = arith.constant 1.000000e+00 : f32
    %189 = vector.broadcast %cst_53 : f32 to vector<8x32xf32>
    %190 = arith.addf %189, %188 : vector<8x32xf32>
    %191 = arith.divf %189, %190 : vector<8x32xf32>
    %192 = vector.extract_strided_slice %154 {offsets = [0, 64], sizes = [8, 32], strides = [1, 1]} : vector<8x128xf32> to vector<8x32xf32>
    %193 = math.tanh %192 : vector<8x32xf32>
    %194 = vector.extract_strided_slice %154 {offsets = [0, 96], sizes = [8, 32], strides = [1, 1]} : vector<8x128xf32> to vector<8x32xf32>
    %195 = arith.negf %194 : vector<8x32xf32>
    %196 = math.exp %195 : vector<8x32xf32>
    %cst_54 = arith.constant 1.000000e+00 : f32
    %197 = vector.broadcast %cst_54 : f32 to vector<8x32xf32>
    %198 = arith.addf %197, %196 : vector<8x32xf32>
    %199 = arith.divf %197, %198 : vector<8x32xf32>
    %200 = arith.mulf %191, %135 : vector<8x32xf32>
    %201 = arith.mulf %185, %193 : vector<8x32xf32>
    %202 = arith.addf %200, %201 : vector<8x32xf32>
    %203 = math.tanh %202 : vector<8x32xf32>
    %204 = arith.mulf %199, %203 : vector<8x32xf32>
    %c8_i32_55 = arith.constant 8 : i32
    %205 = arith.muli %c2_i32, %c8_i32_55 : i32
    %206 = arith.index_cast %205 : i32 to index
    %c0_56 = arith.constant 0 : index
    %207 = vector.load %arg13[%206, %c0_56] : memref<64x64xf32, #tpu.memory_space<vmem>>, vector<8x32xf32>
    tpu.vector_store %arg13[%206, %c0_56], %179 {strides = array<i32>} : memref<64x64xf32, #tpu.memory_space<vmem>>, vector<8x32xf32>,
    %c8_i32_57 = arith.constant 8 : i32
    %208 = arith.muli %144, %c8_i32_57 : i32
    %209 = arith.index_cast %208 : i32 to index
    %c32_58 = arith.constant 32 : index
    %210 = vector.load %arg13[%209, %c32_58] : memref<64x64xf32, #tpu.memory_space<vmem>>, vector<8x32xf32>
    tpu.vector_store %arg13[%209, %c32_58], %204 {strides = array<i32>} : memref<64x64xf32, #tpu.memory_space<vmem>>, vector<8x32xf32>,
    %c3_i32 = arith.constant 3 : i32
    %c7_i32_59 = arith.constant 7 : i32
    %211 = arith.subi %c7_i32_59, %c3_i32 : i32
    %c8_i32_60 = arith.constant 8 : i32
    %212 = arith.muli %c3_i32, %c8_i32_60 : i32
    %213 = arith.index_cast %212 : i32 to index
    %c0_61 = arith.constant 0 : index
    %214 = vector.load %arg12[%213, %c0_61] : memref<64x256xf32, #tpu.memory_space<vmem>>, vector<8x128xf32>
    %c8_i32_62 = arith.constant 8 : i32
    %215 = arith.muli %211, %c8_i32_62 : i32
    %216 = arith.index_cast %215 : i32 to index
    %c128_63 = arith.constant 128 : index
    %217 = vector.load %arg12[%216, %c128_63] : memref<64x256xf32, #tpu.memory_space<vmem>>, vector<8x128xf32>
    %cst_64 = arith.constant dense<0.000000e+00> : vector<8x128xf32>
    %218 = tpu.matmul %179, %7, %cst_64 {dimension_numbers = #tpu.dot_dimension_numbers<[1], [0], [0], [1], [0, 0, 1, 1], [], []>} : vector<8x32xf32>, vector<32x128xf32>, vector<8x128xf32> -> vector<8x128xf32>
    %219 = arith.addf %214, %218 : vector<8x128xf32>
    %cst_65 = arith.constant dense<0.000000e+00> : vector<8x128xf32>
    %220 = tpu.matmul %204, %8, %cst_65 {dimension_numbers = #tpu.dot_dimension_numbers<[1], [0], [0], [1], [0, 0, 1, 1], [], []>} : vector<8x32xf32>, vector<32x128xf32>, vector<8x128xf32> -> vector<8x128xf32>
    %221 = arith.addf %217, %220 : vector<8x128xf32>
    %222 = vector.extract_strided_slice %219 {offsets = [0, 0], sizes = [8, 32], strides = [1, 1]} : vector<8x128xf32> to vector<8x32xf32>
    %223 = arith.negf %222 : vector<8x32xf32>
    %224 = math.exp %223 : vector<8x32xf32>
    %cst_66 = arith.constant 1.000000e+00 : f32
    %225 = vector.broadcast %cst_66 : f32 to vector<8x32xf32>
    %226 = arith.addf %225, %224 : vector<8x32xf32>
    %227 = arith.divf %225, %226 : vector<8x32xf32>
    %228 = vector.extract_strided_slice %219 {offsets = [0, 32], sizes = [8, 32], strides = [1, 1]} : vector<8x128xf32> to vector<8x32xf32>
    %229 = arith.negf %228 : vector<8x32xf32>
    %230 = math.exp %229 : vector<8x32xf32>
    %cst_67 = arith.constant 1.000000e+00 : f32
    %231 = vector.broadcast %cst_67 : f32 to vector<8x32xf32>
    %232 = arith.addf %231, %230 : vector<8x32xf32>
    %233 = arith.divf %231, %232 : vector<8x32xf32>
    %234 = vector.extract_strided_slice %219 {offsets = [0, 64], sizes = [8, 32], strides = [1, 1]} : vector<8x128xf32> to vector<8x32xf32>
    %235 = math.tanh %234 : vector<8x32xf32>
    %236 = vector.extract_strided_slice %219 {offsets = [0, 96], sizes = [8, 32], strides = [1, 1]} : vector<8x128xf32> to vector<8x32xf32>
    %237 = arith.negf %236 : vector<8x32xf32>
    %238 = math.exp %237 : vector<8x32xf32>
    %cst_68 = arith.constant 1.000000e+00 : f32
    %239 = vector.broadcast %cst_68 : f32 to vector<8x32xf32>
    %240 = arith.addf %239, %238 : vector<8x32xf32>
    %241 = arith.divf %239, %240 : vector<8x32xf32>
    %242 = arith.mulf %233, %177 : vector<8x32xf32>
    %243 = arith.mulf %227, %235 : vector<8x32xf32>
    %244 = arith.addf %242, %243 : vector<8x32xf32>
    %245 = math.tanh %244 : vector<8x32xf32>
    %246 = arith.mulf %241, %245 : vector<8x32xf32>
    %247 = vector.extract_strided_slice %221 {offsets = [0, 0], sizes = [8, 32], strides = [1, 1]} : vector<8x128xf32> to vector<8x32xf32>
    %248 = arith.negf %247 : vector<8x32xf32>
    %249 = math.exp %248 : vector<8x32xf32>
    %cst_69 = arith.constant 1.000000e+00 : f32
    %250 = vector.broadcast %cst_69 : f32 to vector<8x32xf32>
    %251 = arith.addf %250, %249 : vector<8x32xf32>
    %252 = arith.divf %250, %251 : vector<8x32xf32>
    %253 = vector.extract_strided_slice %221 {offsets = [0, 32], sizes = [8, 32], strides = [1, 1]} : vector<8x128xf32> to vector<8x32xf32>
    %254 = arith.negf %253 : vector<8x32xf32>
    %255 = math.exp %254 : vector<8x32xf32>
    %cst_70 = arith.constant 1.000000e+00 : f32
    %256 = vector.broadcast %cst_70 : f32 to vector<8x32xf32>
    %257 = arith.addf %256, %255 : vector<8x32xf32>
    %258 = arith.divf %256, %257 : vector<8x32xf32>
    %259 = vector.extract_strided_slice %221 {offsets = [0, 64], sizes = [8, 32], strides = [1, 1]} : vector<8x128xf32> to vector<8x32xf32>
    %260 = math.tanh %259 : vector<8x32xf32>
    %261 = vector.extract_strided_slice %221 {offsets = [0, 96], sizes = [8, 32], strides = [1, 1]} : vector<8x128xf32> to vector<8x32xf32>
    %262 = arith.negf %261 : vector<8x32xf32>
    %263 = math.exp %262 : vector<8x32xf32>
    %cst_71 = arith.constant 1.000000e+00 : f32
    %264 = vector.broadcast %cst_71 : f32 to vector<8x32xf32>
    %265 = arith.addf %264, %263 : vector<8x32xf32>
    %266 = arith.divf %264, %265 : vector<8x32xf32>
    %267 = arith.mulf %258, %202 : vector<8x32xf32>
    %268 = arith.mulf %252, %260 : vector<8x32xf32>
    %269 = arith.addf %267, %268 : vector<8x32xf32>
    %270 = math.tanh %269 : vector<8x32xf32>
    %271 = arith.mulf %266, %270 : vector<8x32xf32>
    %c8_i32_72 = arith.constant 8 : i32
    %272 = arith.muli %c3_i32, %c8_i32_72 : i32
    %273 = arith.index_cast %272 : i32 to index
    %c0_73 = arith.constant 0 : index
    %274 = vector.load %arg13[%273, %c0_73] : memref<64x64xf32, #tpu.memory_space<vmem>>, vector<8x32xf32>
    tpu.vector_store %arg13[%273, %c0_73], %246 {strides = array<i32>} : memref<64x64xf32, #tpu.memory_space<vmem>>, vector<8x32xf32>,
    %c8_i32_74 = arith.constant 8 : i32
    %275 = arith.muli %211, %c8_i32_74 : i32
    %276 = arith.index_cast %275 : i32 to index
    %c32_75 = arith.constant 32 : index
    %277 = vector.load %arg13[%276, %c32_75] : memref<64x64xf32, #tpu.memory_space<vmem>>, vector<8x32xf32>
    tpu.vector_store %arg13[%276, %c32_75], %271 {strides = array<i32>} : memref<64x64xf32, #tpu.memory_space<vmem>>, vector<8x32xf32>,
    %c4_i32 = arith.constant 4 : i32
    %c7_i32_76 = arith.constant 7 : i32
    %278 = arith.subi %c7_i32_76, %c4_i32 : i32
    %c8_i32_77 = arith.constant 8 : i32
    %279 = arith.muli %c4_i32, %c8_i32_77 : i32
    %280 = arith.index_cast %279 : i32 to index
    %c0_78 = arith.constant 0 : index
    %281 = vector.load %arg12[%280, %c0_78] : memref<64x256xf32, #tpu.memory_space<vmem>>, vector<8x128xf32>
    %c8_i32_79 = arith.constant 8 : i32
    %282 = arith.muli %278, %c8_i32_79 : i32
    %283 = arith.index_cast %282 : i32 to index
    %c128_80 = arith.constant 128 : index
    %284 = vector.load %arg12[%283, %c128_80] : memref<64x256xf32, #tpu.memory_space<vmem>>, vector<8x128xf32>
    %cst_81 = arith.constant dense<0.000000e+00> : vector<8x128xf32>
    %285 = tpu.matmul %246, %7, %cst_81 {dimension_numbers = #tpu.dot_dimension_numbers<[1], [0], [0], [1], [0, 0, 1, 1], [], []>} : vector<8x32xf32>, vector<32x128xf32>, vector<8x128xf32> -> vector<8x128xf32>
    %286 = arith.addf %281, %285 : vector<8x128xf32>
    %cst_82 = arith.constant dense<0.000000e+00> : vector<8x128xf32>
    %287 = tpu.matmul %271, %8, %cst_82 {dimension_numbers = #tpu.dot_dimension_numbers<[1], [0], [0], [1], [0, 0, 1, 1], [], []>} : vector<8x32xf32>, vector<32x128xf32>, vector<8x128xf32> -> vector<8x128xf32>
    %288 = arith.addf %284, %287 : vector<8x128xf32>
    %289 = vector.extract_strided_slice %286 {offsets = [0, 0], sizes = [8, 32], strides = [1, 1]} : vector<8x128xf32> to vector<8x32xf32>
    %290 = arith.negf %289 : vector<8x32xf32>
    %291 = math.exp %290 : vector<8x32xf32>
    %cst_83 = arith.constant 1.000000e+00 : f32
    %292 = vector.broadcast %cst_83 : f32 to vector<8x32xf32>
    %293 = arith.addf %292, %291 : vector<8x32xf32>
    %294 = arith.divf %292, %293 : vector<8x32xf32>
    %295 = vector.extract_strided_slice %286 {offsets = [0, 32], sizes = [8, 32], strides = [1, 1]} : vector<8x128xf32> to vector<8x32xf32>
    %296 = arith.negf %295 : vector<8x32xf32>
    %297 = math.exp %296 : vector<8x32xf32>
    %cst_84 = arith.constant 1.000000e+00 : f32
    %298 = vector.broadcast %cst_84 : f32 to vector<8x32xf32>
    %299 = arith.addf %298, %297 : vector<8x32xf32>
    %300 = arith.divf %298, %299 : vector<8x32xf32>
    %301 = vector.extract_strided_slice %286 {offsets = [0, 64], sizes = [8, 32], strides = [1, 1]} : vector<8x128xf32> to vector<8x32xf32>
    %302 = math.tanh %301 : vector<8x32xf32>
    %303 = vector.extract_strided_slice %286 {offsets = [0, 96], sizes = [8, 32], strides = [1, 1]} : vector<8x128xf32> to vector<8x32xf32>
    %304 = arith.negf %303 : vector<8x32xf32>
    %305 = math.exp %304 : vector<8x32xf32>
    %cst_85 = arith.constant 1.000000e+00 : f32
    %306 = vector.broadcast %cst_85 : f32 to vector<8x32xf32>
    %307 = arith.addf %306, %305 : vector<8x32xf32>
    %308 = arith.divf %306, %307 : vector<8x32xf32>
    %309 = arith.mulf %300, %244 : vector<8x32xf32>
    %310 = arith.mulf %294, %302 : vector<8x32xf32>
    %311 = arith.addf %309, %310 : vector<8x32xf32>
    %312 = math.tanh %311 : vector<8x32xf32>
    %313 = arith.mulf %308, %312 : vector<8x32xf32>
    %314 = vector.extract_strided_slice %288 {offsets = [0, 0], sizes = [8, 32], strides = [1, 1]} : vector<8x128xf32> to vector<8x32xf32>
    %315 = arith.negf %314 : vector<8x32xf32>
    %316 = math.exp %315 : vector<8x32xf32>
    %cst_86 = arith.constant 1.000000e+00 : f32
    %317 = vector.broadcast %cst_86 : f32 to vector<8x32xf32>
    %318 = arith.addf %317, %316 : vector<8x32xf32>
    %319 = arith.divf %317, %318 : vector<8x32xf32>
    %320 = vector.extract_strided_slice %288 {offsets = [0, 32], sizes = [8, 32], strides = [1, 1]} : vector<8x128xf32> to vector<8x32xf32>
    %321 = arith.negf %320 : vector<8x32xf32>
    %322 = math.exp %321 : vector<8x32xf32>
    %cst_87 = arith.constant 1.000000e+00 : f32
    %323 = vector.broadcast %cst_87 : f32 to vector<8x32xf32>
    %324 = arith.addf %323, %322 : vector<8x32xf32>
    %325 = arith.divf %323, %324 : vector<8x32xf32>
    %326 = vector.extract_strided_slice %288 {offsets = [0, 64], sizes = [8, 32], strides = [1, 1]} : vector<8x128xf32> to vector<8x32xf32>
    %327 = math.tanh %326 : vector<8x32xf32>
    %328 = vector.extract_strided_slice %288 {offsets = [0, 96], sizes = [8, 32], strides = [1, 1]} : vector<8x128xf32> to vector<8x32xf32>
    %329 = arith.negf %328 : vector<8x32xf32>
    %330 = math.exp %329 : vector<8x32xf32>
    %cst_88 = arith.constant 1.000000e+00 : f32
    %331 = vector.broadcast %cst_88 : f32 to vector<8x32xf32>
    %332 = arith.addf %331, %330 : vector<8x32xf32>
    %333 = arith.divf %331, %332 : vector<8x32xf32>
    %334 = arith.mulf %325, %269 : vector<8x32xf32>
    %335 = arith.mulf %319, %327 : vector<8x32xf32>
    %336 = arith.addf %334, %335 : vector<8x32xf32>
    %337 = math.tanh %336 : vector<8x32xf32>
    %338 = arith.mulf %333, %337 : vector<8x32xf32>
    %c8_i32_89 = arith.constant 8 : i32
    %339 = arith.muli %c4_i32, %c8_i32_89 : i32
    %340 = arith.index_cast %339 : i32 to index
    %c0_90 = arith.constant 0 : index
    %341 = vector.load %arg13[%340, %c0_90] : memref<64x64xf32, #tpu.memory_space<vmem>>, vector<8x32xf32>
    tpu.vector_store %arg13[%340, %c0_90], %313 {strides = array<i32>} : memref<64x64xf32, #tpu.memory_space<vmem>>, vector<8x32xf32>,
    %c8_i32_91 = arith.constant 8 : i32
    %342 = arith.muli %278, %c8_i32_91 : i32
    %343 = arith.index_cast %342 : i32 to index
    %c32_92 = arith.constant 32 : index
    %344 = vector.load %arg13[%343, %c32_92] : memref<64x64xf32, #tpu.memory_space<vmem>>, vector<8x32xf32>
    tpu.vector_store %arg13[%343, %c32_92], %338 {strides = array<i32>} : memref<64x64xf32, #tpu.memory_space<vmem>>, vector<8x32xf32>,
    %c5_i32 = arith.constant 5 : i32
    %c7_i32_93 = arith.constant 7 : i32
    %345 = arith.subi %c7_i32_93, %c5_i32 : i32
    %c8_i32_94 = arith.constant 8 : i32
    %346 = arith.muli %c5_i32, %c8_i32_94 : i32
    %347 = arith.index_cast %346 : i32 to index
    %c0_95 = arith.constant 0 : index
    %348 = vector.load %arg12[%347, %c0_95] : memref<64x256xf32, #tpu.memory_space<vmem>>, vector<8x128xf32>
    %c8_i32_96 = arith.constant 8 : i32
    %349 = arith.muli %345, %c8_i32_96 : i32
    %350 = arith.index_cast %349 : i32 to index
    %c128_97 = arith.constant 128 : index
    %351 = vector.load %arg12[%350, %c128_97] : memref<64x256xf32, #tpu.memory_space<vmem>>, vector<8x128xf32>
    %cst_98 = arith.constant dense<0.000000e+00> : vector<8x128xf32>
    %352 = tpu.matmul %313, %7, %cst_98 {dimension_numbers = #tpu.dot_dimension_numbers<[1], [0], [0], [1], [0, 0, 1, 1], [], []>} : vector<8x32xf32>, vector<32x128xf32>, vector<8x128xf32> -> vector<8x128xf32>
    %353 = arith.addf %348, %352 : vector<8x128xf32>
    %cst_99 = arith.constant dense<0.000000e+00> : vector<8x128xf32>
    %354 = tpu.matmul %338, %8, %cst_99 {dimension_numbers = #tpu.dot_dimension_numbers<[1], [0], [0], [1], [0, 0, 1, 1], [], []>} : vector<8x32xf32>, vector<32x128xf32>, vector<8x128xf32> -> vector<8x128xf32>
    %355 = arith.addf %351, %354 : vector<8x128xf32>
    %356 = vector.extract_strided_slice %353 {offsets = [0, 0], sizes = [8, 32], strides = [1, 1]} : vector<8x128xf32> to vector<8x32xf32>
    %357 = arith.negf %356 : vector<8x32xf32>
    %358 = math.exp %357 : vector<8x32xf32>
    %cst_100 = arith.constant 1.000000e+00 : f32
    %359 = vector.broadcast %cst_100 : f32 to vector<8x32xf32>
    %360 = arith.addf %359, %358 : vector<8x32xf32>
    %361 = arith.divf %359, %360 : vector<8x32xf32>
    %362 = vector.extract_strided_slice %353 {offsets = [0, 32], sizes = [8, 32], strides = [1, 1]} : vector<8x128xf32> to vector<8x32xf32>
    %363 = arith.negf %362 : vector<8x32xf32>
    %364 = math.exp %363 : vector<8x32xf32>
    %cst_101 = arith.constant 1.000000e+00 : f32
    %365 = vector.broadcast %cst_101 : f32 to vector<8x32xf32>
    %366 = arith.addf %365, %364 : vector<8x32xf32>
    %367 = arith.divf %365, %366 : vector<8x32xf32>
    %368 = vector.extract_strided_slice %353 {offsets = [0, 64], sizes = [8, 32], strides = [1, 1]} : vector<8x128xf32> to vector<8x32xf32>
    %369 = math.tanh %368 : vector<8x32xf32>
    %370 = vector.extract_strided_slice %353 {offsets = [0, 96], sizes = [8, 32], strides = [1, 1]} : vector<8x128xf32> to vector<8x32xf32>
    %371 = arith.negf %370 : vector<8x32xf32>
    %372 = math.exp %371 : vector<8x32xf32>
    %cst_102 = arith.constant 1.000000e+00 : f32
    %373 = vector.broadcast %cst_102 : f32 to vector<8x32xf32>
    %374 = arith.addf %373, %372 : vector<8x32xf32>
    %375 = arith.divf %373, %374 : vector<8x32xf32>
    %376 = arith.mulf %367, %311 : vector<8x32xf32>
    %377 = arith.mulf %361, %369 : vector<8x32xf32>
    %378 = arith.addf %376, %377 : vector<8x32xf32>
    %379 = math.tanh %378 : vector<8x32xf32>
    %380 = arith.mulf %375, %379 : vector<8x32xf32>
    %381 = vector.extract_strided_slice %355 {offsets = [0, 0], sizes = [8, 32], strides = [1, 1]} : vector<8x128xf32> to vector<8x32xf32>
    %382 = arith.negf %381 : vector<8x32xf32>
    %383 = math.exp %382 : vector<8x32xf32>
    %cst_103 = arith.constant 1.000000e+00 : f32
    %384 = vector.broadcast %cst_103 : f32 to vector<8x32xf32>
    %385 = arith.addf %384, %383 : vector<8x32xf32>
    %386 = arith.divf %384, %385 : vector<8x32xf32>
    %387 = vector.extract_strided_slice %355 {offsets = [0, 32], sizes = [8, 32], strides = [1, 1]} : vector<8x128xf32> to vector<8x32xf32>
    %388 = arith.negf %387 : vector<8x32xf32>
    %389 = math.exp %388 : vector<8x32xf32>
    %cst_104 = arith.constant 1.000000e+00 : f32
    %390 = vector.broadcast %cst_104 : f32 to vector<8x32xf32>
    %391 = arith.addf %390, %389 : vector<8x32xf32>
    %392 = arith.divf %390, %391 : vector<8x32xf32>
    %393 = vector.extract_strided_slice %355 {offsets = [0, 64], sizes = [8, 32], strides = [1, 1]} : vector<8x128xf32> to vector<8x32xf32>
    %394 = math.tanh %393 : vector<8x32xf32>
    %395 = vector.extract_strided_slice %355 {offsets = [0, 96], sizes = [8, 32], strides = [1, 1]} : vector<8x128xf32> to vector<8x32xf32>
    %396 = arith.negf %395 : vector<8x32xf32>
    %397 = math.exp %396 : vector<8x32xf32>
    %cst_105 = arith.constant 1.000000e+00 : f32
    %398 = vector.broadcast %cst_105 : f32 to vector<8x32xf32>
    %399 = arith.addf %398, %397 : vector<8x32xf32>
    %400 = arith.divf %398, %399 : vector<8x32xf32>
    %401 = arith.mulf %392, %336 : vector<8x32xf32>
    %402 = arith.mulf %386, %394 : vector<8x32xf32>
    %403 = arith.addf %401, %402 : vector<8x32xf32>
    %404 = math.tanh %403 : vector<8x32xf32>
    %405 = arith.mulf %400, %404 : vector<8x32xf32>
    %c8_i32_106 = arith.constant 8 : i32
    %406 = arith.muli %c5_i32, %c8_i32_106 : i32
    %407 = arith.index_cast %406 : i32 to index
    %c0_107 = arith.constant 0 : index
    %408 = vector.load %arg13[%407, %c0_107] : memref<64x64xf32, #tpu.memory_space<vmem>>, vector<8x32xf32>
    tpu.vector_store %arg13[%407, %c0_107], %380 {strides = array<i32>} : memref<64x64xf32, #tpu.memory_space<vmem>>, vector<8x32xf32>,
    %c8_i32_108 = arith.constant 8 : i32
    %409 = arith.muli %345, %c8_i32_108 : i32
    %410 = arith.index_cast %409 : i32 to index
    %c32_109 = arith.constant 32 : index
    %411 = vector.load %arg13[%410, %c32_109] : memref<64x64xf32, #tpu.memory_space<vmem>>, vector<8x32xf32>
    tpu.vector_store %arg13[%410, %c32_109], %405 {strides = array<i32>} : memref<64x64xf32, #tpu.memory_space<vmem>>, vector<8x32xf32>,
    %c6_i32 = arith.constant 6 : i32
    %c7_i32_110 = arith.constant 7 : i32
    %412 = arith.subi %c7_i32_110, %c6_i32 : i32
    %c8_i32_111 = arith.constant 8 : i32
    %413 = arith.muli %c6_i32, %c8_i32_111 : i32
    %414 = arith.index_cast %413 : i32 to index
    %c0_112 = arith.constant 0 : index
    %415 = vector.load %arg12[%414, %c0_112] : memref<64x256xf32, #tpu.memory_space<vmem>>, vector<8x128xf32>
    %c8_i32_113 = arith.constant 8 : i32
    %416 = arith.muli %412, %c8_i32_113 : i32
    %417 = arith.index_cast %416 : i32 to index
    %c128_114 = arith.constant 128 : index
    %418 = vector.load %arg12[%417, %c128_114] : memref<64x256xf32, #tpu.memory_space<vmem>>, vector<8x128xf32>
    %cst_115 = arith.constant dense<0.000000e+00> : vector<8x128xf32>
    %419 = tpu.matmul %380, %7, %cst_115 {dimension_numbers = #tpu.dot_dimension_numbers<[1], [0], [0], [1], [0, 0, 1, 1], [], []>} : vector<8x32xf32>, vector<32x128xf32>, vector<8x128xf32> -> vector<8x128xf32>
    %420 = arith.addf %415, %419 : vector<8x128xf32>
    %cst_116 = arith.constant dense<0.000000e+00> : vector<8x128xf32>
    %421 = tpu.matmul %405, %8, %cst_116 {dimension_numbers = #tpu.dot_dimension_numbers<[1], [0], [0], [1], [0, 0, 1, 1], [], []>} : vector<8x32xf32>, vector<32x128xf32>, vector<8x128xf32> -> vector<8x128xf32>
    %422 = arith.addf %418, %421 : vector<8x128xf32>
    %423 = vector.extract_strided_slice %420 {offsets = [0, 0], sizes = [8, 32], strides = [1, 1]} : vector<8x128xf32> to vector<8x32xf32>
    %424 = arith.negf %423 : vector<8x32xf32>
    %425 = math.exp %424 : vector<8x32xf32>
    %cst_117 = arith.constant 1.000000e+00 : f32
    %426 = vector.broadcast %cst_117 : f32 to vector<8x32xf32>
    %427 = arith.addf %426, %425 : vector<8x32xf32>
    %428 = arith.divf %426, %427 : vector<8x32xf32>
    %429 = vector.extract_strided_slice %420 {offsets = [0, 32], sizes = [8, 32], strides = [1, 1]} : vector<8x128xf32> to vector<8x32xf32>
    %430 = arith.negf %429 : vector<8x32xf32>
    %431 = math.exp %430 : vector<8x32xf32>
    %cst_118 = arith.constant 1.000000e+00 : f32
    %432 = vector.broadcast %cst_118 : f32 to vector<8x32xf32>
    %433 = arith.addf %432, %431 : vector<8x32xf32>
    %434 = arith.divf %432, %433 : vector<8x32xf32>
    %435 = vector.extract_strided_slice %420 {offsets = [0, 64], sizes = [8, 32], strides = [1, 1]} : vector<8x128xf32> to vector<8x32xf32>
    %436 = math.tanh %435 : vector<8x32xf32>
    %437 = vector.extract_strided_slice %420 {offsets = [0, 96], sizes = [8, 32], strides = [1, 1]} : vector<8x128xf32> to vector<8x32xf32>
    %438 = arith.negf %437 : vector<8x32xf32>
    %439 = math.exp %438 : vector<8x32xf32>
    %cst_119 = arith.constant 1.000000e+00 : f32
    %440 = vector.broadcast %cst_119 : f32 to vector<8x32xf32>
    %441 = arith.addf %440, %439 : vector<8x32xf32>
    %442 = arith.divf %440, %441 : vector<8x32xf32>
    %443 = arith.mulf %434, %378 : vector<8x32xf32>
    %444 = arith.mulf %428, %436 : vector<8x32xf32>
    %445 = arith.addf %443, %444 : vector<8x32xf32>
    %446 = math.tanh %445 : vector<8x32xf32>
    %447 = arith.mulf %442, %446 : vector<8x32xf32>
    %448 = vector.extract_strided_slice %422 {offsets = [0, 0], sizes = [8, 32], strides = [1, 1]} : vector<8x128xf32> to vector<8x32xf32>
    %449 = arith.negf %448 : vector<8x32xf32>
    %450 = math.exp %449 : vector<8x32xf32>
    %cst_120 = arith.constant 1.000000e+00 : f32
    %451 = vector.broadcast %cst_120 : f32 to vector<8x32xf32>
    %452 = arith.addf %451, %450 : vector<8x32xf32>
    %453 = arith.divf %451, %452 : vector<8x32xf32>
    %454 = vector.extract_strided_slice %422 {offsets = [0, 32], sizes = [8, 32], strides = [1, 1]} : vector<8x128xf32> to vector<8x32xf32>
    %455 = arith.negf %454 : vector<8x32xf32>
    %456 = math.exp %455 : vector<8x32xf32>
    %cst_121 = arith.constant 1.000000e+00 : f32
    %457 = vector.broadcast %cst_121 : f32 to vector<8x32xf32>
    %458 = arith.addf %457, %456 : vector<8x32xf32>
    %459 = arith.divf %457, %458 : vector<8x32xf32>
    %460 = vector.extract_strided_slice %422 {offsets = [0, 64], sizes = [8, 32], strides = [1, 1]} : vector<8x128xf32> to vector<8x32xf32>
    %461 = math.tanh %460 : vector<8x32xf32>
    %462 = vector.extract_strided_slice %422 {offsets = [0, 96], sizes = [8, 32], strides = [1, 1]} : vector<8x128xf32> to vector<8x32xf32>
    %463 = arith.negf %462 : vector<8x32xf32>
    %464 = math.exp %463 : vector<8x32xf32>
    %cst_122 = arith.constant 1.000000e+00 : f32
    %465 = vector.broadcast %cst_122 : f32 to vector<8x32xf32>
    %466 = arith.addf %465, %464 : vector<8x32xf32>
    %467 = arith.divf %465, %466 : vector<8x32xf32>
    %468 = arith.mulf %459, %403 : vector<8x32xf32>
    %469 = arith.mulf %453, %461 : vector<8x32xf32>
    %470 = arith.addf %468, %469 : vector<8x32xf32>
    %471 = math.tanh %470 : vector<8x32xf32>
    %472 = arith.mulf %467, %471 : vector<8x32xf32>
    %c8_i32_123 = arith.constant 8 : i32
    %473 = arith.muli %c6_i32, %c8_i32_123 : i32
    %474 = arith.index_cast %473 : i32 to index
    %c0_124 = arith.constant 0 : index
    %475 = vector.load %arg13[%474, %c0_124] : memref<64x64xf32, #tpu.memory_space<vmem>>, vector<8x32xf32>
    tpu.vector_store %arg13[%474, %c0_124], %447 {strides = array<i32>} : memref<64x64xf32, #tpu.memory_space<vmem>>, vector<8x32xf32>,
    %c8_i32_125 = arith.constant 8 : i32
    %476 = arith.muli %412, %c8_i32_125 : i32
    %477 = arith.index_cast %476 : i32 to index
    %c32_126 = arith.constant 32 : index
    %478 = vector.load %arg13[%477, %c32_126] : memref<64x64xf32, #tpu.memory_space<vmem>>, vector<8x32xf32>
    tpu.vector_store %arg13[%477, %c32_126], %472 {strides = array<i32>} : memref<64x64xf32, #tpu.memory_space<vmem>>, vector<8x32xf32>,
    %c7_i32_127 = arith.constant 7 : i32
    %c7_i32_128 = arith.constant 7 : i32
    %479 = arith.subi %c7_i32_128, %c7_i32_127 : i32
    %c8_i32_129 = arith.constant 8 : i32
    %480 = arith.muli %c7_i32_127, %c8_i32_129 : i32
    %481 = arith.index_cast %480 : i32 to index
    %c0_130 = arith.constant 0 : index
    %482 = vector.load %arg12[%481, %c0_130] : memref<64x256xf32, #tpu.memory_space<vmem>>, vector<8x128xf32>
    %c8_i32_131 = arith.constant 8 : i32
    %483 = arith.muli %479, %c8_i32_131 : i32
    %484 = arith.index_cast %483 : i32 to index
    %c128_132 = arith.constant 128 : index
    %485 = vector.load %arg12[%484, %c128_132] : memref<64x256xf32, #tpu.memory_space<vmem>>, vector<8x128xf32>
    %cst_133 = arith.constant dense<0.000000e+00> : vector<8x128xf32>
    %486 = tpu.matmul %447, %7, %cst_133 {dimension_numbers = #tpu.dot_dimension_numbers<[1], [0], [0], [1], [0, 0, 1, 1], [], []>} : vector<8x32xf32>, vector<32x128xf32>, vector<8x128xf32> -> vector<8x128xf32>
    %487 = arith.addf %482, %486 : vector<8x128xf32>
    %cst_134 = arith.constant dense<0.000000e+00> : vector<8x128xf32>
    %488 = tpu.matmul %472, %8, %cst_134 {dimension_numbers = #tpu.dot_dimension_numbers<[1], [0], [0], [1], [0, 0, 1, 1], [], []>} : vector<8x32xf32>, vector<32x128xf32>, vector<8x128xf32> -> vector<8x128xf32>
    %489 = arith.addf %485, %488 : vector<8x128xf32>
    %490 = vector.extract_strided_slice %487 {offsets = [0, 0], sizes = [8, 32], strides = [1, 1]} : vector<8x128xf32> to vector<8x32xf32>
    %491 = arith.negf %490 : vector<8x32xf32>
    %492 = math.exp %491 : vector<8x32xf32>
    %cst_135 = arith.constant 1.000000e+00 : f32
    %493 = vector.broadcast %cst_135 : f32 to vector<8x32xf32>
    %494 = arith.addf %493, %492 : vector<8x32xf32>
    %495 = arith.divf %493, %494 : vector<8x32xf32>
    %496 = vector.extract_strided_slice %487 {offsets = [0, 32], sizes = [8, 32], strides = [1, 1]} : vector<8x128xf32> to vector<8x32xf32>
    %497 = arith.negf %496 : vector<8x32xf32>
    %498 = math.exp %497 : vector<8x32xf32>
    %cst_136 = arith.constant 1.000000e+00 : f32
    %499 = vector.broadcast %cst_136 : f32 to vector<8x32xf32>
    %500 = arith.addf %499, %498 : vector<8x32xf32>
    %501 = arith.divf %499, %500 : vector<8x32xf32>
    %502 = vector.extract_strided_slice %487 {offsets = [0, 64], sizes = [8, 32], strides = [1, 1]} : vector<8x128xf32> to vector<8x32xf32>
    %503 = math.tanh %502 : vector<8x32xf32>
    %504 = vector.extract_strided_slice %487 {offsets = [0, 96], sizes = [8, 32], strides = [1, 1]} : vector<8x128xf32> to vector<8x32xf32>
    %505 = arith.negf %504 : vector<8x32xf32>
    %506 = math.exp %505 : vector<8x32xf32>
    %cst_137 = arith.constant 1.000000e+00 : f32
    %507 = vector.broadcast %cst_137 : f32 to vector<8x32xf32>
    %508 = arith.addf %507, %506 : vector<8x32xf32>
    %509 = arith.divf %507, %508 : vector<8x32xf32>
    %510 = arith.mulf %501, %445 : vector<8x32xf32>
    %511 = arith.mulf %495, %503 : vector<8x32xf32>
    %512 = arith.addf %510, %511 : vector<8x32xf32>
    %513 = math.tanh %512 : vector<8x32xf32>
    %514 = arith.mulf %509, %513 : vector<8x32xf32>
    %515 = vector.extract_strided_slice %489 {offsets = [0, 0], sizes = [8, 32], strides = [1, 1]} : vector<8x128xf32> to vector<8x32xf32>
    %516 = arith.negf %515 : vector<8x32xf32>
    %517 = math.exp %516 : vector<8x32xf32>
    %cst_138 = arith.constant 1.000000e+00 : f32
    %518 = vector.broadcast %cst_138 : f32 to vector<8x32xf32>
    %519 = arith.addf %518, %517 : vector<8x32xf32>
    %520 = arith.divf %518, %519 : vector<8x32xf32>
    %521 = vector.extract_strided_slice %489 {offsets = [0, 32], sizes = [8, 32], strides = [1, 1]} : vector<8x128xf32> to vector<8x32xf32>
    %522 = arith.negf %521 : vector<8x32xf32>
    %523 = math.exp %522 : vector<8x32xf32>
    %cst_139 = arith.constant 1.000000e+00 : f32
    %524 = vector.broadcast %cst_139 : f32 to vector<8x32xf32>
    %525 = arith.addf %524, %523 : vector<8x32xf32>
    %526 = arith.divf %524, %525 : vector<8x32xf32>
    %527 = vector.extract_strided_slice %489 {offsets = [0, 64], sizes = [8, 32], strides = [1, 1]} : vector<8x128xf32> to vector<8x32xf32>
    %528 = math.tanh %527 : vector<8x32xf32>
    %529 = vector.extract_strided_slice %489 {offsets = [0, 96], sizes = [8, 32], strides = [1, 1]} : vector<8x128xf32> to vector<8x32xf32>
    %530 = arith.negf %529 : vector<8x32xf32>
    %531 = math.exp %530 : vector<8x32xf32>
    %cst_140 = arith.constant 1.000000e+00 : f32
    %532 = vector.broadcast %cst_140 : f32 to vector<8x32xf32>
    %533 = arith.addf %532, %531 : vector<8x32xf32>
    %534 = arith.divf %532, %533 : vector<8x32xf32>
    %535 = arith.mulf %526, %470 : vector<8x32xf32>
    %536 = arith.mulf %520, %528 : vector<8x32xf32>
    %537 = arith.addf %535, %536 : vector<8x32xf32>
    %538 = math.tanh %537 : vector<8x32xf32>
    %539 = arith.mulf %534, %538 : vector<8x32xf32>
    %c8_i32_141 = arith.constant 8 : i32
    %540 = arith.muli %c7_i32_127, %c8_i32_141 : i32
    %541 = arith.index_cast %540 : i32 to index
    %c0_142 = arith.constant 0 : index
    %542 = vector.load %arg13[%541, %c0_142] : memref<64x64xf32, #tpu.memory_space<vmem>>, vector<8x32xf32>
    tpu.vector_store %arg13[%541, %c0_142], %514 {strides = array<i32>} : memref<64x64xf32, #tpu.memory_space<vmem>>, vector<8x32xf32>,
    %c8_i32_143 = arith.constant 8 : i32
    %543 = arith.muli %479, %c8_i32_143 : i32
    %544 = arith.index_cast %543 : i32 to index
    %c32_144 = arith.constant 32 : index
    %545 = vector.load %arg13[%544, %c32_144] : memref<64x64xf32, #tpu.memory_space<vmem>>, vector<8x32xf32>
    tpu.vector_store %arg13[%544, %c32_144], %539 {strides = array<i32>} : memref<64x64xf32, #tpu.memory_space<vmem>>, vector<8x32xf32>,
    %c8_i32_145 = arith.constant 8 : i32
    %c0_146 = arith.constant 0 : index
    %c0_147 = arith.constant 0 : index
    %546 = vector.load %arg13[%c0_146, %c0_147] : memref<64x64xf32, #tpu.memory_space<vmem>>, vector<64x64xf32>
    %c0_148 = arith.constant 0 : index
    %c0_149 = arith.constant 0 : index
    %547 = vector.load %arg5[%c0_148, %c0_149] : memref<64x256xf32, #tpu.memory_space<vmem>>, vector<64x256xf32>
    %cst_150 = arith.constant dense<0.000000e+00> : vector<64x256xf32>
    %548 = tpu.matmul %546, %547, %cst_150 {dimension_numbers = #tpu.dot_dimension_numbers<[1], [0], [0], [1], [0, 0, 1, 1], [], []>} : vector<64x64xf32>, vector<64x256xf32>, vector<64x256xf32> -> vector<64x256xf32>
    %c0_151 = arith.constant 0 : index
    %c0_152 = arith.constant 0 : index
    %549 = vector.load %arg6[%c0_151, %c0_152] : memref<1x256xf32, #tpu.memory_space<vmem>>, vector<1x256xf32>
    %550 = vector.broadcast %549 : vector<1x256xf32> to vector<64x256xf32>
    %551 = arith.addf %548, %550 : vector<64x256xf32>
    %c0_153 = arith.constant 0 : index
    %c0_154 = arith.constant 0 : index
    %552 = vector.load %arg12[%c0_153, %c0_154] : memref<64x256xf32, #tpu.memory_space<vmem>>, vector<64x256xf32>
    tpu.vector_store %arg12[%c0_153, %c0_154], %551 {strides = array<i32>} : memref<64x256xf32, #tpu.memory_space<vmem>>, vector<64x256xf32>,
    %c0_155 = arith.constant 0 : index
    %c0_156 = arith.constant 0 : index
    %553 = vector.load %arg7[%c0_155, %c0_156] : memref<32x128xf32, #tpu.memory_space<vmem>>, vector<32x128xf32>
    %c0_157 = arith.constant 0 : index
    %c0_158 = arith.constant 0 : index
    %554 = vector.load %arg8[%c0_157, %c0_158] : memref<32x128xf32, #tpu.memory_space<vmem>>, vector<32x128xf32>
    %cst_159 = arith.constant 0.000000e+00 : f32
    %555 = vector.broadcast %cst_159 : f32 to vector<8x32xf32>
    %c0_i32_160 = arith.constant 0 : i32
    %c7_i32_161 = arith.constant 7 : i32
    %556 = arith.subi %c7_i32_161, %c0_i32_160 : i32
    %c8_i32_162 = arith.constant 8 : i32
    %557 = arith.muli %c0_i32_160, %c8_i32_162 : i32
    %558 = arith.index_cast %557 : i32 to index
    %c0_163 = arith.constant 0 : index
    %559 = vector.load %arg12[%558, %c0_163] : memref<64x256xf32, #tpu.memory_space<vmem>>, vector<8x128xf32>
    %c8_i32_164 = arith.constant 8 : i32
    %560 = arith.muli %556, %c8_i32_164 : i32
    %561 = arith.index_cast %560 : i32 to index
    %c128_165 = arith.constant 128 : index
    %562 = vector.load %arg12[%561, %c128_165] : memref<64x256xf32, #tpu.memory_space<vmem>>, vector<8x128xf32>
    %cst_166 = arith.constant dense<0.000000e+00> : vector<8x128xf32>
    %563 = tpu.matmul %555, %553, %cst_166 {dimension_numbers = #tpu.dot_dimension_numbers<[1], [0], [0], [1], [0, 0, 1, 1], [], []>} : vector<8x32xf32>, vector<32x128xf32>, vector<8x128xf32> -> vector<8x128xf32>
    %564 = arith.addf %559, %563 : vector<8x128xf32>
    %cst_167 = arith.constant dense<0.000000e+00> : vector<8x128xf32>
    %565 = tpu.matmul %555, %554, %cst_167 {dimension_numbers = #tpu.dot_dimension_numbers<[1], [0], [0], [1], [0, 0, 1, 1], [], []>} : vector<8x32xf32>, vector<32x128xf32>, vector<8x128xf32> -> vector<8x128xf32>
    %566 = arith.addf %562, %565 : vector<8x128xf32>
    %567 = vector.extract_strided_slice %564 {offsets = [0, 0], sizes = [8, 32], strides = [1, 1]} : vector<8x128xf32> to vector<8x32xf32>
    %568 = arith.negf %567 : vector<8x32xf32>
    %569 = math.exp %568 : vector<8x32xf32>
    %cst_168 = arith.constant 1.000000e+00 : f32
    %570 = vector.broadcast %cst_168 : f32 to vector<8x32xf32>
    %571 = arith.addf %570, %569 : vector<8x32xf32>
    %572 = arith.divf %570, %571 : vector<8x32xf32>
    %573 = vector.extract_strided_slice %564 {offsets = [0, 32], sizes = [8, 32], strides = [1, 1]} : vector<8x128xf32> to vector<8x32xf32>
    %574 = arith.negf %573 : vector<8x32xf32>
    %575 = math.exp %574 : vector<8x32xf32>
    %cst_169 = arith.constant 1.000000e+00 : f32
    %576 = vector.broadcast %cst_169 : f32 to vector<8x32xf32>
    %577 = arith.addf %576, %575 : vector<8x32xf32>
    %578 = arith.divf %576, %577 : vector<8x32xf32>
    %579 = vector.extract_strided_slice %564 {offsets = [0, 64], sizes = [8, 32], strides = [1, 1]} : vector<8x128xf32> to vector<8x32xf32>
    %580 = math.tanh %579 : vector<8x32xf32>
    %581 = vector.extract_strided_slice %564 {offsets = [0, 96], sizes = [8, 32], strides = [1, 1]} : vector<8x128xf32> to vector<8x32xf32>
    %582 = arith.negf %581 : vector<8x32xf32>
    %583 = math.exp %582 : vector<8x32xf32>
    %cst_170 = arith.constant 1.000000e+00 : f32
    %584 = vector.broadcast %cst_170 : f32 to vector<8x32xf32>
    %585 = arith.addf %584, %583 : vector<8x32xf32>
    %586 = arith.divf %584, %585 : vector<8x32xf32>
    %587 = arith.mulf %578, %555 : vector<8x32xf32>
    %588 = arith.mulf %572, %580 : vector<8x32xf32>
    %589 = arith.addf %587, %588 : vector<8x32xf32>
    %590 = math.tanh %589 : vector<8x32xf32>
    %591 = arith.mulf %586, %590 : vector<8x32xf32>
    %592 = vector.extract_strided_slice %566 {offsets = [0, 0], sizes = [8, 32], strides = [1, 1]} : vector<8x128xf32> to vector<8x32xf32>
    %593 = arith.negf %592 : vector<8x32xf32>
    %594 = math.exp %593 : vector<8x32xf32>
    %cst_171 = arith.constant 1.000000e+00 : f32
    %595 = vector.broadcast %cst_171 : f32 to vector<8x32xf32>
    %596 = arith.addf %595, %594 : vector<8x32xf32>
    %597 = arith.divf %595, %596 : vector<8x32xf32>
    %598 = vector.extract_strided_slice %566 {offsets = [0, 32], sizes = [8, 32], strides = [1, 1]} : vector<8x128xf32> to vector<8x32xf32>
    %599 = arith.negf %598 : vector<8x32xf32>
    %600 = math.exp %599 : vector<8x32xf32>
    %cst_172 = arith.constant 1.000000e+00 : f32
    %601 = vector.broadcast %cst_172 : f32 to vector<8x32xf32>
    %602 = arith.addf %601, %600 : vector<8x32xf32>
    %603 = arith.divf %601, %602 : vector<8x32xf32>
    %604 = vector.extract_strided_slice %566 {offsets = [0, 64], sizes = [8, 32], strides = [1, 1]} : vector<8x128xf32> to vector<8x32xf32>
    %605 = math.tanh %604 : vector<8x32xf32>
    %606 = vector.extract_strided_slice %566 {offsets = [0, 96], sizes = [8, 32], strides = [1, 1]} : vector<8x128xf32> to vector<8x32xf32>
    %607 = arith.negf %606 : vector<8x32xf32>
    %608 = math.exp %607 : vector<8x32xf32>
    %cst_173 = arith.constant 1.000000e+00 : f32
    %609 = vector.broadcast %cst_173 : f32 to vector<8x32xf32>
    %610 = arith.addf %609, %608 : vector<8x32xf32>
    %611 = arith.divf %609, %610 : vector<8x32xf32>
    %612 = arith.mulf %603, %555 : vector<8x32xf32>
    %613 = arith.mulf %597, %605 : vector<8x32xf32>
    %614 = arith.addf %612, %613 : vector<8x32xf32>
    %615 = math.tanh %614 : vector<8x32xf32>
    %616 = arith.mulf %611, %615 : vector<8x32xf32>
    %c8_i32_174 = arith.constant 8 : i32
    %617 = arith.muli %c0_i32_160, %c8_i32_174 : i32
    %618 = arith.index_cast %617 : i32 to index
    %c0_175 = arith.constant 0 : index
    %619 = vector.load %arg13[%618, %c0_175] : memref<64x64xf32, #tpu.memory_space<vmem>>, vector<8x32xf32>
    tpu.vector_store %arg13[%618, %c0_175], %591 {strides = array<i32>} : memref<64x64xf32, #tpu.memory_space<vmem>>, vector<8x32xf32>,
    %c8_i32_176 = arith.constant 8 : i32
    %620 = arith.muli %556, %c8_i32_176 : i32
    %621 = arith.index_cast %620 : i32 to index
    %c32_177 = arith.constant 32 : index
    %622 = vector.load %arg13[%621, %c32_177] : memref<64x64xf32, #tpu.memory_space<vmem>>, vector<8x32xf32>
    tpu.vector_store %arg13[%621, %c32_177], %616 {strides = array<i32>} : memref<64x64xf32, #tpu.memory_space<vmem>>, vector<8x32xf32>,
    %c1_i32_178 = arith.constant 1 : i32
    %c7_i32_179 = arith.constant 7 : i32
    %623 = arith.subi %c7_i32_179, %c1_i32_178 : i32
    %c8_i32_180 = arith.constant 8 : i32
    %624 = arith.muli %c1_i32_178, %c8_i32_180 : i32
    %625 = arith.index_cast %624 : i32 to index
    %c0_181 = arith.constant 0 : index
    %626 = vector.load %arg12[%625, %c0_181] : memref<64x256xf32, #tpu.memory_space<vmem>>, vector<8x128xf32>
    %c8_i32_182 = arith.constant 8 : i32
    %627 = arith.muli %623, %c8_i32_182 : i32
    %628 = arith.index_cast %627 : i32 to index
    %c128_183 = arith.constant 128 : index
    %629 = vector.load %arg12[%628, %c128_183] : memref<64x256xf32, #tpu.memory_space<vmem>>, vector<8x128xf32>
    %cst_184 = arith.constant dense<0.000000e+00> : vector<8x128xf32>
    %630 = tpu.matmul %591, %553, %cst_184 {dimension_numbers = #tpu.dot_dimension_numbers<[1], [0], [0], [1], [0, 0, 1, 1], [], []>} : vector<8x32xf32>, vector<32x128xf32>, vector<8x128xf32> -> vector<8x128xf32>
    %631 = arith.addf %626, %630 : vector<8x128xf32>
    %cst_185 = arith.constant dense<0.000000e+00> : vector<8x128xf32>
    %632 = tpu.matmul %616, %554, %cst_185 {dimension_numbers = #tpu.dot_dimension_numbers<[1], [0], [0], [1], [0, 0, 1, 1], [], []>} : vector<8x32xf32>, vector<32x128xf32>, vector<8x128xf32> -> vector<8x128xf32>
    %633 = arith.addf %629, %632 : vector<8x128xf32>
    %634 = vector.extract_strided_slice %631 {offsets = [0, 0], sizes = [8, 32], strides = [1, 1]} : vector<8x128xf32> to vector<8x32xf32>
    %635 = arith.negf %634 : vector<8x32xf32>
    %636 = math.exp %635 : vector<8x32xf32>
    %cst_186 = arith.constant 1.000000e+00 : f32
    %637 = vector.broadcast %cst_186 : f32 to vector<8x32xf32>
    %638 = arith.addf %637, %636 : vector<8x32xf32>
    %639 = arith.divf %637, %638 : vector<8x32xf32>
    %640 = vector.extract_strided_slice %631 {offsets = [0, 32], sizes = [8, 32], strides = [1, 1]} : vector<8x128xf32> to vector<8x32xf32>
    %641 = arith.negf %640 : vector<8x32xf32>
    %642 = math.exp %641 : vector<8x32xf32>
    %cst_187 = arith.constant 1.000000e+00 : f32
    %643 = vector.broadcast %cst_187 : f32 to vector<8x32xf32>
    %644 = arith.addf %643, %642 : vector<8x32xf32>
    %645 = arith.divf %643, %644 : vector<8x32xf32>
    %646 = vector.extract_strided_slice %631 {offsets = [0, 64], sizes = [8, 32], strides = [1, 1]} : vector<8x128xf32> to vector<8x32xf32>
    %647 = math.tanh %646 : vector<8x32xf32>
    %648 = vector.extract_strided_slice %631 {offsets = [0, 96], sizes = [8, 32], strides = [1, 1]} : vector<8x128xf32> to vector<8x32xf32>
    %649 = arith.negf %648 : vector<8x32xf32>
    %650 = math.exp %649 : vector<8x32xf32>
    %cst_188 = arith.constant 1.000000e+00 : f32
    %651 = vector.broadcast %cst_188 : f32 to vector<8x32xf32>
    %652 = arith.addf %651, %650 : vector<8x32xf32>
    %653 = arith.divf %651, %652 : vector<8x32xf32>
    %654 = arith.mulf %645, %589 : vector<8x32xf32>
    %655 = arith.mulf %639, %647 : vector<8x32xf32>
    %656 = arith.addf %654, %655 : vector<8x32xf32>
    %657 = math.tanh %656 : vector<8x32xf32>
    %658 = arith.mulf %653, %657 : vector<8x32xf32>
    %659 = vector.extract_strided_slice %633 {offsets = [0, 0], sizes = [8, 32], strides = [1, 1]} : vector<8x128xf32> to vector<8x32xf32>
    %660 = arith.negf %659 : vector<8x32xf32>
    %661 = math.exp %660 : vector<8x32xf32>
    %cst_189 = arith.constant 1.000000e+00 : f32
    %662 = vector.broadcast %cst_189 : f32 to vector<8x32xf32>
    %663 = arith.addf %662, %661 : vector<8x32xf32>
    %664 = arith.divf %662, %663 : vector<8x32xf32>
    %665 = vector.extract_strided_slice %633 {offsets = [0, 32], sizes = [8, 32], strides = [1, 1]} : vector<8x128xf32> to vector<8x32xf32>
    %666 = arith.negf %665 : vector<8x32xf32>
    %667 = math.exp %666 : vector<8x32xf32>
    %cst_190 = arith.constant 1.000000e+00 : f32
    %668 = vector.broadcast %cst_190 : f32 to vector<8x32xf32>
    %669 = arith.addf %668, %667 : vector<8x32xf32>
    %670 = arith.divf %668, %669 : vector<8x32xf32>
    %671 = vector.extract_strided_slice %633 {offsets = [0, 64], sizes = [8, 32], strides = [1, 1]} : vector<8x128xf32> to vector<8x32xf32>
    %672 = math.tanh %671 : vector<8x32xf32>
    %673 = vector.extract_strided_slice %633 {offsets = [0, 96], sizes = [8, 32], strides = [1, 1]} : vector<8x128xf32> to vector<8x32xf32>
    %674 = arith.negf %673 : vector<8x32xf32>
    %675 = math.exp %674 : vector<8x32xf32>
    %cst_191 = arith.constant 1.000000e+00 : f32
    %676 = vector.broadcast %cst_191 : f32 to vector<8x32xf32>
    %677 = arith.addf %676, %675 : vector<8x32xf32>
    %678 = arith.divf %676, %677 : vector<8x32xf32>
    %679 = arith.mulf %670, %614 : vector<8x32xf32>
    %680 = arith.mulf %664, %672 : vector<8x32xf32>
    %681 = arith.addf %679, %680 : vector<8x32xf32>
    %682 = math.tanh %681 : vector<8x32xf32>
    %683 = arith.mulf %678, %682 : vector<8x32xf32>
    %c8_i32_192 = arith.constant 8 : i32
    %684 = arith.muli %c1_i32_178, %c8_i32_192 : i32
    %685 = arith.index_cast %684 : i32 to index
    %c0_193 = arith.constant 0 : index
    %686 = vector.load %arg13[%685, %c0_193] : memref<64x64xf32, #tpu.memory_space<vmem>>, vector<8x32xf32>
    tpu.vector_store %arg13[%685, %c0_193], %658 {strides = array<i32>} : memref<64x64xf32, #tpu.memory_space<vmem>>, vector<8x32xf32>,
    %c8_i32_194 = arith.constant 8 : i32
    %687 = arith.muli %623, %c8_i32_194 : i32
    %688 = arith.index_cast %687 : i32 to index
    %c32_195 = arith.constant 32 : index
    %689 = vector.load %arg13[%688, %c32_195] : memref<64x64xf32, #tpu.memory_space<vmem>>, vector<8x32xf32>
    tpu.vector_store %arg13[%688, %c32_195], %683 {strides = array<i32>} : memref<64x64xf32, #tpu.memory_space<vmem>>, vector<8x32xf32>,
    %c2_i32_196 = arith.constant 2 : i32
    %c7_i32_197 = arith.constant 7 : i32
    %690 = arith.subi %c7_i32_197, %c2_i32_196 : i32
    %c8_i32_198 = arith.constant 8 : i32
    %691 = arith.muli %c2_i32_196, %c8_i32_198 : i32
    %692 = arith.index_cast %691 : i32 to index
    %c0_199 = arith.constant 0 : index
    %693 = vector.load %arg12[%692, %c0_199] : memref<64x256xf32, #tpu.memory_space<vmem>>, vector<8x128xf32>
    %c8_i32_200 = arith.constant 8 : i32
    %694 = arith.muli %690, %c8_i32_200 : i32
    %695 = arith.index_cast %694 : i32 to index
    %c128_201 = arith.constant 128 : index
    %696 = vector.load %arg12[%695, %c128_201] : memref<64x256xf32, #tpu.memory_space<vmem>>, vector<8x128xf32>
    %cst_202 = arith.constant dense<0.000000e+00> : vector<8x128xf32>
    %697 = tpu.matmul %658, %553, %cst_202 {dimension_numbers = #tpu.dot_dimension_numbers<[1], [0], [0], [1], [0, 0, 1, 1], [], []>} : vector<8x32xf32>, vector<32x128xf32>, vector<8x128xf32> -> vector<8x128xf32>
    %698 = arith.addf %693, %697 : vector<8x128xf32>
    %cst_203 = arith.constant dense<0.000000e+00> : vector<8x128xf32>
    %699 = tpu.matmul %683, %554, %cst_203 {dimension_numbers = #tpu.dot_dimension_numbers<[1], [0], [0], [1], [0, 0, 1, 1], [], []>} : vector<8x32xf32>, vector<32x128xf32>, vector<8x128xf32> -> vector<8x128xf32>
    %700 = arith.addf %696, %699 : vector<8x128xf32>
    %701 = vector.extract_strided_slice %698 {offsets = [0, 0], sizes = [8, 32], strides = [1, 1]} : vector<8x128xf32> to vector<8x32xf32>
    %702 = arith.negf %701 : vector<8x32xf32>
    %703 = math.exp %702 : vector<8x32xf32>
    %cst_204 = arith.constant 1.000000e+00 : f32
    %704 = vector.broadcast %cst_204 : f32 to vector<8x32xf32>
    %705 = arith.addf %704, %703 : vector<8x32xf32>
    %706 = arith.divf %704, %705 : vector<8x32xf32>
    %707 = vector.extract_strided_slice %698 {offsets = [0, 32], sizes = [8, 32], strides = [1, 1]} : vector<8x128xf32> to vector<8x32xf32>
    %708 = arith.negf %707 : vector<8x32xf32>
    %709 = math.exp %708 : vector<8x32xf32>
    %cst_205 = arith.constant 1.000000e+00 : f32
    %710 = vector.broadcast %cst_205 : f32 to vector<8x32xf32>
    %711 = arith.addf %710, %709 : vector<8x32xf32>
    %712 = arith.divf %710, %711 : vector<8x32xf32>
    %713 = vector.extract_strided_slice %698 {offsets = [0, 64], sizes = [8, 32], strides = [1, 1]} : vector<8x128xf32> to vector<8x32xf32>
    %714 = math.tanh %713 : vector<8x32xf32>
    %715 = vector.extract_strided_slice %698 {offsets = [0, 96], sizes = [8, 32], strides = [1, 1]} : vector<8x128xf32> to vector<8x32xf32>
    %716 = arith.negf %715 : vector<8x32xf32>
    %717 = math.exp %716 : vector<8x32xf32>
    %cst_206 = arith.constant 1.000000e+00 : f32
    %718 = vector.broadcast %cst_206 : f32 to vector<8x32xf32>
    %719 = arith.addf %718, %717 : vector<8x32xf32>
    %720 = arith.divf %718, %719 : vector<8x32xf32>
    %721 = arith.mulf %712, %656 : vector<8x32xf32>
    %722 = arith.mulf %706, %714 : vector<8x32xf32>
    %723 = arith.addf %721, %722 : vector<8x32xf32>
    %724 = math.tanh %723 : vector<8x32xf32>
    %725 = arith.mulf %720, %724 : vector<8x32xf32>
    %726 = vector.extract_strided_slice %700 {offsets = [0, 0], sizes = [8, 32], strides = [1, 1]} : vector<8x128xf32> to vector<8x32xf32>
    %727 = arith.negf %726 : vector<8x32xf32>
    %728 = math.exp %727 : vector<8x32xf32>
    %cst_207 = arith.constant 1.000000e+00 : f32
    %729 = vector.broadcast %cst_207 : f32 to vector<8x32xf32>
    %730 = arith.addf %729, %728 : vector<8x32xf32>
    %731 = arith.divf %729, %730 : vector<8x32xf32>
    %732 = vector.extract_strided_slice %700 {offsets = [0, 32], sizes = [8, 32], strides = [1, 1]} : vector<8x128xf32> to vector<8x32xf32>
    %733 = arith.negf %732 : vector<8x32xf32>
    %734 = math.exp %733 : vector<8x32xf32>
    %cst_208 = arith.constant 1.000000e+00 : f32
    %735 = vector.broadcast %cst_208 : f32 to vector<8x32xf32>
    %736 = arith.addf %735, %734 : vector<8x32xf32>
    %737 = arith.divf %735, %736 : vector<8x32xf32>
    %738 = vector.extract_strided_slice %700 {offsets = [0, 64], sizes = [8, 32], strides = [1, 1]} : vector<8x128xf32> to vector<8x32xf32>
    %739 = math.tanh %738 : vector<8x32xf32>
    %740 = vector.extract_strided_slice %700 {offsets = [0, 96], sizes = [8, 32], strides = [1, 1]} : vector<8x128xf32> to vector<8x32xf32>
    %741 = arith.negf %740 : vector<8x32xf32>
    %742 = math.exp %741 : vector<8x32xf32>
    %cst_209 = arith.constant 1.000000e+00 : f32
    %743 = vector.broadcast %cst_209 : f32 to vector<8x32xf32>
    %744 = arith.addf %743, %742 : vector<8x32xf32>
    %745 = arith.divf %743, %744 : vector<8x32xf32>
    %746 = arith.mulf %737, %681 : vector<8x32xf32>
    %747 = arith.mulf %731, %739 : vector<8x32xf32>
    %748 = arith.addf %746, %747 : vector<8x32xf32>
    %749 = math.tanh %748 : vector<8x32xf32>
    %750 = arith.mulf %745, %749 : vector<8x32xf32>
    %c8_i32_210 = arith.constant 8 : i32
    %751 = arith.muli %c2_i32_196, %c8_i32_210 : i32
    %752 = arith.index_cast %751 : i32 to index
    %c0_211 = arith.constant 0 : index
    %753 = vector.load %arg13[%752, %c0_211] : memref<64x64xf32, #tpu.memory_space<vmem>>, vector<8x32xf32>
    tpu.vector_store %arg13[%752, %c0_211], %725 {strides = array<i32>} : memref<64x64xf32, #tpu.memory_space<vmem>>, vector<8x32xf32>,
    %c8_i32_212 = arith.constant 8 : i32
    %754 = arith.muli %690, %c8_i32_212 : i32
    %755 = arith.index_cast %754 : i32 to index
    %c32_213 = arith.constant 32 : index
    %756 = vector.load %arg13[%755, %c32_213] : memref<64x64xf32, #tpu.memory_space<vmem>>, vector<8x32xf32>
    tpu.vector_store %arg13[%755, %c32_213], %750 {strides = array<i32>} : memref<64x64xf32, #tpu.memory_space<vmem>>, vector<8x32xf32>,
    %c3_i32_214 = arith.constant 3 : i32
    %c7_i32_215 = arith.constant 7 : i32
    %757 = arith.subi %c7_i32_215, %c3_i32_214 : i32
    %c8_i32_216 = arith.constant 8 : i32
    %758 = arith.muli %c3_i32_214, %c8_i32_216 : i32
    %759 = arith.index_cast %758 : i32 to index
    %c0_217 = arith.constant 0 : index
    %760 = vector.load %arg12[%759, %c0_217] : memref<64x256xf32, #tpu.memory_space<vmem>>, vector<8x128xf32>
    %c8_i32_218 = arith.constant 8 : i32
    %761 = arith.muli %757, %c8_i32_218 : i32
    %762 = arith.index_cast %761 : i32 to index
    %c128_219 = arith.constant 128 : index
    %763 = vector.load %arg12[%762, %c128_219] : memref<64x256xf32, #tpu.memory_space<vmem>>, vector<8x128xf32>
    %cst_220 = arith.constant dense<0.000000e+00> : vector<8x128xf32>
    %764 = tpu.matmul %725, %553, %cst_220 {dimension_numbers = #tpu.dot_dimension_numbers<[1], [0], [0], [1], [0, 0, 1, 1], [], []>} : vector<8x32xf32>, vector<32x128xf32>, vector<8x128xf32> -> vector<8x128xf32>
    %765 = arith.addf %760, %764 : vector<8x128xf32>
    %cst_221 = arith.constant dense<0.000000e+00> : vector<8x128xf32>
    %766 = tpu.matmul %750, %554, %cst_221 {dimension_numbers = #tpu.dot_dimension_numbers<[1], [0], [0], [1], [0, 0, 1, 1], [], []>} : vector<8x32xf32>, vector<32x128xf32>, vector<8x128xf32> -> vector<8x128xf32>
    %767 = arith.addf %763, %766 : vector<8x128xf32>
    %768 = vector.extract_strided_slice %765 {offsets = [0, 0], sizes = [8, 32], strides = [1, 1]} : vector<8x128xf32> to vector<8x32xf32>
    %769 = arith.negf %768 : vector<8x32xf32>
    %770 = math.exp %769 : vector<8x32xf32>
    %cst_222 = arith.constant 1.000000e+00 : f32
    %771 = vector.broadcast %cst_222 : f32 to vector<8x32xf32>
    %772 = arith.addf %771, %770 : vector<8x32xf32>
    %773 = arith.divf %771, %772 : vector<8x32xf32>
    %774 = vector.extract_strided_slice %765 {offsets = [0, 32], sizes = [8, 32], strides = [1, 1]} : vector<8x128xf32> to vector<8x32xf32>
    %775 = arith.negf %774 : vector<8x32xf32>
    %776 = math.exp %775 : vector<8x32xf32>
    %cst_223 = arith.constant 1.000000e+00 : f32
    %777 = vector.broadcast %cst_223 : f32 to vector<8x32xf32>
    %778 = arith.addf %777, %776 : vector<8x32xf32>
    %779 = arith.divf %777, %778 : vector<8x32xf32>
    %780 = vector.extract_strided_slice %765 {offsets = [0, 64], sizes = [8, 32], strides = [1, 1]} : vector<8x128xf32> to vector<8x32xf32>
    %781 = math.tanh %780 : vector<8x32xf32>
    %782 = vector.extract_strided_slice %765 {offsets = [0, 96], sizes = [8, 32], strides = [1, 1]} : vector<8x128xf32> to vector<8x32xf32>
    %783 = arith.negf %782 : vector<8x32xf32>
    %784 = math.exp %783 : vector<8x32xf32>
    %cst_224 = arith.constant 1.000000e+00 : f32
    %785 = vector.broadcast %cst_224 : f32 to vector<8x32xf32>
    %786 = arith.addf %785, %784 : vector<8x32xf32>
    %787 = arith.divf %785, %786 : vector<8x32xf32>
    %788 = arith.mulf %779, %723 : vector<8x32xf32>
    %789 = arith.mulf %773, %781 : vector<8x32xf32>
    %790 = arith.addf %788, %789 : vector<8x32xf32>
    %791 = math.tanh %790 : vector<8x32xf32>
    %792 = arith.mulf %787, %791 : vector<8x32xf32>
    %793 = vector.extract_strided_slice %767 {offsets = [0, 0], sizes = [8, 32], strides = [1, 1]} : vector<8x128xf32> to vector<8x32xf32>
    %794 = arith.negf %793 : vector<8x32xf32>
    %795 = math.exp %794 : vector<8x32xf32>
    %cst_225 = arith.constant 1.000000e+00 : f32
    %796 = vector.broadcast %cst_225 : f32 to vector<8x32xf32>
    %797 = arith.addf %796, %795 : vector<8x32xf32>
    %798 = arith.divf %796, %797 : vector<8x32xf32>
    %799 = vector.extract_strided_slice %767 {offsets = [0, 32], sizes = [8, 32], strides = [1, 1]} : vector<8x128xf32> to vector<8x32xf32>
    %800 = arith.negf %799 : vector<8x32xf32>
    %801 = math.exp %800 : vector<8x32xf32>
    %cst_226 = arith.constant 1.000000e+00 : f32
    %802 = vector.broadcast %cst_226 : f32 to vector<8x32xf32>
    %803 = arith.addf %802, %801 : vector<8x32xf32>
    %804 = arith.divf %802, %803 : vector<8x32xf32>
    %805 = vector.extract_strided_slice %767 {offsets = [0, 64], sizes = [8, 32], strides = [1, 1]} : vector<8x128xf32> to vector<8x32xf32>
    %806 = math.tanh %805 : vector<8x32xf32>
    %807 = vector.extract_strided_slice %767 {offsets = [0, 96], sizes = [8, 32], strides = [1, 1]} : vector<8x128xf32> to vector<8x32xf32>
    %808 = arith.negf %807 : vector<8x32xf32>
    %809 = math.exp %808 : vector<8x32xf32>
    %cst_227 = arith.constant 1.000000e+00 : f32
    %810 = vector.broadcast %cst_227 : f32 to vector<8x32xf32>
    %811 = arith.addf %810, %809 : vector<8x32xf32>
    %812 = arith.divf %810, %811 : vector<8x32xf32>
    %813 = arith.mulf %804, %748 : vector<8x32xf32>
    %814 = arith.mulf %798, %806 : vector<8x32xf32>
    %815 = arith.addf %813, %814 : vector<8x32xf32>
    %816 = math.tanh %815 : vector<8x32xf32>
    %817 = arith.mulf %812, %816 : vector<8x32xf32>
    %c8_i32_228 = arith.constant 8 : i32
    %818 = arith.muli %c3_i32_214, %c8_i32_228 : i32
    %819 = arith.index_cast %818 : i32 to index
    %c0_229 = arith.constant 0 : index
    %820 = vector.load %arg13[%819, %c0_229] : memref<64x64xf32, #tpu.memory_space<vmem>>, vector<8x32xf32>
    tpu.vector_store %arg13[%819, %c0_229], %792 {strides = array<i32>} : memref<64x64xf32, #tpu.memory_space<vmem>>, vector<8x32xf32>,
    %c8_i32_230 = arith.constant 8 : i32
    %821 = arith.muli %757, %c8_i32_230 : i32
    %822 = arith.index_cast %821 : i32 to index
    %c32_231 = arith.constant 32 : index
    %823 = vector.load %arg13[%822, %c32_231] : memref<64x64xf32, #tpu.memory_space<vmem>>, vector<8x32xf32>
    tpu.vector_store %arg13[%822, %c32_231], %817 {strides = array<i32>} : memref<64x64xf32, #tpu.memory_space<vmem>>, vector<8x32xf32>,
    %c4_i32_232 = arith.constant 4 : i32
    %c7_i32_233 = arith.constant 7 : i32
    %824 = arith.subi %c7_i32_233, %c4_i32_232 : i32
    %c8_i32_234 = arith.constant 8 : i32
    %825 = arith.muli %c4_i32_232, %c8_i32_234 : i32
    %826 = arith.index_cast %825 : i32 to index
    %c0_235 = arith.constant 0 : index
    %827 = vector.load %arg12[%826, %c0_235] : memref<64x256xf32, #tpu.memory_space<vmem>>, vector<8x128xf32>
    %c8_i32_236 = arith.constant 8 : i32
    %828 = arith.muli %824, %c8_i32_236 : i32
    %829 = arith.index_cast %828 : i32 to index
    %c128_237 = arith.constant 128 : index
    %830 = vector.load %arg12[%829, %c128_237] : memref<64x256xf32, #tpu.memory_space<vmem>>, vector<8x128xf32>
    %cst_238 = arith.constant dense<0.000000e+00> : vector<8x128xf32>
    %831 = tpu.matmul %792, %553, %cst_238 {dimension_numbers = #tpu.dot_dimension_numbers<[1], [0], [0], [1], [0, 0, 1, 1], [], []>} : vector<8x32xf32>, vector<32x128xf32>, vector<8x128xf32> -> vector<8x128xf32>
    %832 = arith.addf %827, %831 : vector<8x128xf32>
    %cst_239 = arith.constant dense<0.000000e+00> : vector<8x128xf32>
    %833 = tpu.matmul %817, %554, %cst_239 {dimension_numbers = #tpu.dot_dimension_numbers<[1], [0], [0], [1], [0, 0, 1, 1], [], []>} : vector<8x32xf32>, vector<32x128xf32>, vector<8x128xf32> -> vector<8x128xf32>
    %834 = arith.addf %830, %833 : vector<8x128xf32>
    %835 = vector.extract_strided_slice %832 {offsets = [0, 0], sizes = [8, 32], strides = [1, 1]} : vector<8x128xf32> to vector<8x32xf32>
    %836 = arith.negf %835 : vector<8x32xf32>
    %837 = math.exp %836 : vector<8x32xf32>
    %cst_240 = arith.constant 1.000000e+00 : f32
    %838 = vector.broadcast %cst_240 : f32 to vector<8x32xf32>
    %839 = arith.addf %838, %837 : vector<8x32xf32>
    %840 = arith.divf %838, %839 : vector<8x32xf32>
    %841 = vector.extract_strided_slice %832 {offsets = [0, 32], sizes = [8, 32], strides = [1, 1]} : vector<8x128xf32> to vector<8x32xf32>
    %842 = arith.negf %841 : vector<8x32xf32>
    %843 = math.exp %842 : vector<8x32xf32>
    %cst_241 = arith.constant 1.000000e+00 : f32
    %844 = vector.broadcast %cst_241 : f32 to vector<8x32xf32>
    %845 = arith.addf %844, %843 : vector<8x32xf32>
    %846 = arith.divf %844, %845 : vector<8x32xf32>
    %847 = vector.extract_strided_slice %832 {offsets = [0, 64], sizes = [8, 32], strides = [1, 1]} : vector<8x128xf32> to vector<8x32xf32>
    %848 = math.tanh %847 : vector<8x32xf32>
    %849 = vector.extract_strided_slice %832 {offsets = [0, 96], sizes = [8, 32], strides = [1, 1]} : vector<8x128xf32> to vector<8x32xf32>
    %850 = arith.negf %849 : vector<8x32xf32>
    %851 = math.exp %850 : vector<8x32xf32>
    %cst_242 = arith.constant 1.000000e+00 : f32
    %852 = vector.broadcast %cst_242 : f32 to vector<8x32xf32>
    %853 = arith.addf %852, %851 : vector<8x32xf32>
    %854 = arith.divf %852, %853 : vector<8x32xf32>
    %855 = arith.mulf %846, %790 : vector<8x32xf32>
    %856 = arith.mulf %840, %848 : vector<8x32xf32>
    %857 = arith.addf %855, %856 : vector<8x32xf32>
    %858 = math.tanh %857 : vector<8x32xf32>
    %859 = arith.mulf %854, %858 : vector<8x32xf32>
    %860 = vector.extract_strided_slice %834 {offsets = [0, 0], sizes = [8, 32], strides = [1, 1]} : vector<8x128xf32> to vector<8x32xf32>
    %861 = arith.negf %860 : vector<8x32xf32>
    %862 = math.exp %861 : vector<8x32xf32>
    %cst_243 = arith.constant 1.000000e+00 : f32
    %863 = vector.broadcast %cst_243 : f32 to vector<8x32xf32>
    %864 = arith.addf %863, %862 : vector<8x32xf32>
    %865 = arith.divf %863, %864 : vector<8x32xf32>
    %866 = vector.extract_strided_slice %834 {offsets = [0, 32], sizes = [8, 32], strides = [1, 1]} : vector<8x128xf32> to vector<8x32xf32>
    %867 = arith.negf %866 : vector<8x32xf32>
    %868 = math.exp %867 : vector<8x32xf32>
    %cst_244 = arith.constant 1.000000e+00 : f32
    %869 = vector.broadcast %cst_244 : f32 to vector<8x32xf32>
    %870 = arith.addf %869, %868 : vector<8x32xf32>
    %871 = arith.divf %869, %870 : vector<8x32xf32>
    %872 = vector.extract_strided_slice %834 {offsets = [0, 64], sizes = [8, 32], strides = [1, 1]} : vector<8x128xf32> to vector<8x32xf32>
    %873 = math.tanh %872 : vector<8x32xf32>
    %874 = vector.extract_strided_slice %834 {offsets = [0, 96], sizes = [8, 32], strides = [1, 1]} : vector<8x128xf32> to vector<8x32xf32>
    %875 = arith.negf %874 : vector<8x32xf32>
    %876 = math.exp %875 : vector<8x32xf32>
    %cst_245 = arith.constant 1.000000e+00 : f32
    %877 = vector.broadcast %cst_245 : f32 to vector<8x32xf32>
    %878 = arith.addf %877, %876 : vector<8x32xf32>
    %879 = arith.divf %877, %878 : vector<8x32xf32>
    %880 = arith.mulf %871, %815 : vector<8x32xf32>
    %881 = arith.mulf %865, %873 : vector<8x32xf32>
    %882 = arith.addf %880, %881 : vector<8x32xf32>
    %883 = math.tanh %882 : vector<8x32xf32>
    %884 = arith.mulf %879, %883 : vector<8x32xf32>
    %c8_i32_246 = arith.constant 8 : i32
    %885 = arith.muli %c4_i32_232, %c8_i32_246 : i32
    %886 = arith.index_cast %885 : i32 to index
    %c0_247 = arith.constant 0 : index
    %887 = vector.load %arg13[%886, %c0_247] : memref<64x64xf32, #tpu.memory_space<vmem>>, vector<8x32xf32>
    tpu.vector_store %arg13[%886, %c0_247], %859 {strides = array<i32>} : memref<64x64xf32, #tpu.memory_space<vmem>>, vector<8x32xf32>,
    %c8_i32_248 = arith.constant 8 : i32
    %888 = arith.muli %824, %c8_i32_248 : i32
    %889 = arith.index_cast %888 : i32 to index
    %c32_249 = arith.constant 32 : index
    %890 = vector.load %arg13[%889, %c32_249] : memref<64x64xf32, #tpu.memory_space<vmem>>, vector<8x32xf32>
    tpu.vector_store %arg13[%889, %c32_249], %884 {strides = array<i32>} : memref<64x64xf32, #tpu.memory_space<vmem>>, vector<8x32xf32>,
    %c5_i32_250 = arith.constant 5 : i32
    %c7_i32_251 = arith.constant 7 : i32
    %891 = arith.subi %c7_i32_251, %c5_i32_250 : i32
    %c8_i32_252 = arith.constant 8 : i32
    %892 = arith.muli %c5_i32_250, %c8_i32_252 : i32
    %893 = arith.index_cast %892 : i32 to index
    %c0_253 = arith.constant 0 : index
    %894 = vector.load %arg12[%893, %c0_253] : memref<64x256xf32, #tpu.memory_space<vmem>>, vector<8x128xf32>
    %c8_i32_254 = arith.constant 8 : i32
    %895 = arith.muli %891, %c8_i32_254 : i32
    %896 = arith.index_cast %895 : i32 to index
    %c128_255 = arith.constant 128 : index
    %897 = vector.load %arg12[%896, %c128_255] : memref<64x256xf32, #tpu.memory_space<vmem>>, vector<8x128xf32>
    %cst_256 = arith.constant dense<0.000000e+00> : vector<8x128xf32>
    %898 = tpu.matmul %859, %553, %cst_256 {dimension_numbers = #tpu.dot_dimension_numbers<[1], [0], [0], [1], [0, 0, 1, 1], [], []>} : vector<8x32xf32>, vector<32x128xf32>, vector<8x128xf32> -> vector<8x128xf32>
    %899 = arith.addf %894, %898 : vector<8x128xf32>
    %cst_257 = arith.constant dense<0.000000e+00> : vector<8x128xf32>
    %900 = tpu.matmul %884, %554, %cst_257 {dimension_numbers = #tpu.dot_dimension_numbers<[1], [0], [0], [1], [0, 0, 1, 1], [], []>} : vector<8x32xf32>, vector<32x128xf32>, vector<8x128xf32> -> vector<8x128xf32>
    %901 = arith.addf %897, %900 : vector<8x128xf32>
    %902 = vector.extract_strided_slice %899 {offsets = [0, 0], sizes = [8, 32], strides = [1, 1]} : vector<8x128xf32> to vector<8x32xf32>
    %903 = arith.negf %902 : vector<8x32xf32>
    %904 = math.exp %903 : vector<8x32xf32>
    %cst_258 = arith.constant 1.000000e+00 : f32
    %905 = vector.broadcast %cst_258 : f32 to vector<8x32xf32>
    %906 = arith.addf %905, %904 : vector<8x32xf32>
    %907 = arith.divf %905, %906 : vector<8x32xf32>
    %908 = vector.extract_strided_slice %899 {offsets = [0, 32], sizes = [8, 32], strides = [1, 1]} : vector<8x128xf32> to vector<8x32xf32>
    %909 = arith.negf %908 : vector<8x32xf32>
    %910 = math.exp %909 : vector<8x32xf32>
    %cst_259 = arith.constant 1.000000e+00 : f32
    %911 = vector.broadcast %cst_259 : f32 to vector<8x32xf32>
    %912 = arith.addf %911, %910 : vector<8x32xf32>
    %913 = arith.divf %911, %912 : vector<8x32xf32>
    %914 = vector.extract_strided_slice %899 {offsets = [0, 64], sizes = [8, 32], strides = [1, 1]} : vector<8x128xf32> to vector<8x32xf32>
    %915 = math.tanh %914 : vector<8x32xf32>
    %916 = vector.extract_strided_slice %899 {offsets = [0, 96], sizes = [8, 32], strides = [1, 1]} : vector<8x128xf32> to vector<8x32xf32>
    %917 = arith.negf %916 : vector<8x32xf32>
    %918 = math.exp %917 : vector<8x32xf32>
    %cst_260 = arith.constant 1.000000e+00 : f32
    %919 = vector.broadcast %cst_260 : f32 to vector<8x32xf32>
    %920 = arith.addf %919, %918 : vector<8x32xf32>
    %921 = arith.divf %919, %920 : vector<8x32xf32>
    %922 = arith.mulf %913, %857 : vector<8x32xf32>
    %923 = arith.mulf %907, %915 : vector<8x32xf32>
    %924 = arith.addf %922, %923 : vector<8x32xf32>
    %925 = math.tanh %924 : vector<8x32xf32>
    %926 = arith.mulf %921, %925 : vector<8x32xf32>
    %927 = vector.extract_strided_slice %901 {offsets = [0, 0], sizes = [8, 32], strides = [1, 1]} : vector<8x128xf32> to vector<8x32xf32>
    %928 = arith.negf %927 : vector<8x32xf32>
    %929 = math.exp %928 : vector<8x32xf32>
    %cst_261 = arith.constant 1.000000e+00 : f32
    %930 = vector.broadcast %cst_261 : f32 to vector<8x32xf32>
    %931 = arith.addf %930, %929 : vector<8x32xf32>
    %932 = arith.divf %930, %931 : vector<8x32xf32>
    %933 = vector.extract_strided_slice %901 {offsets = [0, 32], sizes = [8, 32], strides = [1, 1]} : vector<8x128xf32> to vector<8x32xf32>
    %934 = arith.negf %933 : vector<8x32xf32>
    %935 = math.exp %934 : vector<8x32xf32>
    %cst_262 = arith.constant 1.000000e+00 : f32
    %936 = vector.broadcast %cst_262 : f32 to vector<8x32xf32>
    %937 = arith.addf %936, %935 : vector<8x32xf32>
    %938 = arith.divf %936, %937 : vector<8x32xf32>
    %939 = vector.extract_strided_slice %901 {offsets = [0, 64], sizes = [8, 32], strides = [1, 1]} : vector<8x128xf32> to vector<8x32xf32>
    %940 = math.tanh %939 : vector<8x32xf32>
    %941 = vector.extract_strided_slice %901 {offsets = [0, 96], sizes = [8, 32], strides = [1, 1]} : vector<8x128xf32> to vector<8x32xf32>
    %942 = arith.negf %941 : vector<8x32xf32>
    %943 = math.exp %942 : vector<8x32xf32>
    %cst_263 = arith.constant 1.000000e+00 : f32
    %944 = vector.broadcast %cst_263 : f32 to vector<8x32xf32>
    %945 = arith.addf %944, %943 : vector<8x32xf32>
    %946 = arith.divf %944, %945 : vector<8x32xf32>
    %947 = arith.mulf %938, %882 : vector<8x32xf32>
    %948 = arith.mulf %932, %940 : vector<8x32xf32>
    %949 = arith.addf %947, %948 : vector<8x32xf32>
    %950 = math.tanh %949 : vector<8x32xf32>
    %951 = arith.mulf %946, %950 : vector<8x32xf32>
    %c8_i32_264 = arith.constant 8 : i32
    %952 = arith.muli %c5_i32_250, %c8_i32_264 : i32
    %953 = arith.index_cast %952 : i32 to index
    %c0_265 = arith.constant 0 : index
    %954 = vector.load %arg13[%953, %c0_265] : memref<64x64xf32, #tpu.memory_space<vmem>>, vector<8x32xf32>
    tpu.vector_store %arg13[%953, %c0_265], %926 {strides = array<i32>} : memref<64x64xf32, #tpu.memory_space<vmem>>, vector<8x32xf32>,
    %c8_i32_266 = arith.constant 8 : i32
    %955 = arith.muli %891, %c8_i32_266 : i32
    %956 = arith.index_cast %955 : i32 to index
    %c32_267 = arith.constant 32 : index
    %957 = vector.load %arg13[%956, %c32_267] : memref<64x64xf32, #tpu.memory_space<vmem>>, vector<8x32xf32>
    tpu.vector_store %arg13[%956, %c32_267], %951 {strides = array<i32>} : memref<64x64xf32, #tpu.memory_space<vmem>>, vector<8x32xf32>,
    %c6_i32_268 = arith.constant 6 : i32
    %c7_i32_269 = arith.constant 7 : i32
    %958 = arith.subi %c7_i32_269, %c6_i32_268 : i32
    %c8_i32_270 = arith.constant 8 : i32
    %959 = arith.muli %c6_i32_268, %c8_i32_270 : i32
    %960 = arith.index_cast %959 : i32 to index
    %c0_271 = arith.constant 0 : index
    %961 = vector.load %arg12[%960, %c0_271] : memref<64x256xf32, #tpu.memory_space<vmem>>, vector<8x128xf32>
    %c8_i32_272 = arith.constant 8 : i32
    %962 = arith.muli %958, %c8_i32_272 : i32
    %963 = arith.index_cast %962 : i32 to index
    %c128_273 = arith.constant 128 : index
    %964 = vector.load %arg12[%963, %c128_273] : memref<64x256xf32, #tpu.memory_space<vmem>>, vector<8x128xf32>
    %cst_274 = arith.constant dense<0.000000e+00> : vector<8x128xf32>
    %965 = tpu.matmul %926, %553, %cst_274 {dimension_numbers = #tpu.dot_dimension_numbers<[1], [0], [0], [1], [0, 0, 1, 1], [], []>} : vector<8x32xf32>, vector<32x128xf32>, vector<8x128xf32> -> vector<8x128xf32>
    %966 = arith.addf %961, %965 : vector<8x128xf32>
    %cst_275 = arith.constant dense<0.000000e+00> : vector<8x128xf32>
    %967 = tpu.matmul %951, %554, %cst_275 {dimension_numbers = #tpu.dot_dimension_numbers<[1], [0], [0], [1], [0, 0, 1, 1], [], []>} : vector<8x32xf32>, vector<32x128xf32>, vector<8x128xf32> -> vector<8x128xf32>
    %968 = arith.addf %964, %967 : vector<8x128xf32>
    %969 = vector.extract_strided_slice %966 {offsets = [0, 0], sizes = [8, 32], strides = [1, 1]} : vector<8x128xf32> to vector<8x32xf32>
    %970 = arith.negf %969 : vector<8x32xf32>
    %971 = math.exp %970 : vector<8x32xf32>
    %cst_276 = arith.constant 1.000000e+00 : f32
    %972 = vector.broadcast %cst_276 : f32 to vector<8x32xf32>
    %973 = arith.addf %972, %971 : vector<8x32xf32>
    %974 = arith.divf %972, %973 : vector<8x32xf32>
    %975 = vector.extract_strided_slice %966 {offsets = [0, 32], sizes = [8, 32], strides = [1, 1]} : vector<8x128xf32> to vector<8x32xf32>
    %976 = arith.negf %975 : vector<8x32xf32>
    %977 = math.exp %976 : vector<8x32xf32>
    %cst_277 = arith.constant 1.000000e+00 : f32
    %978 = vector.broadcast %cst_277 : f32 to vector<8x32xf32>
    %979 = arith.addf %978, %977 : vector<8x32xf32>
    %980 = arith.divf %978, %979 : vector<8x32xf32>
    %981 = vector.extract_strided_slice %966 {offsets = [0, 64], sizes = [8, 32], strides = [1, 1]} : vector<8x128xf32> to vector<8x32xf32>
    %982 = math.tanh %981 : vector<8x32xf32>
    %983 = vector.extract_strided_slice %966 {offsets = [0, 96], sizes = [8, 32], strides = [1, 1]} : vector<8x128xf32> to vector<8x32xf32>
    %984 = arith.negf %983 : vector<8x32xf32>
    %985 = math.exp %984 : vector<8x32xf32>
    %cst_278 = arith.constant 1.000000e+00 : f32
    %986 = vector.broadcast %cst_278 : f32 to vector<8x32xf32>
    %987 = arith.addf %986, %985 : vector<8x32xf32>
    %988 = arith.divf %986, %987 : vector<8x32xf32>
    %989 = arith.mulf %980, %924 : vector<8x32xf32>
    %990 = arith.mulf %974, %982 : vector<8x32xf32>
    %991 = arith.addf %989, %990 : vector<8x32xf32>
    %992 = math.tanh %991 : vector<8x32xf32>
    %993 = arith.mulf %988, %992 : vector<8x32xf32>
    %994 = vector.extract_strided_slice %968 {offsets = [0, 0], sizes = [8, 32], strides = [1, 1]} : vector<8x128xf32> to vector<8x32xf32>
    %995 = arith.negf %994 : vector<8x32xf32>
    %996 = math.exp %995 : vector<8x32xf32>
    %cst_279 = arith.constant 1.000000e+00 : f32
    %997 = vector.broadcast %cst_279 : f32 to vector<8x32xf32>
    %998 = arith.addf %997, %996 : vector<8x32xf32>
    %999 = arith.divf %997, %998 : vector<8x32xf32>
    %1000 = vector.extract_strided_slice %968 {offsets = [0, 32], sizes = [8, 32], strides = [1, 1]} : vector<8x128xf32> to vector<8x32xf32>
    %1001 = arith.negf %1000 : vector<8x32xf32>
    %1002 = math.exp %1001 : vector<8x32xf32>
    %cst_280 = arith.constant 1.000000e+00 : f32
    %1003 = vector.broadcast %cst_280 : f32 to vector<8x32xf32>
    %1004 = arith.addf %1003, %1002 : vector<8x32xf32>
    %1005 = arith.divf %1003, %1004 : vector<8x32xf32>
    %1006 = vector.extract_strided_slice %968 {offsets = [0, 64], sizes = [8, 32], strides = [1, 1]} : vector<8x128xf32> to vector<8x32xf32>
    %1007 = math.tanh %1006 : vector<8x32xf32>
    %1008 = vector.extract_strided_slice %968 {offsets = [0, 96], sizes = [8, 32], strides = [1, 1]} : vector<8x128xf32> to vector<8x32xf32>
    %1009 = arith.negf %1008 : vector<8x32xf32>
    %1010 = math.exp %1009 : vector<8x32xf32>
    %cst_281 = arith.constant 1.000000e+00 : f32
    %1011 = vector.broadcast %cst_281 : f32 to vector<8x32xf32>
    %1012 = arith.addf %1011, %1010 : vector<8x32xf32>
    %1013 = arith.divf %1011, %1012 : vector<8x32xf32>
    %1014 = arith.mulf %1005, %949 : vector<8x32xf32>
    %1015 = arith.mulf %999, %1007 : vector<8x32xf32>
    %1016 = arith.addf %1014, %1015 : vector<8x32xf32>
    %1017 = math.tanh %1016 : vector<8x32xf32>
    %1018 = arith.mulf %1013, %1017 : vector<8x32xf32>
    %c8_i32_282 = arith.constant 8 : i32
    %1019 = arith.muli %c6_i32_268, %c8_i32_282 : i32
    %1020 = arith.index_cast %1019 : i32 to index
    %c0_283 = arith.constant 0 : index
    %1021 = vector.load %arg13[%1020, %c0_283] : memref<64x64xf32, #tpu.memory_space<vmem>>, vector<8x32xf32>
    tpu.vector_store %arg13[%1020, %c0_283], %993 {strides = array<i32>} : memref<64x64xf32, #tpu.memory_space<vmem>>, vector<8x32xf32>,
    %c8_i32_284 = arith.constant 8 : i32
    %1022 = arith.muli %958, %c8_i32_284 : i32
    %1023 = arith.index_cast %1022 : i32 to index
    %c32_285 = arith.constant 32 : index
    %1024 = vector.load %arg13[%1023, %c32_285] : memref<64x64xf32, #tpu.memory_space<vmem>>, vector<8x32xf32>
    tpu.vector_store %arg13[%1023, %c32_285], %1018 {strides = array<i32>} : memref<64x64xf32, #tpu.memory_space<vmem>>, vector<8x32xf32>,
    %c7_i32_286 = arith.constant 7 : i32
    %c7_i32_287 = arith.constant 7 : i32
    %1025 = arith.subi %c7_i32_287, %c7_i32_286 : i32
    %c8_i32_288 = arith.constant 8 : i32
    %1026 = arith.muli %c7_i32_286, %c8_i32_288 : i32
    %1027 = arith.index_cast %1026 : i32 to index
    %c0_289 = arith.constant 0 : index
    %1028 = vector.load %arg12[%1027, %c0_289] : memref<64x256xf32, #tpu.memory_space<vmem>>, vector<8x128xf32>
    %c8_i32_290 = arith.constant 8 : i32
    %1029 = arith.muli %1025, %c8_i32_290 : i32
    %1030 = arith.index_cast %1029 : i32 to index
    %c128_291 = arith.constant 128 : index
    %1031 = vector.load %arg12[%1030, %c128_291] : memref<64x256xf32, #tpu.memory_space<vmem>>, vector<8x128xf32>
    %cst_292 = arith.constant dense<0.000000e+00> : vector<8x128xf32>
    %1032 = tpu.matmul %993, %553, %cst_292 {dimension_numbers = #tpu.dot_dimension_numbers<[1], [0], [0], [1], [0, 0, 1, 1], [], []>} : vector<8x32xf32>, vector<32x128xf32>, vector<8x128xf32> -> vector<8x128xf32>
    %1033 = arith.addf %1028, %1032 : vector<8x128xf32>
    %cst_293 = arith.constant dense<0.000000e+00> : vector<8x128xf32>
    %1034 = tpu.matmul %1018, %554, %cst_293 {dimension_numbers = #tpu.dot_dimension_numbers<[1], [0], [0], [1], [0, 0, 1, 1], [], []>} : vector<8x32xf32>, vector<32x128xf32>, vector<8x128xf32> -> vector<8x128xf32>
    %1035 = arith.addf %1031, %1034 : vector<8x128xf32>
    %1036 = vector.extract_strided_slice %1033 {offsets = [0, 0], sizes = [8, 32], strides = [1, 1]} : vector<8x128xf32> to vector<8x32xf32>
    %1037 = arith.negf %1036 : vector<8x32xf32>
    %1038 = math.exp %1037 : vector<8x32xf32>
    %cst_294 = arith.constant 1.000000e+00 : f32
    %1039 = vector.broadcast %cst_294 : f32 to vector<8x32xf32>
    %1040 = arith.addf %1039, %1038 : vector<8x32xf32>
    %1041 = arith.divf %1039, %1040 : vector<8x32xf32>
    %1042 = vector.extract_strided_slice %1033 {offsets = [0, 32], sizes = [8, 32], strides = [1, 1]} : vector<8x128xf32> to vector<8x32xf32>
    %1043 = arith.negf %1042 : vector<8x32xf32>
    %1044 = math.exp %1043 : vector<8x32xf32>
    %cst_295 = arith.constant 1.000000e+00 : f32
    %1045 = vector.broadcast %cst_295 : f32 to vector<8x32xf32>
    %1046 = arith.addf %1045, %1044 : vector<8x32xf32>
    %1047 = arith.divf %1045, %1046 : vector<8x32xf32>
    %1048 = vector.extract_strided_slice %1033 {offsets = [0, 64], sizes = [8, 32], strides = [1, 1]} : vector<8x128xf32> to vector<8x32xf32>
    %1049 = math.tanh %1048 : vector<8x32xf32>
    %1050 = vector.extract_strided_slice %1033 {offsets = [0, 96], sizes = [8, 32], strides = [1, 1]} : vector<8x128xf32> to vector<8x32xf32>
    %1051 = arith.negf %1050 : vector<8x32xf32>
    %1052 = math.exp %1051 : vector<8x32xf32>
    %cst_296 = arith.constant 1.000000e+00 : f32
    %1053 = vector.broadcast %cst_296 : f32 to vector<8x32xf32>
    %1054 = arith.addf %1053, %1052 : vector<8x32xf32>
    %1055 = arith.divf %1053, %1054 : vector<8x32xf32>
    %1056 = arith.mulf %1047, %991 : vector<8x32xf32>
    %1057 = arith.mulf %1041, %1049 : vector<8x32xf32>
    %1058 = arith.addf %1056, %1057 : vector<8x32xf32>
    %1059 = math.tanh %1058 : vector<8x32xf32>
    %1060 = arith.mulf %1055, %1059 : vector<8x32xf32>
    %1061 = vector.extract_strided_slice %1035 {offsets = [0, 0], sizes = [8, 32], strides = [1, 1]} : vector<8x128xf32> to vector<8x32xf32>
    %1062 = arith.negf %1061 : vector<8x32xf32>
    %1063 = math.exp %1062 : vector<8x32xf32>
    %cst_297 = arith.constant 1.000000e+00 : f32
    %1064 = vector.broadcast %cst_297 : f32 to vector<8x32xf32>
    %1065 = arith.addf %1064, %1063 : vector<8x32xf32>
    %1066 = arith.divf %1064, %1065 : vector<8x32xf32>
    %1067 = vector.extract_strided_slice %1035 {offsets = [0, 32], sizes = [8, 32], strides = [1, 1]} : vector<8x128xf32> to vector<8x32xf32>
    %1068 = arith.negf %1067 : vector<8x32xf32>
    %1069 = math.exp %1068 : vector<8x32xf32>
    %cst_298 = arith.constant 1.000000e+00 : f32
    %1070 = vector.broadcast %cst_298 : f32 to vector<8x32xf32>
    %1071 = arith.addf %1070, %1069 : vector<8x32xf32>
    %1072 = arith.divf %1070, %1071 : vector<8x32xf32>
    %1073 = vector.extract_strided_slice %1035 {offsets = [0, 64], sizes = [8, 32], strides = [1, 1]} : vector<8x128xf32> to vector<8x32xf32>
    %1074 = math.tanh %1073 : vector<8x32xf32>
    %1075 = vector.extract_strided_slice %1035 {offsets = [0, 96], sizes = [8, 32], strides = [1, 1]} : vector<8x128xf32> to vector<8x32xf32>
    %1076 = arith.negf %1075 : vector<8x32xf32>
    %1077 = math.exp %1076 : vector<8x32xf32>
    %cst_299 = arith.constant 1.000000e+00 : f32
    %1078 = vector.broadcast %cst_299 : f32 to vector<8x32xf32>
    %1079 = arith.addf %1078, %1077 : vector<8x32xf32>
    %1080 = arith.divf %1078, %1079 : vector<8x32xf32>
    %1081 = arith.mulf %1072, %1016 : vector<8x32xf32>
    %1082 = arith.mulf %1066, %1074 : vector<8x32xf32>
    %1083 = arith.addf %1081, %1082 : vector<8x32xf32>
    %1084 = math.tanh %1083 : vector<8x32xf32>
    %1085 = arith.mulf %1080, %1084 : vector<8x32xf32>
    %c8_i32_300 = arith.constant 8 : i32
    %1086 = arith.muli %c7_i32_286, %c8_i32_300 : i32
    %1087 = arith.index_cast %1086 : i32 to index
    %c0_301 = arith.constant 0 : index
    %1088 = vector.load %arg13[%1087, %c0_301] : memref<64x64xf32, #tpu.memory_space<vmem>>, vector<8x32xf32>
    tpu.vector_store %arg13[%1087, %c0_301], %1060 {strides = array<i32>} : memref<64x64xf32, #tpu.memory_space<vmem>>, vector<8x32xf32>,
    %c8_i32_302 = arith.constant 8 : i32
    %1089 = arith.muli %1025, %c8_i32_302 : i32
    %1090 = arith.index_cast %1089 : i32 to index
    %c32_303 = arith.constant 32 : index
    %1091 = vector.load %arg13[%1090, %c32_303] : memref<64x64xf32, #tpu.memory_space<vmem>>, vector<8x32xf32>
    tpu.vector_store %arg13[%1090, %c32_303], %1085 {strides = array<i32>} : memref<64x64xf32, #tpu.memory_space<vmem>>, vector<8x32xf32>,
    %c8_i32_304 = arith.constant 8 : i32
    %c0_305 = arith.constant 0 : index
    %c0_306 = arith.constant 0 : index
    %1092 = vector.load %arg13[%c0_305, %c0_306] : memref<64x64xf32, #tpu.memory_space<vmem>>, vector<64x64xf32>
    %c0_307 = arith.constant 0 : index
    %c0_308 = arith.constant 0 : index
    %1093 = vector.load %arg9[%c0_307, %c0_308] : memref<64x5xf32, #tpu.memory_space<vmem>>, vector<64x5xf32>
    %cst_309 = arith.constant dense<0.000000e+00> : vector<64x5xf32>
    %1094 = tpu.matmul %1092, %1093, %cst_309 {dimension_numbers = #tpu.dot_dimension_numbers<[1], [0], [0], [1], [0, 0, 1, 1], [], []>} : vector<64x64xf32>, vector<64x5xf32>, vector<64x5xf32> -> vector<64x5xf32>
    %c0_310 = arith.constant 0 : index
    %c0_311 = arith.constant 0 : index
    %1095 = vector.load %arg10[%c0_310, %c0_311] : memref<1x5xf32, #tpu.memory_space<vmem>>, vector<1x5xf32>
    %1096 = vector.broadcast %1095 : vector<1x5xf32> to vector<64x5xf32>
    %1097 = arith.addf %1094, %1096 : vector<64x5xf32>
    %1098 = arith.negf %1097 : vector<64x5xf32>
    %1099 = math.exp %1098 : vector<64x5xf32>
    %cst_312 = arith.constant 1.000000e+00 : f32
    %1100 = vector.broadcast %cst_312 : f32 to vector<64x5xf32>
    %1101 = arith.addf %1100, %1099 : vector<64x5xf32>
    %1102 = arith.divf %1100, %1101 : vector<64x5xf32>
    %c0_313 = arith.constant 0 : index
    %c0_314 = arith.constant 0 : index
    %1103 = vector.load %arg11[%c0_313, %c0_314] : memref<64x5xf32, #tpu.memory_space<vmem>>, vector<64x5xf32>
    tpu.vector_store %arg11[%c0_313, %c0_314], %1102 {strides = array<i32>} : memref<64x5xf32, #tpu.memory_space<vmem>>, vector<64x5xf32>,
    return
  }
}

</mosaic_0001>

<bundles_post_ra>
// kernel: model_forward.1
= control target key start
LH: loop header
LB: loop body
LE: loop exit
PB: predicated region body
PF: predicated region fallthrough
CT: control target
= control target key end

     0   :  { %v5126_v3 = vmov 0.0   ;;  %v5127_v4 = vmov 0.0|0.0   ;;  %vm5128_vm0 = vmmov 0   ;;  %vm62_vm1 = vcmask 130048   ;;  %s5130_s16 = smov 32   ;;  %s6025_s1 = inlined_call_operand.vmem [shape: f32[16,256], index: 1, kind: input, shape index: {}]   ;;  %s6026_s3 = inlined_call_operand.vmem [shape: f32[32,128], index: 3, kind: input, shape index: {}]   ;;  %s6027_s0 = inlined_call_operand.vmem [shape: f32[64,16], index: 0, kind: input, shape index: {}]   ;;  %s6028_s4 = inlined_call_operand.vmem [shape: f32[32,128], index: 4, kind: input, shape index: {}]   ;;  %s6029_s2 = inlined_call_operand.vmem [shape: f32[1,256], index: 2, kind: input, shape index: {}]   ;;  %s6030_s5 = inlined_call_operand.vmem [shape: f32[64,256], index: 5, kind: input, shape index: {}]   ;;  %s6031_s7 = inlined_call_operand.vmem [shape: f32[32,128], index: 7, kind: input, shape index: {}]   ;;  %s6032_s8 = inlined_call_operand.vmem [shape: f32[32,128], index: 8, kind: input, shape index: {}]   ;;  %s6033_s6 = inlined_call_operand.vmem [shape: f32[1,256], index: 6, kind: input, shape index: {}]   ;;  %s6034_s9 = inlined_call_operand.vmem [shape: f32[64,5], index: 9, kind: input, shape index: {}]   ;;  %s6035_s10 = inlined_call_operand.vmem [shape: f32[1,5], index: 10, kind: input, shape index: {}]   ;;  %s6036_s11 = inlined_call_operand.vmem [shape: f32[64,5], index: 11, kind: output, shape index: {}]  }
   0x1   :  { %v47_v0 = vld [vmem:[%s6025_s1 + $0x8] sm:$0xff]  ;;  %v49_v1 = vld [vmem:[%s6025_s1 + $0x18] sm:$0xff]  ;;  %v46_v2 = vld [vmem:[%s6025_s1] sm:$0xff]  ;;  %151 = vmatprep.mubr.f32.mxu0 %v5126_v3  ;;  %4615 = vmatprep.subr.bf16.mxu1 %v5127_v4  ;;  %v52_v28 = vlaneseq  ;;  %vm226_vm2 = vcmask 261120   ;;  %vm429_vm3 = vcmask 523520   ;;  %vm1923_vm4 = vcmask 523264  }
   0x2   :  { %v4605_v5 = vpack.c.bf16 %v49_v1, %v47_v0  ;;  %v48_v6 = vld [vmem:[%s6025_s1 + $0x10] sm:$0xff]  ;;  %v216_v7 = vld [vmem:[%s6026_s3] sm:$0xff]  ;;  %4244 = vmatprep.mubr.msk.f32.mxu1 %vm5128_vm0, %v5126_v3  ;;  %v217_v9 = vld [vmem:[%s6026_s3 + $0x8] sm:$0xff]  ;;  %vm3943_vm5 = vcmask 39936  }
   0x3   :  { %v4607_v8 = vpack.c.bf16 %v48_v6, %v46_v2  ;;  %v38_v10 = vld [vmem:[%s6027_s0] sm:$0xff]  ;;  %v5216_v11 = vpack.c.bf16 %v217_v9, %v216_v7  ;;  %v218_v12 = vld [vmem:[%s6026_s3 + $0x10] sm:$0xff]  ;;  %v219_v13 = vld [vmem:[%s6026_s3 + $0x18] sm:$0xff]  ;;  %v5303_v29 = vshrl.u32 %v52_v28, 7 }
   0x4   :  { %4606 = vmatprep.subr.bf16.mxu0 %v4605_v5  ;;  %v220_v14 = vld [vmem:[%s6028_s4] sm:$0xff]  ;;  %v221_v15 = vld [vmem:[%s6028_s4 + $0x8] sm:$0xff]  ;;  %v222_v17 = vld [vmem:[%s6028_s4 + $0x10] sm:$0xff]  ;;  %v5245_v20 = vpack.c.bf16 %v219_v13, %v218_v12 }
   0x5   :  { %4608 = vmatpush1.bf16.msra.mxu0 %v4607_v8  ;;  %v5231_v16 = vpack.c.bf16 %v221_v15, %v220_v14  ;;  %v223_v18 = vld [vmem:[%s6028_s4 + $0x18] sm:$0xff]  ;;  %v39_v19 = vld [vmem:[%s6027_s0 + $0x8] sm:$0xff]  ;;  %v40_v22 = vld [vmem:[%s6027_s0 + $0x10] sm:$0xff]  ;;  %v58_v30 = vsub.s32 1, %v5303_v29  ;;  %v54_v33 = vsub.s32 0, %v5303_v29 }
   0x6   :  { %4609 = vmatprep.subr.bf16.mxu0 %v5127_v4  ;;  %v5249_v21 = vpack.c.bf16 %v223_v18, %v222_v17  ;;  %v41_v23 = vld [vmem:[%s6027_s0 + $0x18] sm:$0xff]  ;;  %v42_v24 = vld [vmem:[%s6027_s0 + $0x20] sm:$0xff]  ;;  %v43_v25 = vld [vmem:[%s6027_s0 + $0x28] sm:$0xff] }
   0x7   :  { %4617 = vmatpush3.bf16.msra.mxu1 %v5231_v16  ;;  %v44_v26 = vld [vmem:[%s6027_s0 + $0x30] sm:$0xff]  ;;  %v45_v27 = vld [vmem:[%s6027_s0 + $0x38] sm:$0xff]  ;;  %v50_v31 = vld [vmem:[%s6029_s2] sm:$0x3]  ;;  %s5129_s2 = smov 64  }
   0x8   :  { %3956 = vmatmul.mubr.msk.f32.vlgmr.msra.gmra.mrb[0].mxu0 %vm62_vm1, %v38_v10  ;;  %4618 = vmatprep.subr.bf16.mxu1 %v5127_v4  ;;  %v59_v32 = vrot.slane %v50_v31, %v58_v30  ;;  %v55_v37 = vrot.slane %v50_v31, %v54_v33 }
   0x9   :  { %4611 = vmatpush3.bf16.msra.mxu0 %v5216_v11  ;;  %157 = vmatprep.mubr.f32.mxu0 %v5126_v3 }
   0xa   :  { %4612 = vmatprep.subr.bf16.mxu0 %v5127_v4 }
   0xb   :  { %4620 = vmatpush3.bf16.msra.mxu1 %v5249_v21 }
   0xc   :  { %3957 = vmatmul.mubr.msk.f32.gmra.mrb[2].mxu0 %vm62_vm1, %v39_v19  ;;  %4621 = vmatprep.subr.bf16.mxu1 %v5127_v4 }
   0xd   :  { %163 = vmatprep.mubr.f32.mxu0 %v5126_v3  ;;  %4614 = vmatpush3.bf16.msra.mxu0 %v5245_v20 }
   0xe   :  { %4633 = vmatprep.subr.bf16.mxu0 %v5127_v4  ;;  %4245 = vmatmul.mubr.f32.vlgmr.msra.gmra.mrb[0].mxu1 %v5126_v3 }
   0xf   :  { %4623 = vmatpush3.bf16.msra.mxu1 %v5216_v11  ;;  %4255 = vmatprep.mubr.msk.f32.mxu1 %vm5128_vm0, %v5126_v3 }
  0x10   :  { %3958 = vmatmul.mubr.msk.f32.gmra.mrb[4].mxu0 %vm62_vm1, %v40_v22  ;;  %4624 = vmatprep.subr.bf16.mxu1 %v5127_v4 }
  0x11   :  { %169 = vmatprep.mubr.f32.mxu0 %v5126_v3 }
  0x13   :  { %4626 = vmatpush3.bf16.msra.mxu1 %v5245_v20 }
  0x14   :  { %3959 = vmatmul.mubr.msk.f32.gmra.mrb[6].mxu0 %vm62_vm1, %v41_v23  ;;  %4627 = vmatprep.subr.bf16.mxu1 %v5127_v4 }
  0x15   :  { %175 = vmatprep.mubr.f32.mxu0 %v5126_v3 }
  0x18   :  { %3960 = vmatmul.mubr.msk.f32.gmra.mrb[8].mxu0 %vm62_vm1, %v42_v24 }
  0x19   :  { %181 = vmatprep.mubr.f32.mxu0 %v5126_v3 }
  0x1c   :  { %3961 = vmatmul.mubr.msk.f32.gmra.mrb[10].mxu0 %vm62_vm1, %v43_v25 }
  0x1d   :  { %187 = vmatprep.mubr.f32.mxu0 %v5126_v3 }
  0x20   :  { %3962 = vmatmul.mubr.msk.f32.gmra.mrb[12].mxu0 %vm62_vm1, %v44_v26 }
  0x21   :  { %193 = vmatprep.mubr.f32.mxu0 %v5126_v3 }
  0x24   :  { %3963 = vmatmul.mubr.msk.f32.gmra.mrb[14].mxu0 %vm62_vm1, %v45_v27 }
  0x25   :  { %4233 = vmatprep.mubr.msk.f32.mxu0 %vm5128_vm0, %v5126_v3 }
  0x28   :  { %4234 = vmatmul.mubr.f32.vlgmr.msra.gmra.mrb[16].mxu0 %v5126_v3 }
  0x29   :  { %4635 = vmatpush3.bf16.msra.mxu0 %v5216_v11  ;;  %4277 = vmatprep.mubr.msk.f32.mxu0 %vm5128_vm0, %v5126_v3 }
  0x2a   :  { %4636 = vmatprep.subr.bf16.mxu0 %v5127_v4 }
  0x2d   :  { %4638 = vmatpush3.bf16.msra.mxu0 %v5245_v20 }
  0x2e   :  { %4645 = vmatprep.subr.bf16.mxu0 %v5127_v4 }
  0xdb   :  { %v153_v34 = vpop.f32.mrb[0].mxu0 }
  0xdc   :  { %v155_v35 = vpop.f32.mrb[1].mxu0  ;;  %v154_v6 = vadd.f32 %v153_v34, %v55_v37 }
  0xdd   :  { %v5312_v36 = vadd.f32 %v155_v35, %v59_v32 }
  0xdf   :  { %v159_v38 = vpop.f32.mrb[2].mxu0 }
  0xe0   :  { %v5316_v39 = vadd.f32 %v159_v38, %v55_v37  ;;  %v161_v40 = vpop.f32.mrb[3].mxu0 }
  0xe1   :  { %v5318_v41 = vadd.f32 %v161_v40, %v59_v32  ;;  %v367_v45 = vpop.f32.mrb[0].mxu1 }
  0xe2   :  { %v4246_v47 = vpop.f32.mrb[1].mxu1 }
  0xe3   :  { %v165_v42 = vpop.f32.mrb[4].mxu0 }
  0xe4   :  { %v5320_v43 = vadd.f32 %v165_v42, %v55_v37  ;;  %v167_v44 = vpop.f32.mrb[5].mxu0 }
  0xe5   :  { %v5322_v46 = vadd.f32 %v167_v44, %v59_v32 }
  0xe7   :  { %v171_v48 = vpop.f32.mrb[6].mxu0 }
  0xe8   :  { %v5324_v49 = vadd.f32 %v171_v48, %v55_v37  ;;  %v173_v50 = vpop.f32.mrb[7].mxu0 }
  0xe9   :  { %v5326_v51 = vadd.f32 %v173_v50, %v59_v32 }
  0xeb   :  { %v177_v52 = vpop.f32.mrb[8].mxu0 }
  0xec   :  { %v5328_v53 = vadd.f32 %v177_v52, %v55_v37  ;;  %v179_v54 = vpop.f32.mrb[9].mxu0 }
  0xed   :  { %v5330_v55 = vadd.f32 %v179_v54, %v59_v32 }
  0xef   :  { %v183_v56 = vpop.f32.mrb[10].mxu0 }
  0xf0   :  { %v5332_v57 = vadd.f32 %v183_v56, %v55_v37  ;;  %v185_v58 = vpop.f32.mrb[11].mxu0 }
  0xf1   :  { %v5334_v59 = vadd.f32 %v185_v58, %v59_v32 }
  0xf3   :  { %v189_v60 = vpop.f32.mrb[12].mxu0 }
  0xf4   :  { %v5336_v61 = vadd.f32 %v189_v60, %v55_v37  ;;  %v191_v62 = vpop.f32.mrb[13].mxu0 }
  0xf5   :  { %v5338_v63 = vadd.f32 %v191_v62, %v59_v32 }
  0xf7   :  { %v195_v0 = vpop.f32.mrb[14].mxu0 }
  0xf8   :  { %v5340_v1 = vadd.f32 %v195_v0, %v55_v37  ;;  %v197_v2 = vpop.f32.mrb[15].mxu0 }
  0xf9   :  { %v198_v5 = vadd.f32 %v197_v2, %v59_v32 }
  0xfb   :  { %v371_v7 = vadd.f32 %v367_v45, %v198_v5  ;;  %v296_v8 = vpop.f32.mrb[16].mxu0 }
  0xfc   :  { %v300_v9 = vadd.f32 %v296_v8, %v154_v6  ;;  %v4235_v10 = vpop.f32.mrb[17].mxu0 }
  0xfd   :  { %v3965_v15 = vmul.f32 -1.442695, %v371_v7 }
  0xfe   :  { %4838 = vtanh.f32 %v300_v9  ;;  %v3964_v14 = vmul.f32 -1.442695, %v300_v9 }
  0xff   :  { %4840 = vtanh.f32 %v371_v7 }
 0x100   :  { %4842 = vpow2.f32 %v3964_v14 }
 0x101   :  { %4844 = vpow2.f32 %v3965_v15 }
 0x108   :  { %v4839_v12 = vpop.eup %4838 }
 0x109   :  { %381 = vrot.lane.b32.xlu0 %v4839_v12, %s5129_s2  ;;  %v4841_v13 = vpop.eup %4840 }
 0x10a   :  { %v4843_v17 = vpop.eup %4842 }
 0x10b   :  { %v375_v18 = vadd.f32 1.0, %v4843_v17  ;;  %v4845_v19 = vpop.eup %4844 }
 0x10c   :  { %v399_v22 = vadd.f32 1.0, %v4845_v19 }
 0x10d   :  { %405 = vrot.lane.b32.xlu0 %v4841_v13, %s5129_s2  ;;  %4846 = vrcp.f32 %v375_v18 }
 0x10e   :  { %4848 = vrcp.f32 %v399_v22 }
 0x117   :  { %v4847_v23 = vpop.eup %4846 }
 0x118   :  { %v4849_v26 = vpop.eup %4848  ;;  %v379_v31 = vmul.f32 0.0, %v4847_v23 }
 0x119   :  { %v403_v35 = vmul.f32 0.0, %v4849_v26 }
 0x17b   :  { %v382_v24 = vpop.permute.xlu0 %381 }
 0x17c   :  { %v384_v25 = vmul.f32 %v4847_v23, %v382_v24 }
 0x17e   :  { %386 = vrot.lane.b32.xlu1 %v384_v25, %s5130_s16 }
 0x17f   :  { %v406_v27 = vpop.permute.xlu0 %405 }
 0x180   :  { %v408_v28 = vmul.f32 %v4849_v26, %v406_v27 }
 0x182   :  { %410 = vrot.lane.b32.xlu1 %v408_v28, %s5130_s16 }
 0x1f0   :  { %v387_v32 = vpop.permute.xlu1 %386 }
 0x1f1   :  { %v389_v34 = vadd.f32 %v387_v32, %v379_v31 }
 0x1f3   :  { %4850 = vtanh.f32 %v389_v34 }
 0x1f4   :  { %v411_v37 = vpop.permute.xlu1 %410 }
 0x1f5   :  { %v413_v38 = vadd.f32 %v411_v37, %v403_v35 }
 0x1f7   :  { %4852 = vtanh.f32 %v413_v38 }
 0x1fd   :  { %v4851_v40 = vpop.eup %4850 }
 0x1fe   :  { %392 = vrot.lane.b32.xlu0 %v4851_v40, %s5129_s2 }
 0x201   :  { %v4853_v42 = vpop.eup %4852 }
 0x202   :  { %416 = vrot.lane.b32.xlu1 %v4853_v42, %s5129_s2 }
 0x270   :  { %v393_v44 = vpop.permute.xlu0 %392 }
 0x271   :  { %v395_v45 = vmul.f32 %v4847_v23, %v393_v44 }
 0x273   :  { %421 = vrot.lane.b32.xlu0 %v395_v45, %s5130_s16 }
 0x274   :  { %v417_v47 = vpop.permute.xlu1 %416 }
 0x275   :  { %v5349_v48 = vmul.f32 %v4849_v26, %v417_v47 }
 0x277   :  { %506 = vrot.lane.b32.xlu1 %v5349_v48, %s5130_s16 }
 0x2e5   :  { %v422_v50 = vpop.permute.xlu0 %421 }
 0x2e6   :  { %424 = vst.msk [vmem:[#allocation3] sm:$0xff] %vm226_vm2, %v422_v50  ;;  %4256 = vmatmul.mubr.msk.f32.vlgmr.msra.gmra.mrb[2].mxu1 %vm226_vm2, %v422_v50 }
 0x2e7   :  { %4629 = vmatpush3.bf16.msra.mxu1 %v5231_v16  ;;  %4266 = vmatprep.mubr.msk.f32.mxu1 %vm5128_vm0, %v5126_v3 }
 0x2e8   :  { %4630 = vmatprep.subr.bf16.mxu1 %v5127_v4 }
 0x2e9   :  { %v507_v52 = vpop.permute.xlu1 %506 }
 0x2eb   :  { %4632 = vmatpush3.bf16.msra.mxu1 %v5249_v21 }
 0x2ec   :  { %4639 = vmatprep.subr.bf16.mxu1 %v5127_v4 }
 0x2ee   :  { %4267 = vmatmul.mubr.msk.f32.vlgmr.msra.gmra.mrb[4].mxu1 %vm226_vm2, %v507_v52 }
 0x2ef   :  { %4641 = vmatpush3.bf16.msra.mxu1 %v5231_v16  ;;  %4288 = vmatprep.mubr.msk.f32.mxu1 %vm5128_vm0, %v5126_v3 }
 0x2f0   :  { %4642 = vmatprep.subr.bf16.mxu1 %v5127_v4 }
 0x2f3   :  { %4644 = vmatpush3.bf16.msra.mxu1 %v5249_v21 }
 0x2f4   :  { %4651 = vmatprep.subr.bf16.mxu1 %v5127_v4 }
 0x3b9   :  { %v501_v54 = vpop.f32.mrb[2].mxu1 }
 0x3ba   :  { %v505_v56 = vadd.f32 %v501_v54, %v5316_v39  ;;  %v4257_v58 = vpop.f32.mrb[3].mxu1 }
 0x3bc   :  { %4854 = vtanh.f32 %v505_v56  ;;  %v3968_v6 = vmul.f32 -1.442695, %v505_v56 }
 0x3c1   :  { %v576_v60 = vpop.f32.mrb[4].mxu1 }
 0x3c2   :  { %v580_v62 = vadd.f32 %v576_v60, %v5338_v63  ;;  %v4268_v0 = vpop.f32.mrb[5].mxu1 }
 0x3c4   :  { %4856 = vtanh.f32 %v580_v62  ;;  %v3969_v7 = vmul.f32 -1.442695, %v580_v62 }
 0x3c5   :  { %4858 = vpow2.f32 %v3968_v6 }
 0x3c6   :  { %v4855_v2 = vpop.eup %4854  ;;  %4860 = vpow2.f32 %v3969_v7 }
 0x3c7   :  { %590 = vrot.lane.b32.xlu1 %v4855_v2, %s5129_s2 }
 0x3ce   :  { %v4857_v5 = vpop.eup %4856 }
 0x3cf   :  { %614 = vrot.lane.b32.xlu0 %v4857_v5, %s5129_s2  ;;  %v4859_v8 = vpop.eup %4858 }
 0x3d0   :  { %v584_v9 = vadd.f32 1.0, %v4859_v8  ;;  %v4861_v39 = vpop.eup %4860 }
 0x3d1   :  { %v608_v10 = vadd.f32 1.0, %v4861_v39 }
 0x3d2   :  { %4862 = vrcp.f32 %v584_v9 }
 0x3d3   :  { %4864 = vrcp.f32 %v608_v10 }
 0x3dc   :  { %v4863_v12 = vpop.eup %4862 }
 0x3dd   :  { %v4865_v14 = vpop.eup %4864  ;;  %v588_v18 = vmul.f32 %v4863_v12, %v389_v34 }
 0x3de   :  { %v612_v23 = vmul.f32 %v4865_v14, %v413_v38 }
 0x439   :  { %v591_v63 = vpop.permute.xlu1 %590 }
 0x43a   :  { %v593_v13 = vmul.f32 %v4863_v12, %v591_v63 }
 0x43c   :  { %595 = vrot.lane.b32.xlu1 %v593_v13, %s5130_s16 }
 0x441   :  { %v615_v15 = vpop.permute.xlu0 %614 }
 0x442   :  { %v617_v17 = vmul.f32 %v4865_v14, %v615_v15 }
 0x444   :  { %619 = vrot.lane.b32.xlu0 %v617_v17, %s5130_s16 }
 0x4ae   :  { %v596_v19 = vpop.permute.xlu1 %595 }
 0x4af   :  { %v598_v22 = vadd.f32 %v596_v19, %v588_v18 }
 0x4b1   :  { %4866 = vtanh.f32 %v598_v22 }
 0x4b6   :  { %v620_v24 = vpop.permute.xlu0 %619 }
 0x4b7   :  { %v622_v25 = vadd.f32 %v620_v24, %v612_v23 }
 0x4b9   :  { %4868 = vtanh.f32 %v622_v25 }
 0x4bb   :  { %v4867_v26 = vpop.eup %4866 }
 0x4bc   :  { %601 = vrot.lane.b32.xlu1 %v4867_v26, %s5129_s2 }
 0x4c3   :  { %v4869_v27 = vpop.eup %4868 }
 0x4c4   :  { %625 = vrot.lane.b32.xlu0 %v4869_v27, %s5129_s2 }
 0x52e   :  { %v602_v28 = vpop.permute.xlu1 %601 }
 0x52f   :  { %v604_v31 = vmul.f32 %v4863_v12, %v602_v28 }
 0x531   :  { %630 = vrot.lane.b32.xlu1 %v604_v31, %s5130_s16 }
 0x536   :  { %v626_v32 = vpop.permute.xlu0 %625 }
 0x537   :  { %v5377_v35 = vmul.f32 %v4865_v14, %v626_v32 }
 0x539   :  { %714 = vrot.lane.b32.xlu0 %v5377_v35, %s5130_s16 }
 0x5a3   :  { %v631_v34 = vpop.permute.xlu1 %630 }
 0x5a4   :  { %633 = vst.msk [vmem:[#allocation3 + $0x8] sm:$0xff] %vm226_vm2, %v631_v34  ;;  %4278 = vmatmul.mubr.msk.f32.vlgmr.msra.gmra.mrb[18].mxu0 %vm226_vm2, %v631_v34 }
 0x5a5   :  { %4647 = vmatpush3.bf16.msra.mxu0 %v5216_v11  ;;  %4299 = vmatprep.mubr.msk.f32.mxu0 %vm5128_vm0, %v5126_v3 }
 0x5a6   :  { %4648 = vmatprep.subr.bf16.mxu0 %v5127_v4 }
 0x5a9   :  { %4650 = vmatpush3.bf16.msra.mxu0 %v5245_v20 }
 0x5aa   :  { %4657 = vmatprep.subr.bf16.mxu0 %v5127_v4 }
 0x5ab   :  { %v715_v37 = vpop.permute.xlu0 %714 }
 0x5ac   :  { %4289 = vmatmul.mubr.msk.f32.vlgmr.msra.gmra.mrb[6].mxu1 %vm226_vm2, %v715_v37 }
 0x5ad   :  { %4653 = vmatpush3.bf16.msra.mxu1 %v5231_v16  ;;  %4310 = vmatprep.mubr.msk.f32.mxu1 %vm5128_vm0, %v5126_v3 }
 0x5ae   :  { %4654 = vmatprep.subr.bf16.mxu1 %v5127_v4 }
 0x5b1   :  { %4656 = vmatpush3.bf16.msra.mxu1 %v5249_v21 }
 0x5b2   :  { %4663 = vmatprep.subr.bf16.mxu1 %v5127_v4 }
 0x677   :  { %v709_v38 = vpop.f32.mrb[18].mxu0 }
 0x678   :  { %v713_v40 = vadd.f32 %v709_v38, %v5320_v43  ;;  %v4279_v42 = vpop.f32.mrb[19].mxu0 }
 0x67a   :  { %4870 = vtanh.f32 %v713_v40  ;;  %v3972_v54 = vmul.f32 -1.442695, %v713_v40 }
 0x67f   :  { %v784_v44 = vpop.f32.mrb[6].mxu1 }
 0x680   :  { %v788_v45 = vadd.f32 %v784_v44, %v5334_v59  ;;  %v4290_v47 = vpop.f32.mrb[7].mxu1 }
 0x682   :  { %4872 = vtanh.f32 %v788_v45  ;;  %v3973_v56 = vmul.f32 -1.442695, %v788_v45 }
 0x683   :  { %4874 = vpow2.f32 %v3972_v54 }
 0x684   :  { %v4871_v50 = vpop.eup %4870  ;;  %4876 = vpow2.f32 %v3973_v56 }
 0x685   :  { %798 = vrot.lane.b32.xlu1 %v4871_v50, %s5129_s2 }
 0x68c   :  { %v4873_v52 = vpop.eup %4872 }
 0x68d   :  { %822 = vrot.lane.b32.xlu0 %v4873_v52, %s5129_s2  ;;  %v4875_v58 = vpop.eup %4874 }
 0x68e   :  { %v792_v60 = vadd.f32 1.0, %v4875_v58  ;;  %v4877_v43 = vpop.eup %4876 }
 0x68f   :  { %v816_v62 = vadd.f32 1.0, %v4877_v43 }
 0x690   :  { %4878 = vrcp.f32 %v792_v60 }
 0x691   :  { %4880 = vrcp.f32 %v816_v62 }
 0x69a   :  { %v4879_v0 = vpop.eup %4878 }
 0x69b   :  { %v4881_v5 = vpop.eup %4880  ;;  %v796_v8 = vmul.f32 %v4879_v0, %v598_v22 }
 0x69c   :  { %v820_v10 = vmul.f32 %v4881_v5, %v622_v25 }
 0x6f7   :  { %v799_v59 = vpop.permute.xlu1 %798 }
 0x6f8   :  { %v801_v2 = vmul.f32 %v4879_v0, %v799_v59 }
 0x6fa   :  { %803 = vrot.lane.b32.xlu1 %v801_v2, %s5130_s16 }
 0x6ff   :  { %v823_v6 = vpop.permute.xlu0 %822 }
 0x700   :  { %v825_v7 = vmul.f32 %v4881_v5, %v823_v6 }
 0x702   :  { %827 = vrot.lane.b32.xlu0 %v825_v7, %s5130_s16 }
 0x76c   :  { %v804_v9 = vpop.permute.xlu1 %803 }
 0x76d   :  { %v806_v39 = vadd.f32 %v804_v9, %v796_v8 }
 0x76f   :  { %4882 = vtanh.f32 %v806_v39 }
 0x774   :  { %v828_v12 = vpop.permute.xlu0 %827 }
 0x775   :  { %v830_v63 = vadd.f32 %v828_v12, %v820_v10 }
 0x777   :  { %4884 = vtanh.f32 %v830_v63 }
 0x779   :  { %v4883_v13 = vpop.eup %4882 }
 0x77a   :  { %809 = vrot.lane.b32.xlu1 %v4883_v13, %s5129_s2 }
 0x781   :  { %v4885_v14 = vpop.eup %4884 }
 0x782   :  { %833 = vrot.lane.b32.xlu0 %v4885_v14, %s5129_s2 }
 0x7ec   :  { %v810_v15 = vpop.permute.xlu1 %809 }
 0x7ed   :  { %v812_v17 = vmul.f32 %v4879_v0, %v810_v15 }
 0x7ef   :  { %838 = vrot.lane.b32.xlu1 %v812_v17, %s5130_s16 }
 0x7f4   :  { %v834_v18 = vpop.permute.xlu0 %833 }
 0x7f5   :  { %v5405_v19 = vmul.f32 %v4881_v5, %v834_v18 }
 0x7f7   :  { %922 = vrot.lane.b32.xlu0 %v5405_v19, %s5130_s16 }
 0x861   :  { %v839_v22 = vpop.permute.xlu1 %838 }
 0x862   :  { %841 = vst.msk [vmem:[#allocation3 + $0x10] sm:$0xff] %vm226_vm2, %v839_v22  ;;  %4300 = vmatmul.mubr.msk.f32.vlgmr.msra.gmra.mrb[20].mxu0 %vm226_vm2, %v839_v22 }
 0x863   :  { %4659 = vmatpush3.bf16.msra.mxu0 %v5216_v11  ;;  %4321 = vmatprep.mubr.msk.f32.mxu0 %vm5128_vm0, %v5126_v3 }
 0x864   :  { %4660 = vmatprep.subr.bf16.mxu0 %v5127_v4 }
 0x867   :  { %4662 = vmatpush3.bf16.msra.mxu0 %v5245_v20 }
 0x868   :  { %4669 = vmatprep.subr.bf16.mxu0 %v5127_v4 }
 0x869   :  { %v923_v23 = vpop.permute.xlu0 %922 }
 0x86a   :  { %4311 = vmatmul.mubr.msk.f32.vlgmr.msra.gmra.mrb[8].mxu1 %vm226_vm2, %v923_v23 }
 0x86b   :  { %4665 = vmatpush3.bf16.msra.mxu1 %v5231_v16  ;;  %4332 = vmatprep.mubr.msk.f32.mxu1 %vm5128_vm0, %v5126_v3 }
 0x86c   :  { %4666 = vmatprep.subr.bf16.mxu1 %v5127_v4 }
 0x86f   :  { %4668 = vmatpush3.bf16.msra.mxu1 %v5249_v21 }
 0x870   :  { %4675 = vmatprep.subr.bf16.mxu1 %v5127_v4 }
 0x935   :  { %v917_v24 = vpop.f32.mrb[20].mxu0 }
 0x936   :  { %v921_v25 = vadd.f32 %v917_v24, %v5324_v49  ;;  %v4301_v26 = vpop.f32.mrb[21].mxu0 }
 0x938   :  { %4886 = vtanh.f32 %v921_v25  ;;  %v3976_v37 = vmul.f32 -1.442695, %v921_v25 }
 0x93d   :  { %v992_v27 = vpop.f32.mrb[8].mxu1 }
 0x93e   :  { %v996_v28 = vadd.f32 %v992_v27, %v5330_v55  ;;  %v4312_v31 = vpop.f32.mrb[9].mxu1 }
 0x940   :  { %4888 = vtanh.f32 %v996_v28  ;;  %v3977_v38 = vmul.f32 -1.442695, %v996_v28 }
 0x941   :  { %4890 = vpow2.f32 %v3976_v37 }
 0x942   :  { %v4887_v32 = vpop.eup %4886  ;;  %4892 = vpow2.f32 %v3977_v38 }
 0x943   :  { %1006 = vrot.lane.b32.xlu1 %v4887_v32, %s5129_s2 }
 0x94a   :  { %v4889_v34 = vpop.eup %4888 }
 0x94b   :  { %1030 = vrot.lane.b32.xlu0 %v4889_v34, %s5129_s2  ;;  %v4891_v40 = vpop.eup %4890 }
 0x94c   :  { %v1000_v42 = vadd.f32 1.0, %v4891_v40  ;;  %v4893_v49 = vpop.eup %4892 }
 0x94d   :  { %v1024_v44 = vadd.f32 1.0, %v4893_v49 }
 0x94e   :  { %4894 = vrcp.f32 %v1000_v42 }
 0x94f   :  { %4896 = vrcp.f32 %v1024_v44 }
 0x958   :  { %v4895_v45 = vpop.eup %4894 }
 0x959   :  { %v4897_v50 = vpop.eup %4896  ;;  %v1004_v56 = vmul.f32 %v4895_v45, %v806_v39 }
 0x95a   :  { %v1028_v43 = vmul.f32 %v4897_v50, %v830_v63 }
 0x9b5   :  { %v1007_v55 = vpop.permute.xlu1 %1006 }
 0x9b6   :  { %v1009_v47 = vmul.f32 %v4895_v45, %v1007_v55 }
 0x9b8   :  { %1011 = vrot.lane.b32.xlu1 %v1009_v47, %s5130_s16 }
 0x9bd   :  { %v1031_v52 = vpop.permute.xlu0 %1030 }
 0x9be   :  { %v1033_v54 = vmul.f32 %v4897_v50, %v1031_v52 }
 0x9c0   :  { %1035 = vrot.lane.b32.xlu0 %v1033_v54, %s5130_s16 }
 0xa2a   :  { %v1012_v58 = vpop.permute.xlu1 %1011 }
 0xa2b   :  { %v1014_v60 = vadd.f32 %v1012_v58, %v1004_v56 }
 0xa2d   :  { %4898 = vtanh.f32 %v1014_v60 }
 0xa32   :  { %v1036_v62 = vpop.permute.xlu0 %1035 }
 0xa33   :  { %v1038_v0 = vadd.f32 %v1036_v62, %v1028_v43 }
 0xa35   :  { %4900 = vtanh.f32 %v1038_v0 }
 0xa37   :  { %v4899_v59 = vpop.eup %4898 }
 0xa38   :  { %1017 = vrot.lane.b32.xlu1 %v4899_v59, %s5129_s2 }
 0xa3f   :  { %v4901_v2 = vpop.eup %4900 }
 0xa40   :  { %1041 = vrot.lane.b32.xlu0 %v4901_v2, %s5129_s2 }
 0xaaa   :  { %v1018_v5 = vpop.permute.xlu1 %1017 }
 0xaab   :  { %v1020_v6 = vmul.f32 %v4895_v45, %v1018_v5 }
 0xaad   :  { %1046 = vrot.lane.b32.xlu1 %v1020_v6, %s5130_s16 }
 0xab2   :  { %v1042_v7 = vpop.permute.xlu0 %1041 }
 0xab3   :  { %v5433_v8 = vmul.f32 %v4897_v50, %v1042_v7 }
 0xab5   :  { %1130 = vrot.lane.b32.xlu0 %v5433_v8, %s5130_s16 }
 0xb1f   :  { %v1047_v9 = vpop.permute.xlu1 %1046 }
 0xb20   :  { %1049 = vst.msk [vmem:[#allocation3 + $0x18] sm:$0xff] %vm226_vm2, %v1047_v9  ;;  %4322 = vmatmul.mubr.msk.f32.vlgmr.msra.gmra.mrb[22].mxu0 %vm226_vm2, %v1047_v9 }
 0xb21   :  { %4671 = vmatpush3.bf16.msra.mxu0 %v5216_v11  ;;  %4343 = vmatprep.mubr.msk.f32.mxu0 %vm5128_vm0, %v5126_v3 }
 0xb22   :  { %4672 = vmatprep.subr.bf16.mxu0 %v5127_v4 }
 0xb25   :  { %4674 = vmatpush3.bf16.msra.mxu0 %v5245_v20 }
 0xb26   :  { %4681 = vmatprep.subr.bf16.mxu0 %v5127_v4 }
 0xb27   :  { %v1131_v39 = vpop.permute.xlu0 %1130 }
 0xb28   :  { %4333 = vmatmul.mubr.msk.f32.vlgmr.msra.gmra.mrb[10].mxu1 %vm226_vm2, %v1131_v39 }
 0xb29   :  { %4677 = vmatpush3.bf16.msra.mxu1 %v5231_v16  ;;  %4354 = vmatprep.mubr.msk.f32.mxu1 %vm5128_vm0, %v5126_v3 }
 0xb2a   :  { %4678 = vmatprep.subr.bf16.mxu1 %v5127_v4 }
 0xb2d   :  { %4680 = vmatpush3.bf16.msra.mxu1 %v5249_v21 }
 0xb2e   :  { %4687 = vmatprep.subr.bf16.mxu1 %v5127_v4 }
 0xbf3   :  { %v1125_v10 = vpop.f32.mrb[22].mxu0 }
 0xbf4   :  { %v1129_v12 = vadd.f32 %v1125_v10, %v5328_v53  ;;  %v4323_v63 = vpop.f32.mrb[23].mxu0 }
 0xbf6   :  { %4902 = vtanh.f32 %v1129_v12  ;;  %v3980_v22 = vmul.f32 -1.442695, %v1129_v12 }
 0xbfb   :  { %v1200_v13 = vpop.f32.mrb[10].mxu1 }
 0xbfc   :  { %v1204_v14 = vadd.f32 %v1200_v13, %v5326_v51  ;;  %v4334_v15 = vpop.f32.mrb[11].mxu1 }
 0xbfe   :  { %4904 = vtanh.f32 %v1204_v14  ;;  %v3981_v23 = vmul.f32 -1.442695, %v1204_v14 }
 0xbff   :  { %4906 = vpow2.f32 %v3980_v22 }
 0xc00   :  { %v4903_v17 = vpop.eup %4902  ;;  %4908 = vpow2.f32 %v3981_v23 }
 0xc01   :  { %1214 = vrot.lane.b32.xlu1 %v4903_v17, %s5129_s2 }
 0xc08   :  { %v4905_v18 = vpop.eup %4904 }
 0xc09   :  { %1238 = vrot.lane.b32.xlu0 %v4905_v18, %s5129_s2  ;;  %v4907_v24 = vpop.eup %4906 }
 0xc0a   :  { %v1208_v25 = vadd.f32 1.0, %v4907_v24  ;;  %v4909_v53 = vpop.eup %4908 }
 0xc0b   :  { %v1232_v26 = vadd.f32 1.0, %v4909_v53 }
 0xc0c   :  { %4910 = vrcp.f32 %v1208_v25 }
 0xc0d   :  { %4912 = vrcp.f32 %v1232_v26 }
 0xc16   :  { %v4911_v27 = vpop.eup %4910 }
 0xc17   :  { %v4913_v31 = vpop.eup %4912  ;;  %v1212_v37 = vmul.f32 %v4911_v27, %v1014_v60 }
 0xc18   :  { %v1236_v42 = vmul.f32 %v4913_v31, %v1038_v0 }
 0xc73   :  { %v1215_v51 = vpop.permute.xlu1 %1214 }
 0xc74   :  { %v1217_v28 = vmul.f32 %v4911_v27, %v1215_v51 }
 0xc76   :  { %1219 = vrot.lane.b32.xlu1 %v1217_v28, %s5130_s16 }
 0xc7b   :  { %v1239_v32 = vpop.permute.xlu0 %1238 }
 0xc7c   :  { %v1241_v34 = vmul.f32 %v4913_v31, %v1239_v32 }
 0xc7e   :  { %1243 = vrot.lane.b32.xlu0 %v1241_v34, %s5130_s16 }
 0xce8   :  { %v1220_v38 = vpop.permute.xlu1 %1219 }
 0xce9   :  { %v1222_v40 = vadd.f32 %v1220_v38, %v1212_v37 }
 0xceb   :  { %4914 = vtanh.f32 %v1222_v40 }
 0xcf0   :  { %v1244_v49 = vpop.permute.xlu0 %1243 }
 0xcf1   :  { %v1246_v44 = vadd.f32 %v1244_v49, %v1236_v42 }
 0xcf3   :  { %4916 = vtanh.f32 %v1246_v44 }
 0xcf5   :  { %v4915_v45 = vpop.eup %4914 }
 0xcf6   :  { %1225 = vrot.lane.b32.xlu1 %v4915_v45, %s5129_s2 }
 0xcfd   :  { %v4917_v55 = vpop.eup %4916 }
 0xcfe   :  { %1249 = vrot.lane.b32.xlu0 %v4917_v55, %s5129_s2 }
 0xd68   :  { %v1226_v47 = vpop.permute.xlu1 %1225 }
 0xd69   :  { %v1228_v50 = vmul.f32 %v4911_v27, %v1226_v47 }
 0xd6b   :  { %1254 = vrot.lane.b32.xlu1 %v1228_v50, %s5130_s16 }
 0xd70   :  { %v1250_v52 = vpop.permute.xlu0 %1249 }
 0xd71   :  { %v5461_v54 = vmul.f32 %v4913_v31, %v1250_v52 }
 0xd73   :  { %1338 = vrot.lane.b32.xlu0 %v5461_v54, %s5130_s16 }
 0xddd   :  { %v5465_v56 = vpop.permute.xlu1 %1254 }
 0xdde   :  { %4344 = vmatmul.mubr.msk.f32.vlgmr.msra.gmra.mrb[24].mxu0 %vm226_vm2, %v5465_v56 }
 0xddf   :  { %4683 = vmatpush3.bf16.msra.mxu0 %v5216_v11  ;;  %4365 = vmatprep.mubr.msk.f32.mxu0 %vm5128_vm0, %v5126_v3 }
 0xde0   :  { %4684 = vmatprep.subr.bf16.mxu0 %v5127_v4 }
 0xde3   :  { %4686 = vmatpush3.bf16.msra.mxu0 %v5245_v20 }
 0xde4   :  { %4693 = vmatprep.subr.bf16.mxu0 %v5127_v4 }
 0xde5   :  { %v1339_v58 = vpop.permute.xlu0 %1338 }
 0xde6   :  { %4355 = vmatmul.mubr.msk.f32.vlgmr.msra.gmra.mrb[12].mxu1 %vm226_vm2, %v1339_v58 }
 0xde7   :  { %4689 = vmatpush3.bf16.msra.mxu1 %v5231_v16  ;;  %4376 = vmatprep.mubr.msk.f32.mxu1 %vm5128_vm0, %v5126_v3 }
 0xde8   :  { %4690 = vmatprep.subr.bf16.mxu1 %v5127_v4 }
 0xdeb   :  { %4692 = vmatpush3.bf16.msra.mxu1 %v5249_v21 }
 0xdec   :  { %4699 = vmatprep.subr.bf16.mxu1 %v5127_v4 }
 0xeb1   :  { %v1333_v60 = vpop.f32.mrb[24].mxu0 }
 0xeb2   :  { %v1337_v43 = vadd.f32 %v1333_v60, %v5332_v57  ;;  %v4345_v62 = vpop.f32.mrb[25].mxu0 }
 0xeb4   :  { %4918 = vtanh.f32 %v1337_v43  ;;  %v3984_v7 = vmul.f32 -1.442695, %v1337_v43 }
 0xeb9   :  { %v1408_v0 = vpop.f32.mrb[12].mxu1 }
 0xeba   :  { %v1412_v59 = vadd.f32 %v1408_v0, %v5322_v46  ;;  %v4356_v2 = vpop.f32.mrb[13].mxu1 }
 0xebc   :  { %4920 = vtanh.f32 %v1412_v59  ;;  %v3985_v9 = vmul.f32 -1.442695, %v1412_v59 }
 0xebd   :  { %4922 = vpow2.f32 %v3984_v7 }
 0xebe   :  { %v4919_v5 = vpop.eup %4918  ;;  %4924 = vpow2.f32 %v3985_v9 }
 0xebf   :  { %1422 = vrot.lane.b32.xlu1 %v4919_v5, %s5129_s2 }
 0xec6   :  { %v4921_v6 = vpop.eup %4920 }
 0xec7   :  { %1446 = vrot.lane.b32.xlu0 %v4921_v6, %s5129_s2  ;;  %v4923_v39 = vpop.eup %4922 }
 0xec8   :  { %v1416_v10 = vadd.f32 1.0, %v4923_v39  ;;  %v4925_v57 = vpop.eup %4924 }
 0xec9   :  { %v1440_v12 = vadd.f32 1.0, %v4925_v57 }
 0xeca   :  { %4926 = vrcp.f32 %v1416_v10 }
 0xecb   :  { %4928 = vrcp.f32 %v1440_v12 }
 0xed4   :  { %v4927_v63 = vpop.eup %4926 }
 0xed5   :  { %v4929_v14 = vpop.eup %4928  ;;  %v1420_v18 = vmul.f32 %v4927_v63, %v1222_v40 }
 0xed6   :  { %v1444_v24 = vmul.f32 %v4929_v14, %v1246_v44 }
 0xf31   :  { %v1423_v46 = vpop.permute.xlu1 %1422 }
 0xf32   :  { %v1425_v13 = vmul.f32 %v4927_v63, %v1423_v46 }
 0xf34   :  { %1427 = vrot.lane.b32.xlu1 %v1425_v13, %s5130_s16 }
 0xf39   :  { %v1447_v15 = vpop.permute.xlu0 %1446 }
 0xf3a   :  { %v1449_v17 = vmul.f32 %v4929_v14, %v1447_v15 }
 0xf3c   :  { %1451 = vrot.lane.b32.xlu0 %v1449_v17, %s5130_s16 }
 0xfa6   :  { %v1428_v22 = vpop.permute.xlu1 %1427 }
 0xfa7   :  { %v1430_v23 = vadd.f32 %v1428_v22, %v1420_v18 }
 0xfa9   :  { %4930 = vtanh.f32 %v1430_v23 }
 0xfae   :  { %v1452_v25 = vpop.permute.xlu0 %1451 }
 0xfaf   :  { %v1454_v53 = vadd.f32 %v1452_v25, %v1444_v24 }
 0xfb1   :  { %4932 = vtanh.f32 %v1454_v53 }
 0xfb3   :  { %v4931_v26 = vpop.eup %4930 }
 0xfb4   :  { %1433 = vrot.lane.b32.xlu1 %v4931_v26, %s5129_s2 }
 0xfbb   :  { %v4933_v27 = vpop.eup %4932 }
 0xfbc   :  { %1457 = vrot.lane.b32.xlu0 %v4933_v27, %s5129_s2 }
0x1026   :  { %v1434_v51 = vpop.permute.xlu1 %1433 }
0x1027   :  { %v1436_v28 = vmul.f32 %v4927_v63, %v1434_v51 }
0x1029   :  { %1462 = vrot.lane.b32.xlu1 %v1436_v28, %s5130_s16 }
0x102e   :  { %v1458_v31 = vpop.permute.xlu0 %1457 }
0x102f   :  { %v5491_v32 = vmul.f32 %v4929_v14, %v1458_v31 }
0x1031   :  { %1546 = vrot.lane.b32.xlu0 %v5491_v32, %s5130_s16 }
0x109b   :  { %v5495_v34 = vpop.permute.xlu1 %1462 }
0x109c   :  { %4366 = vmatmul.mubr.msk.f32.vlgmr.msra.gmra.mrb[26].mxu0 %vm226_vm2, %v5495_v34 }
0x109d   :  { %4695 = vmatpush3.bf16.msra.mxu0 %v5216_v11  ;;  %4387 = vmatprep.mubr.msk.f32.mxu0 %vm5128_vm0, %v5126_v3 }
0x109e   :  { %4696 = vmatprep.subr.bf16.mxu0 %v5127_v4 }
0x10a1   :  { %4698 = vmatpush3.bf16.msra.mxu0 %v5245_v20 }
0x10a3   :  { %v1547_v37 = vpop.permute.xlu0 %1546 }
0x10a4   :  { %4377 = vmatmul.mubr.msk.f32.vlgmr.msra.gmra.mrb[14].mxu1 %vm226_vm2, %v1547_v37 }
0x10a5   :  { %4701 = vmatpush3.bf16.msra.mxu1 %v5231_v16  ;;  %4398 = vmatprep.mubr.msk.f32.mxu1 %vm5128_vm0, %v5126_v3 }
0x10a6   :  { %4702 = vmatprep.subr.bf16.mxu1 %v5127_v4 }
0x10a9   :  { %4704 = vmatpush3.bf16.msra.mxu1 %v5249_v21 }
0x10aa   :  { %4721 = vmatprep.subr.bf16.mxu1 %v5127_v4 }
0x116f   :  { %v1541_v11 = vpop.f32.mrb[26].mxu0 }
0x1170   :  { %v1545_v38 = vadd.f32 %v1541_v11, %v5336_v61  ;;  %v4367_v40 = vpop.f32.mrb[27].mxu0 }
0x1172   :  { %4934 = vtanh.f32 %v1545_v38  ;;  %v3988_v45 = vmul.f32 -1.442695, %v1545_v38 }
0x1177   :  { %v1616_v20 = vpop.f32.mrb[14].mxu1 }
0x1178   :  { %v1620_v42 = vadd.f32 %v1616_v20, %v5318_v41  ;;  %v4378_v49 = vpop.f32.mrb[15].mxu1 }
0x117a   :  { %4936 = vtanh.f32 %v1620_v42  ;;  %v3989_v21 = vmul.f32 -1.442695, %v1620_v42 }
0x117b   :  { %4938 = vpow2.f32 %v3988_v45 }
0x117c   :  { %v4935_v16 = vpop.eup %4934  ;;  %4940 = vpow2.f32 %v3989_v21 }
0x117d   :  { %1630 = vrot.lane.b32.xlu1 %v4935_v16, %s5129_s2 }
0x1184   :  { %v4937_v44 = vpop.eup %4936 }
0x1185   :  { %1654 = vrot.lane.b32.xlu0 %v4937_v44, %s5129_s2  ;;  %v4939_v55 = vpop.eup %4938 }
0x1186   :  { %v1624_v47 = vadd.f32 1.0, %v4939_v55  ;;  %v4941_v61 = vpop.eup %4940 }
0x1187   :  { %v1648_v50 = vadd.f32 1.0, %v4941_v61  ;;  %v1898_v61 = vld [vmem:[%s6030_s5 + $0x18] sm:$0xff] }
0x1188   :  { %4942 = vrcp.f32 %v1624_v47  ;;  %v1896_v47 = vld [vmem:[%s6030_s5 + $0x8] sm:$0xff] }
0x1189   :  { %4944 = vrcp.f32 %v1648_v50  ;;  %v1895_v50 = vld [vmem:[%s6030_s5] sm:$0xff] }
0x1192   :  { %v4943_v52 = vpop.eup %4942 }
0x1193   :  { %v4945_v60 = vpop.eup %4944  ;;  %v1628_v0 = vmul.f32 %v4943_v52, %v1430_v23 }
0x1194   :  { %v1652_v5 = vmul.f32 %v4945_v60, %v1454_v53 }
0x11ef   :  { %v1631_v41 = vpop.permute.xlu1 %1630 }
0x11f0   :  { %v1633_v58 = vmul.f32 %v4943_v52, %v1631_v41  ;;  %v1902_v41 = vld [vmem:[%s6030_s5 + $0x38] sm:$0xff] }
0x11f2   :  { %1635 = vrot.lane.b32.xlu1 %v1633_v58, %s5130_s16 }
0x11f7   :  { %v1655_v43 = vpop.permute.xlu0 %1654 }
0x11f8   :  { %v1657_v62 = vmul.f32 %v4945_v60, %v1655_v43  ;;  %v1899_v43 = vld [vmem:[%s6030_s5 + $0x20] sm:$0xff] }
0x11fa   :  { %1659 = vrot.lane.b32.xlu0 %v1657_v62, %s5130_s16  ;;  %v1901_v62 = vld [vmem:[%s6030_s5 + $0x30] sm:$0xff] }
0x1264   :  { %v1636_v59 = vpop.permute.xlu1 %1635 }
0x1265   :  { %v1638_v2 = vadd.f32 %v1636_v59, %v1628_v0  ;;  %v4711_v0 = vpack.c.bf16 %v1901_v62, %v1899_v43  ;;  %v1904_v59 = vld [vmem:[%s6030_s5 + $0x48] sm:$0xff] }
0x1267   :  { %4946 = vtanh.f32 %v1638_v2 }
0x126c   :  { %v1660_v6 = vpop.permute.xlu0 %1659 }
0x126d   :  { %v1662_v7 = vadd.f32 %v1660_v6, %v1652_v5  ;;  %v1903_v5 = vld [vmem:[%s6030_s5 + $0x40] sm:$0xff]  ;;  %v1905_v6 = vld [vmem:[%s6030_s5 + $0x50] sm:$0xff] }
0x126f   :  { %4948 = vtanh.f32 %v1662_v7 }
0x1271   :  { %v4947_v9 = vpop.eup %4946 }
0x1272   :  { %1641 = vrot.lane.b32.xlu1 %v4947_v9, %s5129_s2  ;;  %v2077_v9 = vld [vmem:[%s6031_s7] sm:$0xff] }
0x1279   :  { %v4949_v39 = vpop.eup %4948 }
0x127a   :  { %1665 = vrot.lane.b32.xlu0 %v4949_v39, %s5129_s2  ;;  %v2078_v39 = vld [vmem:[%s6031_s7 + $0x8] sm:$0xff] }
0x12e4   :  { %v1642_v10 = vpop.permute.xlu1 %1641 }
0x12e5   :  { %v1644_v57 = vmul.f32 %v4943_v52, %v1642_v10  ;;  %v4705_v52 = vpack.c.bf16 %v1898_v61, %v1896_v47  ;;  %v5594_v10 = vpack.c.bf16 %v2078_v39, %v2077_v9 }
0x12e7   :  { %1670 = vrot.lane.b32.xlu1 %v1644_v57, %s5130_s16  ;;  %4706 = vmatprep.subr.bf16.mxu0 %v4705_v52  ;;  %v1908_v57 = vld [vmem:[%s6030_s5 + $0x68] sm:$0xff] }
0x12ec   :  { %v1666_v12 = vpop.permute.xlu0 %1665 }
0x12ed   :  { %v1668_v63 = vmul.f32 %v4945_v60, %v1666_v12  ;;  %v1910_v12 = vld [vmem:[%s6030_s5 + $0x78] sm:$0xff] }
0x12ef   :  { %1754 = vrot.lane.b32.xlu0 %v1668_v63, %s5130_s16 }
0x1359   :  { %v5521_v46 = vpop.permute.xlu1 %1670 }
0x135a   :  { %4388 = vmatmul.mubr.msk.f32.vlgmr.msra.gmra.mrb[28].mxu0 %vm226_vm2, %v5521_v46 }
0x135b   :  { %2012 = vmatprep.mubr.f32.mxu0 %v5126_v3 }
0x1361   :  { %v1755_v13 = vpop.permute.xlu0 %1754 }
0x1362   :  { %4399 = vmatmul.mubr.msk.f32.vlgmr.msra.gmra.mrb[16].mxu1 %vm226_vm2, %v1755_v13  ;;  %v4717_v13 = vpack.c.bf16 %v1910_v12, %v1908_v57 }
0x1363   :  { %4409 = vmatprep.mubr.msk.f32.mxu1 %vm5128_vm0, %v5126_v3  ;;  %4723 = vmatpush3.bf16.msra.mxu1 %v5594_v10 }
0x1364   :  { %4724 = vmatprep.subr.bf16.mxu1 %v5127_v4 }
0x142d   :  { %v1749_v14 = vpop.f32.mrb[28].mxu0 }
0x142e   :  { %v1753_v15 = vadd.f32 %v1749_v14, %v5340_v1  ;;  %v4389_v17 = vpop.f32.mrb[29].mxu0  ;;  %v1907_v14 = vld [vmem:[%s6030_s5 + $0x60] sm:$0xff] }
0x1430   :  { %4950 = vtanh.f32 %v1753_v15  ;;  %v3992_v53 = vmul.f32 -1.442695, %v1753_v15  ;;  %v1909_v15 = vld [vmem:[%s6030_s5 + $0x70] sm:$0xff] }
0x1431   :  { %v4719_v17 = vpack.c.bf16 %v1909_v15, %v1907_v14 }
0x1435   :  { %v1824_v18 = vpop.f32.mrb[16].mxu1 }
0x1436   :  { %v1828_v22 = vadd.f32 %v1824_v18, %v5312_v36  ;;  %v4400_v23 = vpop.f32.mrb[17].mxu1  ;;  %v2079_v18 = vld [vmem:[%s6031_s7 + $0x10] sm:$0xff] }
0x1438   :  { %4952 = vtanh.f32 %v1828_v22  ;;  %v3993_v26 = vmul.f32 -1.442695, %v1828_v22  ;;  %v2080_v22 = vld [vmem:[%s6031_s7 + $0x18] sm:$0xff] }
0x1439   :  { %4954 = vpow2.f32 %v3992_v53  ;;  %v5616_v23 = vpack.c.bf16 %v2080_v22, %v2079_v18 }
0x143a   :  { %v4951_v24 = vpop.eup %4950  ;;  %4956 = vpow2.f32 %v3993_v26 }
0x143b   :  { %1838 = vrot.lane.b32.xlu1 %v4951_v24, %s5129_s2  ;;  %4726 = vmatpush3.bf16.msra.mxu1 %v5616_v23 }
0x143c   :  { %4727 = vmatprep.subr.bf16.mxu1 %v5127_v4 }
0x143e   :  { %4410 = vmatmul.mubr.f32.vlgmr.msra.gmra.mrb[18].mxu1 %v5126_v3 }
0x143f   :  { %4420 = vmatprep.mubr.msk.f32.mxu1 %vm5128_vm0, %v5126_v3 }
0x1442   :  { %v4953_v25 = vpop.eup %4952 }
0x1443   :  { %1862 = vrot.lane.b32.xlu0 %v4953_v25, %s5129_s2  ;;  %v4955_v27 = vpop.eup %4954 }
0x1444   :  { %v1832_v51 = vadd.f32 1.0, %v4955_v27  ;;  %v4957_v1 = vpop.eup %4956 }
0x1445   :  { %v1856_v28 = vadd.f32 1.0, %v4957_v1 }
0x1446   :  { %4958 = vrcp.f32 %v1832_v51 }
0x1447   :  { %4960 = vrcp.f32 %v1856_v28  ;;  %v2081_v28 = vld [vmem:[%s6032_s8] sm:$0xff] }
0x1450   :  { %v5533_v31 = vpop.eup %4958 }
0x1451   :  { %v5537_v11 = vpop.eup %4960  ;;  %v1836_v20 = vmul.f32 %v5533_v31, %v1638_v2 }
0x1452   :  { %v1860_v16 = vmul.f32 %v5537_v11, %v1662_v7  ;;  %v4715_v7 = vpack.c.bf16 %v1905_v6, %v1903_v5 }
0x14ad   :  { %v1839_v36 = vpop.permute.xlu1 %1838 }
0x14ae   :  { %v1841_v37 = vmul.f32 %v5533_v31, %v1839_v36 }
0x14b0   :  { %1843 = vrot.lane.b32.xlu1 %v1841_v37, %s5130_s16 }
0x14b5   :  { %v1863_v38 = vpop.permute.xlu0 %1862 }
0x14b6   :  { %v1865_v40 = vmul.f32 %v5537_v11, %v1863_v38 }
0x14b8   :  { %1867 = vrot.lane.b32.xlu0 %v1865_v40, %s5130_s16 }
0x1522   :  { %v1844_v42 = vpop.permute.xlu1 %1843 }
0x1523   :  { %v1846_v49 = vadd.f32 %v1844_v42, %v1836_v20 }
0x1525   :  { %4962 = vtanh.f32 %v1846_v49 }
0x152a   :  { %v1868_v44 = vpop.permute.xlu0 %1867 }
0x152b   :  { %v1870_v45 = vadd.f32 %v1868_v44, %v1860_v16 }
0x152d   :  { %4964 = vtanh.f32 %v1870_v45 }
0x152f   :  { %v4963_v21 = vpop.eup %4962 }
0x1530   :  { %1849 = vrot.lane.b32.xlu1 %v4963_v21, %s5129_s2  ;;  %v2153_v21 = vpop.f32.mrb[18].mxu1 }
0x1534   :  { %1675 = vrot.lane.b32.xlu1 %v1668_v63, %s5129_s2 }
0x1537   :  { %v4965_v55 = vpop.eup %4964 }
0x1538   :  { %1873 = vrot.lane.b32.xlu0 %v4965_v55, %s5129_s2  ;;  %1259 = vrot.lane.b32.xlu1 %v5461_v54, %s5129_s2  ;;  %v1897_v54 = vld [vmem:[%s6030_s5 + $0x10] sm:$0xff]  ;;  %v4411_v55 = vpop.f32.mrb[19].mxu1 }
0x1539   :  { %v4707_v58 = vpack.c.bf16 %v1897_v54, %v1895_v50  ;;  %v1911_v50 = vld [vmem:[%s6033_s6] sm:$0x3] }
0x153a   :  { %v1916_v52 = vrot.slane %v1911_v50, %v54_v33  ;;  %v1920_v54 = vrot.slane %v1911_v50, %v58_v30 }
0x153b   :  { %4708 = vmatpush1.bf16.msra.mxu0 %v4707_v58 }
0x153c   :  { %843 = vrot.lane.b32.xlu1 %v5405_v19, %s5129_s2  ;;  %v1900_v19 = vld [vmem:[%s6030_s5 + $0x28] sm:$0xff] }
0x153d   :  { %v4709_v60 = vpack.c.bf16 %v1902_v41, %v1900_v19 }
0x153f   :  { %4710 = vmatprep.subr.bf16.mxu0 %v4709_v60 }
0x1540   :  { %426 = vrot.lane.b32.xlu1 %v5349_v48, %s5129_s2  ;;  %4712 = vmatpush1.bf16.msra.mxu0 %v4711_v0  ;;  %v1906_v48 = vld [vmem:[%s6030_s5 + $0x58] sm:$0xff] }
0x1541   :  { %v4713_v2 = vpack.c.bf16 %v1906_v48, %v1904_v59 }
0x1543   :  { %4714 = vmatprep.subr.bf16.mxu0 %v4713_v2 }
0x1544   :  { %4716 = vmatpush1.bf16.msra.mxu0 %v4715_v7 }
0x1545   :  { %4718 = vmatprep.subr.bf16.mxu0 %v4717_v13 }
0x1548   :  { %4720 = vmatpush1.bf16.msra.mxu0 %v4719_v17 }
0x1549   :  { %4751 = vmatprep.subr.bf16.mxu0 %v5127_v4 }
0x15a2   :  { %v1850_v63 = vpop.permute.xlu1 %1849 }
0x15a3   :  { %v1852_v1 = vmul.f32 %v5533_v31, %v1850_v63 }
0x15a6   :  { %v1676_v24 = vpop.permute.xlu1 %1675 }
0x15a7   :  { %1678 = vst.msk [vmem:[#allocation3 + $0x8] sm:$0xff] %vm429_vm3, %v1676_v24 }
0x15aa   :  { %v1874_v25 = vpop.permute.xlu0 %1873  ;;  %v1260_v53 = vpop.permute.xlu1 %1259 }
0x15ab   :  { %v1876_v26 = vmul.f32 %v5537_v11, %v1874_v25  ;;  %1262 = vst.msk [vmem:[#allocation3 + $0x18] sm:$0xff] %vm429_vm3, %v1260_v53 }
0x15ad   :  { %1883 = vrot.lane.b32.xlu0 %v1876_v26, %s5129_s2 }
0x15ae   :  { %v844_v27 = vpop.permute.xlu1 %843  ;;  %v1888_v20 = vld [vmem:[#allocation3 + $0x8] sm:$0xff] }
0x15af   :  { %846 = vst.msk [vmem:[#allocation3 + $0x28] sm:$0xff] %vm429_vm3, %v844_v27 }
0x15b0   :  { %1465 = vst.msk [vmem:[#allocation3 + $0x28] sm:$0xff] %vm226_vm2, %v5495_v34  ;;  %v2082_v34 = vld [vmem:[%s6032_s8 + $0x8] sm:$0xff] }
0x15b1   :  { %1467 = vrot.lane.b32.xlu0 %v5491_v32, %s5129_s2  ;;  %v5646_v32 = vpack.c.bf16 %v2082_v34, %v2081_v28 }
0x15b2   :  { %v427_v51 = vpop.permute.xlu1 %426  ;;  %v1890_v49 = vld [vmem:[#allocation3 + $0x18] sm:$0xff] }
0x15b3   :  { %430 = vst.msk [vmem:[#allocation3 + $0x38] sm:$0xff] %vm429_vm3, %v427_v51  ;;  %4729 = vmatpush3.bf16.msra.mxu1 %v5646_v32 }
0x15b4   :  { %4730 = vmatprep.subr.bf16.mxu1 %v5127_v4 }
0x15b5   :  { %1051 = vrot.lane.b32.xlu0 %v5433_v8, %s5129_s2  ;;  %v2084_v8 = vld [vmem:[%s6032_s8 + $0x18] sm:$0xff] }
0x15b7   :  { %v1892_v16 = vld [vmem:[#allocation3 + $0x28] sm:$0xff] }
0x15b9   :  { %635 = vrot.lane.b32.xlu0 %v5377_v35, %s5129_s2  ;;  %v2083_v35 = vld [vmem:[%s6032_s8 + $0x10] sm:$0xff] }
0x15ba   :  { %v5656_v31 = vpack.c.bf16 %v2084_v8, %v2083_v35 }
0x15bc   :  { %4732 = vmatpush3.bf16.msra.mxu1 %v5656_v31 }
0x15bd   :  { %1878 = vrot.lane.b32.xlu0 %v1852_v1, %s5130_s16  ;;  %4733 = vmatprep.subr.bf16.mxu1 %v5127_v4 }
0x15bf   :  { %4421 = vmatmul.mubr.f32.vlgmr.msra.gmra.mrb[20].mxu1 %v5126_v3 }
0x15c0   :  { %4735 = vmatpush3.bf16.msra.mxu1 %v5594_v10  ;;  %4431 = vmatprep.mubr.msk.f32.mxu1 %vm5128_vm0, %v5126_v3 }
0x15c1   :  { %4736 = vmatprep.subr.bf16.mxu1 %v5127_v4 }
0x15c4   :  { %4738 = vmatpush3.bf16.msra.mxu1 %v5616_v23 }
0x15c5   :  { %4739 = vmatprep.subr.bf16.mxu1 %v5127_v4 }
0x161f   :  { %v1884_v36 = vpop.permute.xlu0 %1883 }
0x1620   :  { %1886 = vst.msk [vmem:[#allocation3] sm:$0xff] %vm429_vm3, %v1884_v36 }
0x1623   :  { %v1468_v37 = vpop.permute.xlu0 %1467 }
0x1624   :  { %1470 = vst.msk [vmem:[#allocation3 + $0x10] sm:$0xff] %vm429_vm3, %v1468_v37 }
0x1627   :  { %v1052_v11 = vpop.permute.xlu0 %1051  ;;  %v1887_v38 = vld [vmem:[#allocation3] sm:$0xff] }
0x1628   :  { %1054 = vst.msk [vmem:[#allocation3 + $0x20] sm:$0xff] %vm429_vm3, %v1052_v11  ;;  %3994 = vmatmul.mubr.msk.f32.vlgmr.msra.gmra.mrb[30].mxu0 %vm1923_vm4, %v1887_v38 }
0x1629   :  { %1257 = vst.msk [vmem:[#allocation3 + $0x20] sm:$0xff] %vm226_vm2, %v5465_v56  ;;  %2018 = vmatprep.mubr.f32.mxu0 %v5126_v3  ;;  %4753 = vmatpush3.bf16.msra.mxu0 %v5646_v32 }
0x162a   :  { %4754 = vmatprep.subr.bf16.mxu0 %v5127_v4 }
0x162b   :  { %v636_v40 = vpop.permute.xlu0 %635  ;;  %v1889_v42 = vld [vmem:[#allocation3 + $0x10] sm:$0xff] }
0x162c   :  { %638 = vst.msk [vmem:[#allocation3 + $0x30] sm:$0xff] %vm429_vm3, %v636_v40  ;;  %3995 = vmatmul.mubr.msk.f32.gmra.mrb[32].mxu0 %vm1923_vm4, %v1888_v20 }
0x162d   :  { %1673 = vst.msk [vmem:[#allocation3 + $0x30] sm:$0xff] %vm226_vm2, %v5521_v46  ;;  %2024 = vmatprep.mubr.f32.mxu0 %v5126_v3  ;;  %4756 = vmatpush3.bf16.msra.mxu0 %v5656_v31 }
0x162e   :  { %4763 = vmatprep.subr.bf16.mxu0 %v5127_v4 }
0x162f   :  { %v1879_v56 = vpop.permute.xlu0 %1878 }
0x1630   :  { %1881 = vst.msk [vmem:[#allocation3 + $0x38] sm:$0xff] %vm226_vm2, %v1879_v56  ;;  %3996 = vmatmul.mubr.msk.f32.gmra.mrb[34].mxu0 %vm1923_vm4, %v1889_v42  ;;  %v1891_v46 = vld [vmem:[#allocation3 + $0x20] sm:$0xff] }
0x1631   :  { %2030 = vmatprep.mubr.f32.mxu0 %v5126_v3 }
0x1634   :  { %3997 = vmatmul.mubr.msk.f32.gmra.mrb[36].mxu0 %vm1923_vm4, %v1890_v49  ;;  %v1893_v44 = vld [vmem:[#allocation3 + $0x30] sm:$0xff] }
0x1635   :  { %2036 = vmatprep.mubr.f32.mxu0 %v5126_v3 }
0x1637   :  { %v1894_v45 = vld [vmem:[#allocation3 + $0x38] sm:$0xff] }
0x1638   :  { %3998 = vmatmul.mubr.msk.f32.gmra.mrb[38].mxu0 %vm1923_vm4, %v1891_v46 }
0x1639   :  { %2042 = vmatprep.mubr.f32.mxu0 %v5126_v3 }
0x163c   :  { %3999 = vmatmul.mubr.msk.f32.gmra.mrb[40].mxu0 %vm1923_vm4, %v1892_v16 }
0x163d   :  { %2048 = vmatprep.mubr.f32.mxu0 %v5126_v3 }
0x1640   :  { %4000 = vmatmul.mubr.msk.f32.gmra.mrb[42].mxu0 %vm1923_vm4, %v1893_v44 }
0x1641   :  { %2054 = vmatprep.mubr.f32.mxu0 %v5126_v3 }
0x1644   :  { %4001 = vmatmul.mubr.msk.f32.gmra.mrb[44].mxu0 %vm1923_vm4, %v1894_v45 }
0x1645   :  { %4464 = vmatprep.mubr.msk.f32.mxu0 %vm5128_vm0, %v5126_v3 }
0x1692   :  { %v2224_v47 = vpop.f32.mrb[20].mxu1 }
0x1693   :  { %v4422_v61 = vpop.f32.mrb[21].mxu1 }
0x16fb   :  { %v2014_v19 = vpop.f32.mrb[30].mxu0 }
0x16fc   :  { %v2015_v41 = vadd.f32 %v2014_v19, %v1916_v52  ;;  %v2016_v58 = vpop.f32.mrb[31].mxu0 }
0x16fd   :  { %v5704_v60 = vadd.f32 %v2016_v58, %v1920_v54 }
0x16fe   :  { %v2157_v43 = vadd.f32 %v2153_v21, %v2015_v41 }
0x16ff   :  { %v2020_v62 = vpop.f32.mrb[32].mxu0 }
0x1700   :  { %4966 = vtanh.f32 %v2157_v43  ;;  %v5706_v0 = vadd.f32 %v2020_v62, %v1916_v52  ;;  %v2022_v59 = vpop.f32.mrb[33].mxu0  ;;  %v4002_v35 = vmul.f32 -1.442695, %v2157_v43 }
0x1701   :  { %v5708_v48 = vadd.f32 %v2022_v59, %v1920_v54 }
0x1703   :  { %v2026_v2 = vpop.f32.mrb[34].mxu0 }
0x1704   :  { %v5710_v5 = vadd.f32 %v2026_v2, %v1916_v52  ;;  %v2028_v33 = vpop.f32.mrb[35].mxu0 }
0x1705   :  { %v5712_v6 = vadd.f32 %v2028_v33, %v1920_v54 }
0x1707   :  { %v2032_v29 = vpop.f32.mrb[36].mxu0 }
0x1708   :  { %v5714_v30 = vadd.f32 %v2032_v29, %v1916_v52  ;;  %v2034_v7 = vpop.f32.mrb[37].mxu0 }
0x1709   :  { %v5716_v9 = vadd.f32 %v2034_v7, %v1920_v54 }
0x170a   :  { %v4967_v39 = vpop.eup %4966 }
0x170b   :  { %v2038_v57 = vpop.f32.mrb[38].mxu0  ;;  %2238 = vrot.lane.b32.xlu1 %v4967_v39, %s5129_s2 }
0x170c   :  { %v5719_v12 = vadd.f32 %v2038_v57, %v1916_v52  ;;  %v2040_v63 = vpop.f32.mrb[39].mxu0 }
0x170d   :  { %v5721_v13 = vadd.f32 %v2040_v63, %v1920_v54 }
0x170f   :  { %v2044_v14 = vpop.f32.mrb[40].mxu0 }
0x1710   :  { %v5723_v15 = vadd.f32 %v2044_v14, %v1916_v52  ;;  %v2046_v17 = vpop.f32.mrb[41].mxu0 }
0x1711   :  { %v5725_v18 = vadd.f32 %v2046_v17, %v1920_v54 }
0x1713   :  { %v2050_v22 = vpop.f32.mrb[42].mxu0 }
0x1714   :  { %v5727_v24 = vadd.f32 %v2050_v22, %v1916_v52  ;;  %v2052_v25 = vpop.f32.mrb[43].mxu0 }
0x1715   :  { %v5729_v53 = vadd.f32 %v2052_v25, %v1920_v54 }
0x1717   :  { %v2056_v26 = vpop.f32.mrb[44].mxu0 }
0x1718   :  { %v5731_v27 = vadd.f32 %v2056_v26, %v1916_v52  ;;  %v2058_v51 = vpop.f32.mrb[45].mxu0 }
0x1719   :  { %v2059_v1 = vadd.f32 %v2058_v51, %v1920_v54 }
0x171b   :  { %v2228_v28 = vadd.f32 %v2224_v47, %v2059_v1 }
0x171d   :  { %4968 = vtanh.f32 %v2228_v28  ;;  %v4003_v37 = vmul.f32 -1.442695, %v2228_v28 }
0x171e   :  { %4970 = vpow2.f32 %v4002_v35 }
0x1727   :  { %v4969_v34 = vpop.eup %4968 }
0x1728   :  { %2262 = vrot.lane.b32.xlu0 %v4969_v34, %s5129_s2  ;;  %v4971_v8 = vpop.eup %4970 }
0x1729   :  { %v2232_v36 = vadd.f32 1.0, %v4971_v8 }
0x172b   :  { %4972 = vrcp.f32 %v2232_v36 }
0x172c   :  { %4974 = vpow2.f32 %v4003_v37 }
0x1735   :  { %v4973_v11 = vpop.eup %4972 }
0x1736   :  { %v4975_v20 = vpop.eup %4974  ;;  %v2236_v16 = vmul.f32 0.0, %v4973_v11 }
0x1737   :  { %v2256_v56 = vadd.f32 1.0, %v4975_v20 }
0x1739   :  { %4976 = vrcp.f32 %v2256_v56 }
0x1743   :  { %v4977_v42 = vpop.eup %4976 }
0x1744   :  { %v2260_v55 = vmul.f32 0.0, %v4977_v42 }
0x177d   :  { %v2239_v38 = vpop.permute.xlu1 %2238 }
0x177e   :  { %v2241_v40 = vmul.f32 %v4973_v11, %v2239_v38 }
0x1780   :  { %2243 = vrot.lane.b32.xlu1 %v2241_v40, %s5130_s16 }
0x179a   :  { %v2263_v49 = vpop.permute.xlu0 %2262 }
0x179b   :  { %v2265_v46 = vmul.f32 %v4977_v42, %v2263_v49 }
0x179d   :  { %2267 = vrot.lane.b32.xlu0 %v2265_v46, %s5130_s16 }
0x17f2   :  { %v2244_v44 = vpop.permute.xlu1 %2243 }
0x17f3   :  { %v2246_v45 = vadd.f32 %v2244_v44, %v2236_v16 }
0x17f5   :  { %4978 = vtanh.f32 %v2246_v45 }
0x17ff   :  { %v4979_v21 = vpop.eup %4978 }
0x1800   :  { %2249 = vrot.lane.b32.xlu1 %v4979_v21, %s5129_s2 }
0x180f   :  { %v2268_v47 = vpop.permute.xlu0 %2267 }
0x1810   :  { %v2270_v61 = vadd.f32 %v2268_v47, %v2260_v55 }
0x1812   :  { %4980 = vtanh.f32 %v2270_v61 }
0x181c   :  { %v4981_v50 = vpop.eup %4980 }
0x181d   :  { %2273 = vrot.lane.b32.xlu0 %v4981_v50, %s5129_s2 }
0x1872   :  { %v2250_v52 = vpop.permute.xlu1 %2249 }
0x1873   :  { %v2252_v54 = vmul.f32 %v4973_v11, %v2250_v52 }
0x1875   :  { %2278 = vrot.lane.b32.xlu1 %v2252_v54, %s5130_s16 }
0x188f   :  { %v2274_v19 = vpop.permute.xlu0 %2273 }
0x1890   :  { %v5739_v41 = vmul.f32 %v4977_v42, %v2274_v19 }
0x1892   :  { %2362 = vrot.lane.b32.xlu0 %v5739_v41, %s5130_s16 }
0x18e7   :  { %v2279_v58 = vpop.permute.xlu1 %2278 }
0x18e8   :  { %2281 = vst.msk [vmem:[#allocation3] sm:$0xff] %vm226_vm2, %v2279_v58  ;;  %4432 = vmatmul.mubr.msk.f32.vlgmr.msra.gmra.mrb[22].mxu1 %vm226_vm2, %v2279_v58 }
0x18e9   :  { %4741 = vmatpush3.bf16.msra.mxu1 %v5646_v32  ;;  %4442 = vmatprep.mubr.msk.f32.mxu1 %vm5128_vm0, %v5126_v3 }
0x18ea   :  { %4742 = vmatprep.subr.bf16.mxu1 %v5127_v4 }
0x18ed   :  { %4744 = vmatpush3.bf16.msra.mxu1 %v5656_v31 }
0x18ee   :  { %4745 = vmatprep.subr.bf16.mxu1 %v5127_v4 }
0x1904   :  { %v2363_v43 = vpop.permute.xlu0 %2362 }
0x1905   :  { %4443 = vmatmul.mubr.msk.f32.vlgmr.msra.gmra.mrb[24].mxu1 %vm226_vm2, %v2363_v43 }
0x1906   :  { %4747 = vmatpush3.bf16.msra.mxu1 %v5594_v10  ;;  %4453 = vmatprep.mubr.msk.f32.mxu1 %vm5128_vm0, %v5126_v3 }
0x1907   :  { %4748 = vmatprep.subr.bf16.mxu1 %v5127_v4 }
0x190a   :  { %4750 = vmatpush3.bf16.msra.mxu1 %v5616_v23 }
0x190b   :  { %4757 = vmatprep.subr.bf16.mxu1 %v5127_v4 }
0x19bb   :  { %v2357_v62 = vpop.f32.mrb[22].mxu1 }
0x19bc   :  { %v2361_v59 = vadd.f32 %v2357_v62, %v5706_v0  ;;  %v4433_v2 = vpop.f32.mrb[23].mxu1 }
0x19be   :  { %4982 = vtanh.f32 %v2361_v59  ;;  %v4006_v63 = vmul.f32 -1.442695, %v2361_v59 }
0x19c8   :  { %v4983_v33 = vpop.eup %4982 }
0x19c9   :  { %2446 = vrot.lane.b32.xlu0 %v4983_v33, %s5129_s2 }
0x19d8   :  { %v2432_v29 = vpop.f32.mrb[24].mxu1 }
0x19d9   :  { %v2436_v7 = vadd.f32 %v2432_v29, %v5729_v53  ;;  %v4444_v39 = vpop.f32.mrb[25].mxu1 }
0x19db   :  { %4984 = vtanh.f32 %v2436_v7  ;;  %v4007_v22 = vmul.f32 -1.442695, %v2436_v7 }
0x19dc   :  { %4986 = vpow2.f32 %v4006_v63 }
0x19e5   :  { %v4985_v57 = vpop.eup %4984 }
0x19e6   :  { %2470 = vrot.lane.b32.xlu1 %v4985_v57, %s5129_s2  ;;  %v4987_v14 = vpop.eup %4986 }
0x19e7   :  { %v2440_v17 = vadd.f32 1.0, %v4987_v14 }
0x19e9   :  { %4988 = vrcp.f32 %v2440_v17 }
0x19ea   :  { %4990 = vpow2.f32 %v4007_v22 }
0x19f3   :  { %v4989_v0 = vpop.eup %4988 }
0x19f4   :  { %v4991_v51 = vpop.eup %4990  ;;  %v2444_v35 = vmul.f32 %v4989_v0, %v2246_v45 }
0x19f5   :  { %v2464_v1 = vadd.f32 1.0, %v4991_v51 }
0x19f7   :  { %4992 = vrcp.f32 %v2464_v1 }
0x1a01   :  { %v4993_v53 = vpop.eup %4992 }
0x1a02   :  { %v2468_v11 = vmul.f32 %v4993_v53, %v2270_v61 }
0x1a3b   :  { %v2447_v25 = vpop.permute.xlu0 %2446 }
0x1a3c   :  { %v2449_v26 = vmul.f32 %v4989_v0, %v2447_v25 }
0x1a3e   :  { %2451 = vrot.lane.b32.xlu0 %v2449_v26, %s5130_s16 }
0x1a58   :  { %v2471_v28 = vpop.permute.xlu1 %2470 }
0x1a59   :  { %v2473_v34 = vmul.f32 %v4993_v53, %v2471_v28 }
0x1a5b   :  { %2475 = vrot.lane.b32.xlu1 %v2473_v34, %s5130_s16 }
0x1ab0   :  { %v2452_v8 = vpop.permute.xlu0 %2451 }
0x1ab1   :  { %v2454_v36 = vadd.f32 %v2452_v8, %v2444_v35 }
0x1ab3   :  { %4994 = vtanh.f32 %v2454_v36 }
0x1abd   :  { %v4995_v37 = vpop.eup %4994 }
0x1abe   :  { %2457 = vrot.lane.b32.xlu0 %v4995_v37, %s5129_s2 }
0x1acd   :  { %v2476_v38 = vpop.permute.xlu1 %2475 }
0x1ace   :  { %v2478_v40 = vadd.f32 %v2476_v38, %v2468_v11 }
0x1ad0   :  { %4996 = vtanh.f32 %v2478_v40 }
0x1ada   :  { %v4997_v20 = vpop.eup %4996 }
0x1adb   :  { %2481 = vrot.lane.b32.xlu1 %v4997_v20, %s5129_s2 }
0x1b30   :  { %v2458_v56 = vpop.permute.xlu0 %2457 }
0x1b31   :  { %v2460_v42 = vmul.f32 %v4989_v0, %v2458_v56 }
0x1b33   :  { %2486 = vrot.lane.b32.xlu0 %v2460_v42, %s5130_s16 }
0x1b4d   :  { %v2482_v49 = vpop.permute.xlu1 %2481 }
0x1b4e   :  { %v5767_v46 = vmul.f32 %v4993_v53, %v2482_v49 }
0x1b50   :  { %2570 = vrot.lane.b32.xlu1 %v5767_v46, %s5130_s16 }
0x1ba5   :  { %v2487_v16 = vpop.permute.xlu0 %2486 }
0x1ba6   :  { %2489 = vst.msk [vmem:[#allocation3 + $0x8] sm:$0xff] %vm226_vm2, %v2487_v16  ;;  %4454 = vmatmul.mubr.msk.f32.vlgmr.msra.gmra.mrb[26].mxu1 %vm226_vm2, %v2487_v16 }
0x1ba7   :  { %4759 = vmatpush3.bf16.msra.mxu1 %v5594_v10  ;;  %4475 = vmatprep.mubr.msk.f32.mxu1 %vm5128_vm0, %v5126_v3 }
0x1ba8   :  { %4760 = vmatprep.subr.bf16.mxu1 %v5127_v4 }
0x1bab   :  { %4762 = vmatpush3.bf16.msra.mxu1 %v5616_v23 }
0x1bac   :  { %4769 = vmatprep.subr.bf16.mxu1 %v5127_v4 }
0x1bc2   :  { %v2571_v44 = vpop.permute.xlu1 %2570 }
0x1bc3   :  { %4465 = vmatmul.mubr.msk.f32.vlgmr.msra.gmra.mrb[46].mxu0 %vm226_vm2, %v2571_v44 }
0x1bc4   :  { %4765 = vmatpush3.bf16.msra.mxu0 %v5646_v32  ;;  %4486 = vmatprep.mubr.msk.f32.mxu0 %vm5128_vm0, %v5126_v3 }
0x1bc5   :  { %4766 = vmatprep.subr.bf16.mxu0 %v5127_v4 }
0x1bc8   :  { %4768 = vmatpush3.bf16.msra.mxu0 %v5656_v31 }
0x1bc9   :  { %4775 = vmatprep.subr.bf16.mxu0 %v5127_v4 }
0x1c79   :  { %v2565_v45 = vpop.f32.mrb[26].mxu1 }
0x1c7a   :  { %v2569_v21 = vadd.f32 %v2565_v45, %v5710_v5  ;;  %v4455_v55 = vpop.f32.mrb[27].mxu1 }
0x1c7c   :  { %4998 = vtanh.f32 %v2569_v21  ;;  %v4010_v19 = vmul.f32 -1.442695, %v2569_v21 }
0x1c86   :  { %v4999_v47 = vpop.eup %4998 }
0x1c87   :  { %2654 = vrot.lane.b32.xlu0 %v4999_v47, %s5129_s2 }
0x1c96   :  { %v2640_v61 = vpop.f32.mrb[46].mxu0 }
0x1c97   :  { %v2644_v50 = vadd.f32 %v2640_v61, %v5725_v18  ;;  %v4466_v52 = vpop.f32.mrb[47].mxu0 }
0x1c99   :  { %5000 = vtanh.f32 %v2644_v50  ;;  %v4011_v62 = vmul.f32 -1.442695, %v2644_v50 }
0x1c9a   :  { %5002 = vpow2.f32 %v4010_v19 }
0x1ca3   :  { %v5001_v54 = vpop.eup %5000 }
0x1ca4   :  { %2678 = vrot.lane.b32.xlu1 %v5001_v54, %s5129_s2  ;;  %v5003_v58 = vpop.eup %5002 }
0x1ca5   :  { %v2648_v43 = vadd.f32 1.0, %v5003_v58 }
0x1ca7   :  { %5004 = vrcp.f32 %v2648_v43 }
0x1ca8   :  { %5006 = vpow2.f32 %v4011_v62 }
0x1cb1   :  { %v5005_v5 = vpop.eup %5004 }
0x1cb2   :  { %v5007_v33 = vpop.eup %5006  ;;  %v2652_v57 = vmul.f32 %v5005_v5, %v2454_v36 }
0x1cb3   :  { %v2672_v29 = vadd.f32 1.0, %v5007_v33 }
0x1cb5   :  { %5008 = vrcp.f32 %v2672_v29 }
0x1cbf   :  { %v5009_v18 = vpop.eup %5008 }
0x1cc0   :  { %v2676_v22 = vmul.f32 %v5009_v18, %v2478_v40 }
0x1cf9   :  { %v2655_v59 = vpop.permute.xlu0 %2654 }
0x1cfa   :  { %v2657_v2 = vmul.f32 %v5005_v5, %v2655_v59 }
0x1cfc   :  { %2659 = vrot.lane.b32.xlu0 %v2657_v2, %s5130_s16 }
0x1d16   :  { %v2679_v7 = vpop.permute.xlu1 %2678 }
0x1d17   :  { %v2681_v39 = vmul.f32 %v5009_v18, %v2679_v7 }
0x1d19   :  { %2683 = vrot.lane.b32.xlu1 %v2681_v39, %s5130_s16 }
0x1d6e   :  { %v2660_v63 = vpop.permute.xlu0 %2659 }
0x1d6f   :  { %v2662_v14 = vadd.f32 %v2660_v63, %v2652_v57 }
0x1d71   :  { %5010 = vtanh.f32 %v2662_v14 }
0x1d7b   :  { %v5011_v17 = vpop.eup %5010 }
0x1d7c   :  { %2665 = vrot.lane.b32.xlu0 %v5011_v17, %s5129_s2 }
0x1d8b   :  { %v2684_v0 = vpop.permute.xlu1 %2683 }
0x1d8c   :  { %v2686_v25 = vadd.f32 %v2684_v0, %v2676_v22 }
0x1d8e   :  { %5012 = vtanh.f32 %v2686_v25 }
0x1d98   :  { %v5013_v26 = vpop.eup %5012 }
0x1d99   :  { %2689 = vrot.lane.b32.xlu1 %v5013_v26, %s5129_s2 }
0x1dee   :  { %v2666_v51 = vpop.permute.xlu0 %2665 }
0x1def   :  { %v2668_v1 = vmul.f32 %v5005_v5, %v2666_v51 }
0x1df1   :  { %2694 = vrot.lane.b32.xlu0 %v2668_v1, %s5130_s16 }
0x1e0b   :  { %v2690_v53 = vpop.permute.xlu1 %2689 }
0x1e0c   :  { %v5795_v28 = vmul.f32 %v5009_v18, %v2690_v53 }
0x1e0e   :  { %2778 = vrot.lane.b32.xlu1 %v5795_v28, %s5130_s16 }
0x1e63   :  { %v2695_v34 = vpop.permute.xlu0 %2694 }
0x1e64   :  { %2697 = vst.msk [vmem:[#allocation3 + $0x10] sm:$0xff] %vm226_vm2, %v2695_v34  ;;  %4476 = vmatmul.mubr.msk.f32.vlgmr.msra.gmra.mrb[28].mxu1 %vm226_vm2, %v2695_v34 }
0x1e65   :  { %4771 = vmatpush3.bf16.msra.mxu1 %v5594_v10  ;;  %4497 = vmatprep.mubr.msk.f32.mxu1 %vm5128_vm0, %v5126_v3 }
0x1e66   :  { %4772 = vmatprep.subr.bf16.mxu1 %v5127_v4 }
0x1e69   :  { %4774 = vmatpush3.bf16.msra.mxu1 %v5616_v23 }
0x1e6a   :  { %4781 = vmatprep.subr.bf16.mxu1 %v5127_v4 }
0x1e80   :  { %v2779_v35 = vpop.permute.xlu1 %2778 }
0x1e81   :  { %4487 = vmatmul.mubr.msk.f32.vlgmr.msra.gmra.mrb[48].mxu0 %vm226_vm2, %v2779_v35 }
0x1e82   :  { %4777 = vmatpush3.bf16.msra.mxu0 %v5646_v32  ;;  %4508 = vmatprep.mubr.msk.f32.mxu0 %vm5128_vm0, %v5126_v3 }
0x1e83   :  { %4778 = vmatprep.subr.bf16.mxu0 %v5127_v4 }
0x1e86   :  { %4780 = vmatpush3.bf16.msra.mxu0 %v5656_v31 }
0x1e87   :  { %4787 = vmatprep.subr.bf16.mxu0 %v5127_v4 }
0x1f37   :  { %v2773_v8 = vpop.f32.mrb[28].mxu1 }
0x1f38   :  { %v2777_v36 = vadd.f32 %v2773_v8, %v5714_v30  ;;  %v4477_v37 = vpop.f32.mrb[29].mxu1 }
0x1f3a   :  { %5014 = vtanh.f32 %v2777_v36  ;;  %v4014_v42 = vmul.f32 -1.442695, %v2777_v36 }
0x1f44   :  { %v5015_v11 = vpop.eup %5014 }
0x1f45   :  { %2862 = vrot.lane.b32.xlu0 %v5015_v11, %s5129_s2 }
0x1f54   :  { %v2848_v38 = vpop.f32.mrb[48].mxu0 }
0x1f55   :  { %v2852_v40 = vadd.f32 %v2848_v38, %v5721_v13  ;;  %v4488_v20 = vpop.f32.mrb[49].mxu0 }
0x1f57   :  { %5016 = vtanh.f32 %v2852_v40  ;;  %v4015_v44 = vmul.f32 -1.442695, %v2852_v40 }
0x1f58   :  { %5018 = vpow2.f32 %v4014_v42 }
0x1f61   :  { %v5017_v56 = vpop.eup %5016 }
0x1f62   :  { %2886 = vrot.lane.b32.xlu1 %v5017_v56, %s5129_s2  ;;  %v5019_v49 = vpop.eup %5018 }
0x1f63   :  { %v2856_v16 = vadd.f32 1.0, %v5019_v49 }
0x1f65   :  { %5020 = vrcp.f32 %v2856_v16 }
0x1f66   :  { %5022 = vpow2.f32 %v4015_v44 }
0x1f6f   :  { %v5021_v30 = vpop.eup %5020 }
0x1f70   :  { %v5023_v55 = vpop.eup %5022  ;;  %v2860_v52 = vmul.f32 %v5021_v30, %v2662_v14 }
0x1f71   :  { %v2880_v47 = vadd.f32 1.0, %v5023_v55 }
0x1f73   :  { %5024 = vrcp.f32 %v2880_v47 }
0x1f7d   :  { %v5025_v13 = vpop.eup %5024 }
0x1f7e   :  { %v2884_v43 = vmul.f32 %v5025_v13, %v2686_v25 }
0x1fb7   :  { %v2863_v45 = vpop.permute.xlu0 %2862 }
0x1fb8   :  { %v2865_v21 = vmul.f32 %v5021_v30, %v2863_v45 }
0x1fba   :  { %2867 = vrot.lane.b32.xlu0 %v2865_v21, %s5130_s16 }
0x1fd4   :  { %v2887_v61 = vpop.permute.xlu1 %2886 }
0x1fd5   :  { %v2889_v50 = vmul.f32 %v5025_v13, %v2887_v61 }
0x1fd7   :  { %2891 = vrot.lane.b32.xlu1 %v2889_v50, %s5130_s16 }
0x202c   :  { %v2868_v54 = vpop.permute.xlu0 %2867 }
0x202d   :  { %v2870_v19 = vadd.f32 %v2868_v54, %v2860_v52 }
0x202f   :  { %5026 = vtanh.f32 %v2870_v19 }
0x2039   :  { %v5027_v58 = vpop.eup %5026 }
0x203a   :  { %2873 = vrot.lane.b32.xlu0 %v5027_v58, %s5129_s2 }
0x2049   :  { %v2892_v62 = vpop.permute.xlu1 %2891 }
0x204a   :  { %v2894_v5 = vadd.f32 %v2892_v62, %v2884_v43 }
0x204c   :  { %5028 = vtanh.f32 %v2894_v5 }
0x2056   :  { %v5029_v59 = vpop.eup %5028 }
0x2057   :  { %2897 = vrot.lane.b32.xlu1 %v5029_v59, %s5129_s2 }
0x20ac   :  { %v2874_v2 = vpop.permute.xlu0 %2873 }
0x20ad   :  { %v2876_v33 = vmul.f32 %v5021_v30, %v2874_v2 }
0x20af   :  { %2902 = vrot.lane.b32.xlu0 %v2876_v33, %s5130_s16 }
0x20c9   :  { %v2898_v29 = vpop.permute.xlu1 %2897 }
0x20ca   :  { %v5823_v18 = vmul.f32 %v5025_v13, %v2898_v29 }
0x20cc   :  { %2986 = vrot.lane.b32.xlu1 %v5823_v18, %s5130_s16 }
0x2121   :  { %v2903_v7 = vpop.permute.xlu0 %2902 }
0x2122   :  { %2905 = vst.msk [vmem:[#allocation3 + $0x18] sm:$0xff] %vm226_vm2, %v2903_v7  ;;  %4498 = vmatmul.mubr.msk.f32.vlgmr.msra.gmra.mrb[30].mxu1 %vm226_vm2, %v2903_v7 }
0x2123   :  { %4783 = vmatpush3.bf16.msra.mxu1 %v5594_v10  ;;  %4519 = vmatprep.mubr.msk.f32.mxu1 %vm5128_vm0, %v5126_v3 }
0x2124   :  { %4784 = vmatprep.subr.bf16.mxu1 %v5127_v4 }
0x2127   :  { %4786 = vmatpush3.bf16.msra.mxu1 %v5616_v23 }
0x2128   :  { %4793 = vmatprep.subr.bf16.mxu1 %v5127_v4 }
0x213e   :  { %v2987_v39 = vpop.permute.xlu1 %2986 }
0x213f   :  { %4509 = vmatmul.mubr.msk.f32.vlgmr.msra.gmra.mrb[50].mxu0 %vm226_vm2, %v2987_v39 }
0x2140   :  { %4789 = vmatpush3.bf16.msra.mxu0 %v5646_v32  ;;  %4530 = vmatprep.mubr.msk.f32.mxu0 %vm5128_vm0, %v5126_v3 }
0x2141   :  { %4790 = vmatprep.subr.bf16.mxu0 %v5127_v4 }
0x2144   :  { %4792 = vmatpush3.bf16.msra.mxu0 %v5656_v31 }
0x2145   :  { %4799 = vmatprep.subr.bf16.mxu0 %v5127_v4 }
0x21f5   :  { %v2981_v57 = vpop.f32.mrb[30].mxu1 }
0x21f6   :  { %v2985_v63 = vadd.f32 %v2981_v57, %v5719_v12  ;;  %v4499_v14 = vpop.f32.mrb[31].mxu1 }
0x21f8   :  { %5030 = vtanh.f32 %v2985_v63  ;;  %v4018_v51 = vmul.f32 -1.442695, %v2985_v63 }
0x2202   :  { %v5031_v17 = vpop.eup %5030 }
0x2203   :  { %3070 = vrot.lane.b32.xlu0 %v5031_v17, %s5129_s2 }
0x2212   :  { %v3056_v22 = vpop.f32.mrb[50].mxu0 }
0x2213   :  { %v3060_v0 = vadd.f32 %v3056_v22, %v5716_v9  ;;  %v4510_v25 = vpop.f32.mrb[51].mxu0 }
0x2215   :  { %5032 = vtanh.f32 %v3060_v0  ;;  %v4019_v34 = vmul.f32 -1.442695, %v3060_v0 }
0x2216   :  { %5034 = vpow2.f32 %v4018_v51 }
0x221f   :  { %v5033_v26 = vpop.eup %5032 }
0x2220   :  { %3094 = vrot.lane.b32.xlu1 %v5033_v26, %s5129_s2  ;;  %v5035_v1 = vpop.eup %5034 }
0x2221   :  { %v3064_v53 = vadd.f32 1.0, %v5035_v1 }
0x2223   :  { %5036 = vrcp.f32 %v3064_v53 }
0x2224   :  { %5038 = vpow2.f32 %v4019_v34 }
0x222d   :  { %v5037_v12 = vpop.eup %5036 }
0x222e   :  { %v5039_v36 = vpop.eup %5038  ;;  %v3068_v40 = vmul.f32 %v5037_v12, %v2870_v19 }
0x222f   :  { %v3088_v37 = vadd.f32 1.0, %v5039_v36 }
0x2231   :  { %5040 = vrcp.f32 %v3088_v37 }
0x223b   :  { %v5041_v9 = vpop.eup %5040 }
0x223c   :  { %v3092_v49 = vmul.f32 %v5041_v9, %v2894_v5 }
0x2275   :  { %v3071_v35 = vpop.permute.xlu0 %3070 }
0x2276   :  { %v3073_v8 = vmul.f32 %v5037_v12, %v3071_v35 }
0x2278   :  { %3075 = vrot.lane.b32.xlu0 %v3073_v8, %s5130_s16 }
0x2292   :  { %v3095_v11 = vpop.permute.xlu1 %3094 }
0x2293   :  { %v3097_v38 = vmul.f32 %v5041_v9, %v3095_v11 }
0x2295   :  { %3099 = vrot.lane.b32.xlu1 %v3097_v38, %s5130_s16 }
0x22ea   :  { %v3076_v20 = vpop.permute.xlu0 %3075 }
0x22eb   :  { %v3078_v56 = vadd.f32 %v3076_v20, %v3068_v40 }
0x22ed   :  { %5042 = vtanh.f32 %v3078_v56 }
0x22f7   :  { %v5043_v42 = vpop.eup %5042 }
0x22f8   :  { %3081 = vrot.lane.b32.xlu0 %v5043_v42, %s5129_s2 }
0x2307   :  { %v3100_v16 = vpop.permute.xlu1 %3099 }
0x2308   :  { %v3102_v44 = vadd.f32 %v3100_v16, %v3092_v49 }
0x230a   :  { %5044 = vtanh.f32 %v3102_v44 }
0x2314   :  { %v5045_v30 = vpop.eup %5044 }
0x2315   :  { %3105 = vrot.lane.b32.xlu1 %v5045_v30, %s5129_s2 }
0x236a   :  { %v3082_v45 = vpop.permute.xlu0 %3081 }
0x236b   :  { %v3084_v21 = vmul.f32 %v5037_v12, %v3082_v45 }
0x236d   :  { %3110 = vrot.lane.b32.xlu0 %v3084_v21, %s5130_s16 }
0x2387   :  { %v3106_v55 = vpop.permute.xlu1 %3105 }
0x2388   :  { %v5851_v47 = vmul.f32 %v5041_v9, %v3106_v55 }
0x238a   :  { %3194 = vrot.lane.b32.xlu1 %v5851_v47, %s5130_s16 }
0x23df   :  { %v5855_v13 = vpop.permute.xlu0 %3110 }
0x23e0   :  { %4520 = vmatmul.mubr.msk.f32.vlgmr.msra.gmra.mrb[32].mxu1 %vm226_vm2, %v5855_v13 }
0x23e1   :  { %4795 = vmatpush3.bf16.msra.mxu1 %v5594_v10  ;;  %4541 = vmatprep.mubr.msk.f32.mxu1 %vm5128_vm0, %v5126_v3 }
0x23e2   :  { %4796 = vmatprep.subr.bf16.mxu1 %v5127_v4 }
0x23e5   :  { %4798 = vmatpush3.bf16.msra.mxu1 %v5616_v23 }
0x23e6   :  { %4805 = vmatprep.subr.bf16.mxu1 %v5127_v4 }
0x23fc   :  { %v3195_v61 = vpop.permute.xlu1 %3194 }
0x23fd   :  { %4531 = vmatmul.mubr.msk.f32.vlgmr.msra.gmra.mrb[52].mxu0 %vm226_vm2, %v3195_v61 }
0x23fe   :  { %4801 = vmatpush3.bf16.msra.mxu0 %v5646_v32  ;;  %4552 = vmatprep.mubr.msk.f32.mxu0 %vm5128_vm0, %v5126_v3 }
0x23ff   :  { %4802 = vmatprep.subr.bf16.mxu0 %v5127_v4 }
0x2402   :  { %4804 = vmatpush3.bf16.msra.mxu0 %v5656_v31 }
0x2403   :  { %4811 = vmatprep.subr.bf16.mxu0 %v5127_v4 }
0x24b3   :  { %v3189_v50 = vpop.f32.mrb[32].mxu1 }
0x24b4   :  { %v3193_v52 = vadd.f32 %v3189_v50, %v5723_v15  ;;  %v4521_v54 = vpop.f32.mrb[33].mxu1 }
0x24b6   :  { %5046 = vtanh.f32 %v3193_v52  ;;  %v4022_v59 = vmul.f32 -1.442695, %v3193_v52 }
0x24c0   :  { %v5047_v19 = vpop.eup %5046 }
0x24c1   :  { %3278 = vrot.lane.b32.xlu0 %v5047_v19, %s5129_s2 }
0x24d0   :  { %v3264_v58 = vpop.f32.mrb[52].mxu0 }
0x24d1   :  { %v3268_v43 = vadd.f32 %v3264_v58, %v5712_v6  ;;  %v4532_v62 = vpop.f32.mrb[53].mxu0 }
0x24d3   :  { %5048 = vtanh.f32 %v3268_v43  ;;  %v4023_v29 = vmul.f32 -1.442695, %v3268_v43 }
0x24d4   :  { %5050 = vpow2.f32 %v4022_v59 }
0x24dd   :  { %v5049_v5 = vpop.eup %5048 }
0x24de   :  { %3302 = vrot.lane.b32.xlu1 %v5049_v5, %s5129_s2  ;;  %v5051_v2 = vpop.eup %5050 }
0x24df   :  { %v3272_v33 = vadd.f32 1.0, %v5051_v2 }
0x24e1   :  { %5052 = vrcp.f32 %v3272_v33 }
0x24e2   :  { %5054 = vpow2.f32 %v4023_v29 }
0x24eb   :  { %v5053_v15 = vpop.eup %5052 }
0x24ec   :  { %v5055_v57 = vpop.eup %5054  ;;  %v3276_v22 = vmul.f32 %v5053_v15, %v3078_v56 }
0x24ed   :  { %v3296_v63 = vadd.f32 1.0, %v5055_v57 }
0x24ef   :  { %5056 = vrcp.f32 %v3296_v63 }
0x24f9   :  { %v5057_v6 = vpop.eup %5056 }
0x24fa   :  { %v3300_v51 = vmul.f32 %v5057_v6, %v3102_v44 }
0x2533   :  { %v3279_v7 = vpop.permute.xlu0 %3278 }
0x2534   :  { %v3281_v39 = vmul.f32 %v5053_v15, %v3279_v7 }
0x2536   :  { %3283 = vrot.lane.b32.xlu0 %v3281_v39, %s5130_s16 }
0x2550   :  { %v3303_v14 = vpop.permute.xlu1 %3302 }
0x2551   :  { %v3305_v17 = vmul.f32 %v5057_v6, %v3303_v14 }
0x2553   :  { %3307 = vrot.lane.b32.xlu1 %v3305_v17, %s5130_s16 }
0x25a8   :  { %v3284_v0 = vpop.permute.xlu0 %3283 }
0x25a9   :  { %v3286_v25 = vadd.f32 %v3284_v0, %v3276_v22 }
0x25ab   :  { %5058 = vtanh.f32 %v3286_v25 }
0x25b5   :  { %v5059_v26 = vpop.eup %5058 }
0x25b6   :  { %3289 = vrot.lane.b32.xlu0 %v5059_v26, %s5129_s2 }
0x25c5   :  { %v3308_v1 = vpop.permute.xlu1 %3307 }
0x25c6   :  { %v3310_v53 = vadd.f32 %v3308_v1, %v3300_v51 }
0x25c8   :  { %5060 = vtanh.f32 %v3310_v53 }
0x25d2   :  { %v5061_v34 = vpop.eup %5060 }
0x25d3   :  { %3313 = vrot.lane.b32.xlu1 %v5061_v34, %s5129_s2 }
0x2628   :  { %v3290_v12 = vpop.permute.xlu0 %3289 }
0x2629   :  { %v3292_v35 = vmul.f32 %v5053_v15, %v3290_v12 }
0x262b   :  { %3318 = vrot.lane.b32.xlu0 %v3292_v35, %s5130_s16 }
0x2645   :  { %v3314_v8 = vpop.permute.xlu1 %3313 }
0x2646   :  { %v5881_v36 = vmul.f32 %v5057_v6, %v3314_v8 }
0x2648   :  { %3402 = vrot.lane.b32.xlu1 %v5881_v36, %s5130_s16 }
0x269d   :  { %v5885_v37 = vpop.permute.xlu0 %3318 }
0x269e   :  { %4542 = vmatmul.mubr.msk.f32.vlgmr.msra.gmra.mrb[34].mxu1 %vm226_vm2, %v5885_v37 }
0x269f   :  { %4807 = vmatpush3.bf16.msra.mxu1 %v5594_v10  ;;  %4563 = vmatprep.mubr.msk.f32.mxu1 %vm5128_vm0, %v5126_v3 }
0x26a0   :  { %4808 = vmatprep.subr.bf16.mxu1 %v5127_v4 }
0x26a3   :  { %4810 = vmatpush3.bf16.msra.mxu1 %v5616_v23 }
0x26ba   :  { %v3403_v9 = vpop.permute.xlu1 %3402 }
0x26bb   :  { %4553 = vmatmul.mubr.msk.f32.vlgmr.msra.gmra.mrb[54].mxu0 %vm226_vm2, %v3403_v9 }
0x26bc   :  { %4813 = vmatpush3.bf16.msra.mxu0 %v5646_v32  ;;  %4574 = vmatprep.mubr.msk.f32.mxu0 %vm5128_vm0, %v5126_v3 }
0x26bd   :  { %4814 = vmatprep.subr.bf16.mxu0 %v5127_v4 }
0x26c0   :  { %4816 = vmatpush3.bf16.msra.mxu0 %v5656_v31 }
0x2771   :  { %v3397_v10 = vpop.f32.mrb[34].mxu1 }
0x2772   :  { %v3401_v11 = vadd.f32 %v3397_v10, %v5727_v24  ;;  %v4543_v38 = vpop.f32.mrb[35].mxu1 }
0x2774   :  { %5062 = vtanh.f32 %v3401_v11  ;;  %v4026_v3 = vmul.f32 -1.442695, %v3401_v11 }
0x277e   :  { %v5063_v40 = vpop.eup %5062 }
0x277f   :  { %3486 = vrot.lane.b32.xlu0 %v5063_v40, %s5129_s2 }
0x278e   :  { %v3472_v23 = vpop.f32.mrb[54].mxu0 }
0x278f   :  { %v3476_v20 = vadd.f32 %v3472_v23, %v5708_v48  ;;  %v4554_v56 = vpop.f32.mrb[55].mxu0 }
0x2790   :  { %v3751_v56 = vld [vmem:[%s6034_s9] sm:$0xff] }
0x2791   :  { %5064 = vtanh.f32 %v3476_v20  ;;  %v4027_v42 = vmul.f32 -1.442695, %v3476_v20 }
0x2792   :  { %5066 = vpow2.f32 %v4026_v3 }
0x279b   :  { %v5065_v32 = vpop.eup %5064 }
0x279c   :  { %3510 = vrot.lane.b32.xlu1 %v5065_v32, %s5129_s2  ;;  %v5067_v4 = vpop.eup %5066 }
0x279d   :  { %v3480_v31 = vadd.f32 1.0, %v5067_v4 }
0x279f   :  { %5068 = vrcp.f32 %v3480_v31 }
0x27a0   :  { %5070 = vpow2.f32 %v4027_v42 }
0x27a9   :  { %v5069_v24 = vpop.eup %5068 }
0x27aa   :  { %v5071_v44 = vpop.eup %5070  ;;  %v3484_v55 = vmul.f32 %v5069_v24, %v3286_v25 }
0x27ab   :  { %v3504_v30 = vadd.f32 1.0, %v5071_v44  ;;  %v3756_v44 = vld [vmem:[%s6034_s9 + $0x28] sm:$0xff] }
0x27ad   :  { %5072 = vrcp.f32 %v3504_v30 }
0x27b7   :  { %v5073_v48 = vpop.eup %5072 }
0x27b8   :  { %v3508_v54 = vmul.f32 %v5073_v48, %v3310_v53 }
0x27f1   :  { %v3487_v49 = vpop.permute.xlu0 %3486 }
0x27f2   :  { %v3489_v16 = vmul.f32 %v5069_v24, %v3487_v49 }
0x27f4   :  { %3491 = vrot.lane.b32.xlu0 %v3489_v16, %s5130_s16  ;;  %v3755_v16 = vld [vmem:[%s6034_s9 + $0x20] sm:$0xff] }
0x27f5   :  { %v4825_v30 = vpack.c.bf16 %v3756_v44, %v3755_v16 }
0x280e   :  { %v3511_v45 = vpop.permute.xlu1 %3510 }
0x280f   :  { %v3513_v21 = vmul.f32 %v5073_v48, %v3511_v45 }
0x2811   :  { %3515 = vrot.lane.b32.xlu1 %v3513_v21, %s5130_s16 }
0x2866   :  { %v3492_v61 = vpop.permute.xlu0 %3491 }
0x2867   :  { %v3494_v50 = vadd.f32 %v3492_v61, %v3484_v55 }
0x2869   :  { %5074 = vtanh.f32 %v3494_v50 }
0x2873   :  { %v5075_v52 = vpop.eup %5074 }
0x2874   :  { %3497 = vrot.lane.b32.xlu0 %v5075_v52, %s5129_s2 }
0x2883   :  { %v3516_v19 = vpop.permute.xlu1 %3515 }
0x2884   :  { %v3518_v58 = vadd.f32 %v3516_v19, %v3508_v54 }
0x2886   :  { %5076 = vtanh.f32 %v3518_v58 }
0x2890   :  { %v5077_v43 = vpop.eup %5076 }
0x2891   :  { %3521 = vrot.lane.b32.xlu1 %v5077_v43, %s5129_s2 }
0x28e6   :  { %v3498_v62 = vpop.permute.xlu0 %3497 }
0x28e7   :  { %v3500_v5 = vmul.f32 %v5069_v24, %v3498_v62 }
0x28e9   :  { %3526 = vrot.lane.b32.xlu0 %v3500_v5, %s5130_s16 }
0x2903   :  { %v3522_v59 = vpop.permute.xlu1 %3521 }
0x2904   :  { %v3524_v2 = vmul.f32 %v5073_v48, %v3522_v59  ;;  %v3757_v48 = vld [vmem:[%s6034_s9 + $0x30] sm:$0xff] }
0x2906   :  { %3610 = vrot.lane.b32.xlu1 %v3524_v2, %s5130_s16 }
0x295b   :  { %v5910_v33 = vpop.permute.xlu0 %3526 }
0x295c   :  { %4564 = vmatmul.mubr.msk.f32.vlgmr.msra.gmra.mrb[36].mxu1 %vm226_vm2, %v5910_v33 }
0x2978   :  { %v3611_v29 = vpop.permute.xlu1 %3610 }
0x2979   :  { %4575 = vmatmul.mubr.msk.f32.vlgmr.msra.gmra.mrb[56].mxu0 %vm226_vm2, %v3611_v29 }
0x2a2f   :  { %v3605_v15 = vpop.f32.mrb[36].mxu1 }
0x2a30   :  { %v3609_v7 = vadd.f32 %v3605_v15, %v5731_v27  ;;  %v4565_v39 = vpop.f32.mrb[37].mxu1 }
0x2a32   :  { %5078 = vtanh.f32 %v3609_v7  ;;  %v4030_v22 = vmul.f32 -1.442695, %v3609_v7 }
0x2a3c   :  { %v5079_v57 = vpop.eup %5078 }
0x2a3d   :  { %3694 = vrot.lane.b32.xlu0 %v5079_v57, %s5129_s2 }
0x2a4c   :  { %v3680_v63 = vpop.f32.mrb[56].mxu0 }
0x2a4d   :  { %v3684_v6 = vadd.f32 %v3680_v63, %v5704_v60  ;;  %v4576_v14 = vpop.f32.mrb[57].mxu0 }
0x2a4f   :  { %5080 = vtanh.f32 %v3684_v6  ;;  %v4031_v26 = vmul.f32 -1.442695, %v3684_v6 }
0x2a50   :  { %5082 = vpow2.f32 %v4030_v22 }
0x2a59   :  { %v5081_v17 = vpop.eup %5080 }
0x2a5a   :  { %3718 = vrot.lane.b32.xlu1 %v5081_v17, %s5129_s2  ;;  %v5083_v0 = vpop.eup %5082 }
0x2a5b   :  { %v3688_v25 = vadd.f32 1.0, %v5083_v0 }
0x2a5d   :  { %5084 = vrcp.f32 %v3688_v25 }
0x2a5e   :  { %5086 = vpow2.f32 %v4031_v26 }
0x2a67   :  { %v5919_v27 = vpop.eup %5084 }
0x2a68   :  { %v5087_v60 = vpop.eup %5086  ;;  %v3692_v8 = vmul.f32 %v5919_v27, %v3494_v50 }
0x2a69   :  { %v3712_v53 = vadd.f32 1.0, %v5087_v60 }
0x2a6b   :  { %5088 = vrcp.f32 %v3712_v53 }
0x2a75   :  { %v5089_v34 = vpop.eup %5088 }
0x2a76   :  { %v3716_v38 = vmul.f32 %v5089_v34, %v3518_v58 }
0x2aaf   :  { %v3695_v51 = vpop.permute.xlu0 %3694 }
0x2ab0   :  { %v3697_v1 = vmul.f32 %v5919_v27, %v3695_v51 }
0x2ab2   :  { %3699 = vrot.lane.b32.xlu0 %v3697_v1, %s5130_s16 }
0x2acc   :  { %v3719_v12 = vpop.permute.xlu1 %3718 }
0x2acd   :  { %v3721_v35 = vmul.f32 %v5089_v34, %v3719_v12 }
0x2acf   :  { %3723 = vrot.lane.b32.xlu1 %v3721_v35, %s5130_s16 }
0x2b24   :  { %v3700_v9 = vpop.permute.xlu0 %3699 }
0x2b25   :  { %v3702_v10 = vadd.f32 %v3700_v9, %v3692_v8 }
0x2b27   :  { %5090 = vtanh.f32 %v3702_v10 }
0x2b31   :  { %v5091_v11 = vpop.eup %5090 }
0x2b32   :  { %3705 = vrot.lane.b32.xlu0 %v5091_v11, %s5129_s2 }
0x2b36   :  { %3531 = vrot.lane.b32.xlu0 %v3524_v2, %s5129_s2  ;;  %v4032_v2 = vld [vmem:[%s6035_s10] ss:$0 sm:$0xff] }
0x2b3a   :  { %3115 = vrot.lane.b32.xlu0 %v5851_v47, %s5129_s2  ;;  %v3752_v47 = vld [vmem:[%s6034_s9 + $0x8] sm:$0xff] }
0x2b3b   :  { %v4817_v32 = vpack.c.bf16 %v3752_v47, %v3751_v56 }
0x2b3d   :  { %4818 = vmatprep.subr.bf16.mxu1 %v4817_v32 }
0x2b3e   :  { %2699 = vrot.lane.b32.xlu0 %v5795_v28, %s5129_s2  ;;  %v3753_v28 = vld [vmem:[%s6034_s9 + $0x10] sm:$0xff]  ;;  %4820 = vmatpush3.bf16.msra.mxu1 %v4817_v32 }
0x2b41   :  { %v3724_v40 = vpop.permute.xlu1 %3723 }
0x2b42   :  { %v3726_v23 = vadd.f32 %v3724_v40, %v3716_v38  ;;  %2283 = vrot.lane.b32.xlu0 %v5739_v41, %s5129_s2  ;;  %v3754_v41 = vld [vmem:[%s6034_s9 + $0x18] sm:$0xff] }
0x2b43   :  { %v4821_v3 = vpack.c.bf16 %v3754_v41, %v3753_v28 }
0x2b44   :  { %5092 = vtanh.f32 %v3726_v23 }
0x2b45   :  { %4822 = vmatprep.subr.bf16.mxu1 %v4821_v3 }
0x2b46   :  { %4824 = vmatpush3.bf16.msra.mxu1 %v4821_v3 }
0x2b47   :  { %4826 = vmatprep.subr.bf16.mxu1 %v4825_v30 }
0x2b4a   :  { %4828 = vmatpush3.bf16.msra.mxu1 %v4825_v30 }
0x2b4e   :  { %v5093_v20 = vpop.eup %5092 }
0x2b4f   :  { %3729 = vrot.lane.b32.xlu1 %v5093_v20, %s5129_s2 }
0x2ba4   :  { %v3706_v4 = vpop.permute.xlu0 %3705 }
0x2ba5   :  { %v3708_v61 = vmul.f32 %v5919_v27, %v3706_v4 }
0x2ba8   :  { %v3532_v31 = vpop.permute.xlu0 %3531 }
0x2ba9   :  { %3534 = vst.msk [vmem:[#allocation3 + $0x8] sm:$0xff] %vm429_vm3, %v3532_v31 }
0x2bac   :  { %v3116_v42 = vpop.permute.xlu0 %3115 }
0x2bad   :  { %3118 = vst.msk [vmem:[#allocation3 + $0x18] sm:$0xff] %vm429_vm3, %v3116_v42 }
0x2bb0   :  { %v2700_v24 = vpop.permute.xlu0 %2699 }
0x2bb1   :  { %2702 = vst.msk [vmem:[#allocation3 + $0x28] sm:$0xff] %vm429_vm3, %v2700_v24 }
0x2bb2   :  { %3321 = vst.msk [vmem:[#allocation3 + $0x28] sm:$0xff] %vm226_vm2, %v5885_v37  ;;  %v3758_v37 = vld [vmem:[%s6034_s9 + $0x38] sm:$0xff] }
0x2bb3   :  { %v4829_v45 = vpack.c.bf16 %v3758_v37, %v3757_v48 }
0x2bb4   :  { %v2284_v49 = vpop.permute.xlu0 %2283  ;;  %v3746_v58 = vld [vmem:[#allocation3 + $0x18] sm:$0xff] }
0x2bb5   :  { %2286 = vst.msk [vmem:[#allocation3 + $0x38] sm:$0xff] %vm429_vm3, %v2284_v49  ;;  %4830 = vmatprep.subr.bf16.mxu1 %v4829_v45 }
0x2bb6   :  { %4832 = vmatpush3.bf16.msra.mxu1 %v4829_v45 }
0x2bc1   :  { %v3730_v21 = vpop.permute.xlu1 %3729 }
0x2bc2   :  { %v3732_v55 = vmul.f32 %v5089_v34, %v3730_v21 }
0x2bc4   :  { %3739 = vrot.lane.b32.xlu1 %v3732_v55, %s5129_s2 }
0x2bc8   :  { %3323 = vrot.lane.b32.xlu1 %v5881_v36, %s5129_s2 }
0x2bcc   :  { %2907 = vrot.lane.b32.xlu1 %v5823_v18, %s5129_s2  ;;  %v3744_v18 = vld [vmem:[#allocation3 + $0x8] sm:$0xff] }
0x2bd0   :  { %2491 = vrot.lane.b32.xlu1 %v5767_v46, %s5129_s2 }
0x2bd4   :  { %3734 = vrot.lane.b32.xlu1 %v3708_v61, %s5130_s16 }
0x2c36   :  { %v3740_v50 = vpop.permute.xlu1 %3739 }
0x2c37   :  { %3742 = vst.msk [vmem:[#allocation3] sm:$0xff] %vm429_vm3, %v3740_v50 }
0x2c3a   :  { %v3324_v52 = vpop.permute.xlu1 %3323 }
0x2c3b   :  { %3326 = vst.msk [vmem:[#allocation3 + $0x10] sm:$0xff] %vm429_vm3, %v3324_v52 }
0x2c3e   :  { %v2908_v54 = vpop.permute.xlu1 %2907  ;;  %v3743_v19 = vld [vmem:[#allocation3] sm:$0xff] }
0x2c3f   :  { %2910 = vst.msk [vmem:[#allocation3 + $0x20] sm:$0xff] %vm429_vm3, %v2908_v54  ;;  %4593 = vmatprep.mubr.msk.f32.mxu1 %vm1923_vm4, %v3743_v19 }
0x2c40   :  { %3113 = vst.msk [vmem:[#allocation3 + $0x20] sm:$0xff] %vm226_vm2, %v5855_v13  ;;  %4594 = vmatmul.mubr.msk.f32.vlgmr.msra.gmra.mrb[38].mxu1 %vm1923_vm4, %v3744_v18  ;;  %v3748_v13 = vld [vmem:[#allocation3 + $0x28] sm:$0xff] }
0x2c42   :  { %v2492_v46 = vpop.permute.xlu1 %2491  ;;  %v3745_v36 = vld [vmem:[#allocation3 + $0x10] sm:$0xff] }
0x2c43   :  { %2494 = vst.msk [vmem:[#allocation3 + $0x30] sm:$0xff] %vm429_vm3, %v2492_v46  ;;  %4596 = vmatprep.mubr.msk.f32.mxu1 %vm1923_vm4, %v3745_v36 }
0x2c44   :  { %3529 = vst.msk [vmem:[#allocation3 + $0x30] sm:$0xff] %vm226_vm2, %v5910_v33  ;;  %4597 = vmatmul.mubr.msk.f32.gmra.mrb[40].mxu1 %vm1923_vm4, %v3746_v58 }
0x2c46   :  { %v3735_v43 = vpop.permute.xlu1 %3734 }
0x2c47   :  { %3737 = vst.msk [vmem:[#allocation3 + $0x38] sm:$0xff] %vm226_vm2, %v3735_v43  ;;  %v3747_v62 = vld [vmem:[#allocation3 + $0x20] sm:$0xff] }
0x2c48   :  { %4599 = vmatprep.mubr.msk.f32.mxu1 %vm1923_vm4, %v3747_v62 }
0x2c49   :  { %4600 = vmatmul.mubr.msk.f32.gmra.mrb[42].mxu1 %vm1923_vm4, %v3748_v13 }
0x2c4b   :  { %v3749_v5 = vld [vmem:[#allocation3 + $0x30] sm:$0xff] }
0x2c4c   :  { %4602 = vmatprep.mubr.msk.f32.mxu1 %vm1923_vm4, %v3749_v5 }
0x2c4e   :  { %v3750_v59 = vld [vmem:[#allocation3 + $0x38] sm:$0xff] }
0x2c4f   :  { %4603 = vmatmul.mubr.msk.f32.gmra.mrb[44].mxu1 %vm1923_vm4, %v3750_v59 }
0x2d13   :  { %v4595_v33 = vpop.f32.mrb[38].mxu1 }
0x2d14   :  { %v3862_v29 = vadd.f32 %v4595_v33, %v4032_v2  ;;  %v3856_v15 = vpop.f32.mrb[39].mxu1 }
0x2d15   :  { %v3857_v7 = vadd.f32 %v4032_v2, %v3856_v15 }
0x2d16   :  { %v4042_v39 = vmul.f32 -1.442695, %v3862_v29 }
0x2d17   :  { %v4041_v57 = vmul.f32 -1.442695, %v3857_v7  ;;  %v4598_v63 = vpop.f32.mrb[40].mxu1 }
0x2d18   :  { %5094 = vpow2.f32 %v4042_v39  ;;  %v3872_v6 = vadd.f32 %v4598_v63, %v4032_v2  ;;  %v3866_v14 = vpop.f32.mrb[41].mxu1 }
0x2d19   :  { %5096 = vpow2.f32 %v4041_v57  ;;  %v3867_v17 = vadd.f32 %v4032_v2, %v3866_v14 }
0x2d1a   :  { %v4044_v22 = vmul.f32 -1.442695, %v3872_v6 }
0x2d1b   :  { %v4043_v0 = vmul.f32 -1.442695, %v3867_v17 }
0x2d1c   :  { %5098 = vpow2.f32 %v4044_v22  ;;  %v4601_v25 = vpop.f32.mrb[42].mxu1 }
0x2d1d   :  { %5100 = vpow2.f32 %v4043_v0  ;;  %v3882_v26 = vadd.f32 %v4601_v25, %v4032_v2  ;;  %v3876_v27 = vpop.f32.mrb[43].mxu1 }
0x2d1e   :  { %v3877_v51 = vadd.f32 %v4032_v2, %v3876_v27 }
0x2d1f   :  { %v4046_v1 = vmul.f32 -1.442695, %v3882_v26 }
0x2d20   :  { %v4045_v60 = vmul.f32 -1.442695, %v3877_v51 }
0x2d21   :  { %5102 = vpow2.f32 %v4046_v1 }
0x2d22   :  { %v5095_v53 = vpop.eup %5094  ;;  %5104 = vpow2.f32 %v4045_v60  ;;  %v4604_v34 = vpop.f32.mrb[44].mxu1 }
0x2d23   :  { %v5097_v12 = vpop.eup %5096  ;;  %v3920_v35 = vadd.f32 1.0, %v5095_v53  ;;  %v3892_v8 = vadd.f32 %v4604_v34, %v4032_v2  ;;  %v3886_v9 = vpop.f32.mrb[45].mxu1 }
0x2d24   :  { %v3919_v10 = vadd.f32 1.0, %v5097_v12  ;;  %v3887_v11 = vadd.f32 %v4032_v2, %v3886_v9 }
0x2d25   :  { %5106 = vrcp.f32 %v3920_v35  ;;  %v4048_v38 = vmul.f32 -1.442695, %v3892_v8 }
0x2d26   :  { %v5099_v40 = vpop.eup %5098  ;;  %5108 = vrcp.f32 %v3919_v10  ;;  %v4047_v23 = vmul.f32 -1.442695, %v3887_v11 }
0x2d27   :  { %v5101_v20 = vpop.eup %5100  ;;  %v3922_v56 = vadd.f32 1.0, %v5099_v40  ;;  %5110 = vpow2.f32 %v4048_v38 }
0x2d28   :  { %v3921_v47 = vadd.f32 1.0, %v5101_v20  ;;  %5112 = vpow2.f32 %v4047_v23 }
0x2d29   :  { %5114 = vrcp.f32 %v3922_v56 }
0x2d2a   :  { %5116 = vrcp.f32 %v3921_v47 }
0x2d2b   :  { %v5103_v28 = vpop.eup %5102 }
0x2d2c   :  { %v5105_v32 = vpop.eup %5104  ;;  %v3924_v41 = vadd.f32 1.0, %v5103_v28 }
0x2d2d   :  { %v3923_v3 = vadd.f32 1.0, %v5105_v32 }
0x2d2e   :  { %5118 = vrcp.f32 %v3924_v41 }
0x2d2f   :  { %v5107_v4 = vpop.eup %5106  ;;  %5120 = vrcp.f32 %v3923_v3 }
0x2d30   :  { %v5109_v31 = vpop.eup %5108  ;;  %3945 = vst.msk [vmem:[%s6036_s11 + $0x8] sm:$0xff] %vm3943_vm5, %v5107_v4 }
0x2d31   :  { %v5111_v42 = vpop.eup %5110  ;;  %3944 = vst.msk [vmem:[%s6036_s11] sm:$0xff] %vm3943_vm5, %v5109_v31 }
0x2d32   :  { %v5113_v24 = vpop.eup %5112  ;;  %v3926_v49 = vadd.f32 1.0, %v5111_v42 }
0x2d33   :  { %v5115_v16 = vpop.eup %5114  ;;  %v3925_v44 = vadd.f32 1.0, %v5113_v24 }
0x2d34   :  { %v5117_v30 = vpop.eup %5116  ;;  %3947 = vst.msk [vmem:[%s6036_s11 + $0x18] sm:$0xff] %vm3943_vm5, %v5115_v16  ;;  %5122 = vrcp.f32 %v3926_v49 }
0x2d35   :  { %3946 = vst.msk [vmem:[%s6036_s11 + $0x10] sm:$0xff] %vm3943_vm5, %v5117_v30  ;;  %5124 = vrcp.f32 %v3925_v44 }
0x2d38   :  { %v5119_v48 = vpop.eup %5118 }
0x2d39   :  { %v5121_v37 = vpop.eup %5120  ;;  %3949 = vst.msk [vmem:[%s6036_s11 + $0x28] sm:$0xff] %vm3943_vm5, %v5119_v48 }
0x2d3a   :  { %3948 = vst.msk [vmem:[%s6036_s11 + $0x20] sm:$0xff] %vm3943_vm5, %v5121_v37 }
0x2d3e   :  { %v5123_v45 = vpop.eup %5122 }
0x2d3f   :  { %v5125_v21 = vpop.eup %5124  ;;  %3951 = vst.msk [vmem:[%s6036_s11 + $0x38] sm:$0xff] %vm3943_vm5, %v5123_v45 }
0x2d40   :  { %3950 = vst.msk [vmem:[%s6036_s11 + $0x30] sm:$0xff] %vm3943_vm5, %v5125_v21 }

</bundles_post_ra>
